<compile_context>
chip_gen: v5e
topology: v5e:2x2
jax: 0.10.0
libtpu: 0.0.40
codegen_flags: <defaults>
</compile_context>

<pallas_src>
import functools

import jax
import jax.numpy as jnp
from jax.experimental import pallas as pl
from jax.experimental.pallas import tpu as pltpu

LANE = 128  # TPU lane width; hidden / gates / vocab are padded to this


# --------------------------------- kernel ---------------------------------
def smile_rnn_kernel(x_emb_ref, h0_ref, w_i_ref, w_h_ref, b_i_ref, b_hn_ref,
                     w_out_ref, b_out_ref, logp_ref, h_out_ref, *, T, P, L):
    """GRU stack (batch=1) + Linear + LogSoftmax, everything lane-aligned to P=128.

    x_emb_ref : [T, P]       embedded input (E zero-padded to P lanes)
    h0_ref    : [L, P]       initial hidden (H zero-padded to P lanes)
    w_i_ref   : [L, P, 3P]   input->gate weights, gate-major ([r|z|n], each P lanes)
    w_h_ref   : [L, P, 3P]   hidden->gate weights, same layout
    b_i_ref   : [L, 3P]      hoisted bias: b_i with b_h's r/z parts folded in
    b_hn_ref  : [L, P]       hidden n-gate bias (must stay inside r * (...))
    w_out_ref : [P, Vp]      output Linear weight (vocab padded to Vp)
    b_out_ref : [1, Vp]      output bias; padded lanes = -1e9
    logp_ref  : [T, Vp]      log-probs (lane-dense)
    h_out_ref : [L, P]       final hidden per layer
    """
    seq = x_emb_ref[...]                                           # [T, P]
    h_finals = []

    for l in range(L):                                             # L static -> Python loop
        w_i = w_i_ref[l]                                           # [P, 3P]
        w_h = w_h_ref[l]                                           # [P, 3P]
        b_i = b_i_ref[pl.ds(l, 1), :]                              # [1, 3P]
        b_hn = b_hn_ref[pl.ds(l, 1), :]                            # [1, P]

        # Hoisted input projection: one batched matmul, off the sequential path.
        gi = jnp.dot(seq, w_i, preferred_element_type=jnp.float32) + b_i   # [T, 3P]

        h = h0_ref[pl.ds(l, 1), :]                                 # [1, P]
        rows = []
        for t in range(T):                                         # T static -> unrolled
            gi_t = gi[t:t + 1, :]                                  # [1, 3P] static slice
            gh = jnp.dot(h, w_h, preferred_element_type=jnp.float32)        # [1, 3P]
            # Gate slices are full 128-lane (vreg-aligned) selections.
            r = jax.nn.sigmoid(gi_t[:, 0:P] + gh[:, 0:P])
            z = jax.nn.sigmoid(gi_t[:, P:2 * P] + gh[:, P:2 * P])
            n = jnp.tanh(gi_t[:, 2 * P:3 * P] + r * (gh[:, 2 * P:3 * P] + b_hn))
            h = n + z * (h - n)                                    # == (1-z)*n + z*h
            rows.append(h)
        seq = jnp.concatenate(rows, axis=0)                        # [T, P], stays in vregs
        h_finals.append(h)

    h_out_ref[...] = jnp.concatenate(h_finals, axis=0)             # single store

    # ---- output head: Linear + LogSoftmax(dim=-1), lane-dense (Vp multiple of 128) ----
    logits = jnp.dot(seq, w_out_ref[...],
                     preferred_element_type=jnp.float32) + b_out_ref[...]   # [T, Vp]
    m = jnp.max(logits, axis=-1, keepdims=True)
    lse = jnp.log(jnp.sum(jnp.exp(logits - m), axis=-1, keepdims=True))
    logp_ref[...] = logits - m - lse


# ---------------------------- weight preparation ---------------------------
def _pad2(a, rows, cols):
    return jnp.pad(a, ((0, rows - a.shape[0]), (0, cols - a.shape[1])))


def prepare_params(params, *, E, H, L, V1, P=LANE):
    """One-time repack of PyTorch-layout GRU params into padded, gate-major,
    lane-aligned slabs. Call ONCE, not per forward call."""
    assert E <= P and H <= P, "pad-to-128 layout assumes E, H <= 128"
    Vp = ((V1 + P - 1) // P) * P

    def gate_pack(w):                    # w: [3H, in] (PyTorch layout)
        slabs = [_pad2(w[g * H:(g + 1) * H, :].T, P, P) for g in range(3)]  # 3 x [P, P]
        return jnp.concatenate(slabs, axis=1)                               # [P, 3P]

    def bias_pack_folded(bi, bh):        # both [3H]; fold b_h r/z into hoisted bias
        slabs = []
        for g in range(3):
            b = bi[g * H:(g + 1) * H]
            if g < 2:                    # r, z: b_i + b_h is exact (outside any nonlinearity)
                b = b + bh[g * H:(g + 1) * H]
            slabs.append(jnp.pad(b, (0, P - H)))
        return jnp.concatenate(slabs)                                        # [3P]

    w_i = jnp.stack([gate_pack(params["w_ih"][l]) for l in range(L)])        # [L, P, 3P]
    w_h = jnp.stack([gate_pack(params["w_hh"][l]) for l in range(L)])        # [L, P, 3P]
    b_i = jnp.stack([bias_pack_folded(params["b_ih"][l], params["b_hh"][l])
                     for l in range(L)])                                     # [L, 3P]
    b_hn = jnp.stack([jnp.pad(params["b_hh"][l][2 * H:3 * H], (0, P - H))
                      for l in range(L)])                                    # [L, P]

    emb = _pad2(params["emb"], params["emb"].shape[0], P)                    # [V1, P]
    w_out = _pad2(params["w_out"].T, P, Vp)                                  # [P, Vp]
    b_out = jnp.full((1, Vp), -1e9, jnp.float32).at[0, :V1].set(params["b_out"])

    return dict(emb=emb, w_i=w_i, w_h=w_h, b_i=b_i, b_hn=b_hn,
                w_out=w_out, b_out=b_out)


# --------------------------------- wrapper ---------------------------------
@functools.partial(jax.jit, static_argnames=("H", "L", "V1"))
def smile_rnn_forward(x, h0, pp, *, H, L, V1):
    """Mirrors SmileRNN.forward(x, h). x:[T] int32, h0:[L,1,H].
    Returns (out [1, T, V1], h [L, 1, H])."""
    P = LANE
    T = x.shape[0]
    Vp = pp["w_out"].shape[1]

    x_emb = jnp.take(pp["emb"], x, axis=0)                  # [T, P] (table pre-padded)
    h0p = jnp.pad(h0[:, 0, :], ((0, 0), (0, P - H)))        # [L, P]

    vmem = pl.BlockSpec(memory_space=pltpu.MemorySpace.VMEM)
    kernel = functools.partial(smile_rnn_kernel, T=T, P=P, L=L)

    logp, h_out = pl.pallas_call(
        kernel,
        out_shape=(jax.ShapeDtypeStruct((T, Vp), jnp.float32),
                   jax.ShapeDtypeStruct((L, P), jnp.float32)),
        in_specs=[vmem] * 8,
        out_specs=(vmem, vmem),
    )(x_emb, h0p, pp["w_i"], pp["w_h"], pp["b_i"], pp["b_hn"],
      pp["w_out"], pp["b_out"])

    return logp[None, :, :V1], h_out[:, None, :H]


# ---------------- pure-JAX reference (for correctness check) ----------------
def ref_forward(x, h0, params, *, H, L):
    emb = jnp.take(params["emb"], x, axis=0)
    inp = emb
    h_fin = []
    for l in range(L):
        Wi, Wh = params["w_ih"][l], params["w_hh"][l]
        bi, bh = params["b_ih"][l], params["b_hh"][l]
        hl = h0[l, 0]
        outs = []
        for t in range(inp.shape[0]):
            gi = inp[t] @ Wi.T + bi
            gh = hl @ Wh.T + bh
            r = jax.nn.sigmoid(gi[:H] + gh[:H])
            z = jax.nn.sigmoid(gi[H:2 * H] + gh[H:2 * H])
            n = jnp.tanh(gi[2 * H:] + r * gh[2 * H:])
            hl = (1.0 - z) * n + z * hl
            outs.append(hl)
        inp = jnp.stack(outs)
        h_fin.append(hl)
    logits = inp @ params["w_out"].T + params["b_out"]
    return jax.nn.log_softmax(logits, axis=-1)[None], jnp.stack(h_fin)[:, None, :]


# ---------------- deterministic parameter construction ----------------
def make_params(key, n_unique_chars, E, H, L):
    V1 = n_unique_chars + 1
    ks = iter(jax.random.split(key, 4 * L + 4))
    s = 0.1
    params = {
        "emb": jax.random.normal(next(ks), (V1, E), jnp.float32) * s,
        "w_ih": [], "w_hh": [], "b_ih": [], "b_hh": [],
        "w_out": jax.random.normal(next(ks), (V1, H), jnp.float32) * s,
        "b_out": jax.random.normal(next(ks), (V1,), jnp.float32) * s,
    }
    for l in range(L):
        in_dim = E if l == 0 else H
        params["w_ih"].append(jax.random.normal(next(ks), (3 * H, in_dim), jnp.float32) * s)
        params["w_hh"].append(jax.random.normal(next(ks), (3 * H, H), jnp.float32) * s)
        params["b_ih"].append(jax.random.normal(next(ks), (3 * H,), jnp.float32) * s)
        params["b_hh"].append(jax.random.normal(next(ks), (3 * H,), jnp.float32) * s)
    return params


if __name__ == "__main__":
    # small shapes consistent with the module
    n_unique_chars = 39          # -> vocab = 40
    char_embedding_dim = 32
    hidden_layer_dim = 32
    n_hidden_layers = 2
    seq_len = 8
    V1 = n_unique_chars + 1

    key = jax.random.PRNGKey(0)
    k_par, k_x, k_h = jax.random.split(key, 3)

    params = make_params(k_par, n_unique_chars, char_embedding_dim,
                         hidden_layer_dim, n_hidden_layers)
    # One-time, lane-aligned weight repack (kept out of the per-call path).
    pp = prepare_params(params, E=char_embedding_dim, H=hidden_layer_dim,
                        L=n_hidden_layers, V1=V1)

    x = jax.random.randint(k_x, (seq_len,), 0, V1, dtype=jnp.int32)
    # init_hidden(): xavier_normal_ on [L, 1, H]
    xav_std = (2.0 / (1 + hidden_layer_dim)) ** 0.5
    h0 = jax.random.normal(k_h, (n_hidden_layers, 1, hidden_layer_dim), jnp.float32) * xav_std

    out, h_new = smile_rnn_forward(x, h0, pp, H=hidden_layer_dim,
                                   L=n_hidden_layers, V1=V1)
    jax.block_until_ready((out, h_new))

    out_ref, h_ref = ref_forward(x, h0, params, H=hidden_layer_dim, L=n_hidden_layers)
    assert out.shape == (1, seq_len, V1)
    assert h_new.shape == (n_hidden_layers, 1, hidden_layer_dim)
    assert jnp.allclose(out, out_ref, atol=1e-4, rtol=1e-4)
    assert jnp.allclose(h_new, h_ref, atol=1e-4, rtol=1e-4)

    print("KERNEL_OK")
</pallas_src>

<mosaic_0001>
module attributes {stable_mosaic.version = 11 : i64} {
  func.func @smile_rnn_kernel(%arg0: memref<8x128xf32, #tpu.memory_space<vmem>>, %arg1: memref<2x128xf32, #tpu.memory_space<vmem>>, %arg2: memref<2x128x384xf32, #tpu.memory_space<vmem>>, %arg3: memref<2x128x384xf32, #tpu.memory_space<vmem>>, %arg4: memref<2x384xf32, #tpu.memory_space<vmem>>, %arg5: memref<2x128xf32, #tpu.memory_space<vmem>>, %arg6: memref<128x128xf32, #tpu.memory_space<vmem>>, %arg7: memref<1x128xf32, #tpu.memory_space<vmem>>, %arg8: memref<8x128xf32, #tpu.memory_space<vmem>>, %arg9: memref<2x128xf32, #tpu.memory_space<vmem>>) attributes {dimension_semantics = [], scalar_prefetch = 0 : i64, scratch_operands = 0 : i64, tpu.core_type = #tpu.core_type<tc>} {
    %c0 = arith.constant 0 : index
    %c0_0 = arith.constant 0 : index
    %0 = vector.load %arg0[%c0, %c0_0] : memref<8x128xf32, #tpu.memory_space<vmem>>, vector<8x128xf32>
    %c0_1 = arith.constant 0 : index
    %c0_2 = arith.constant 0 : index
    %c0_3 = arith.constant 0 : index
    %1 = vector.load %arg2[%c0_1, %c0_2, %c0_3] : memref<2x128x384xf32, #tpu.memory_space<vmem>>, vector<1x128x384xf32>
    %2 = vector.shape_cast %1 : vector<1x128x384xf32> to vector<128x384xf32>
    %c0_4 = arith.constant 0 : index
    %c0_5 = arith.constant 0 : index
    %c0_6 = arith.constant 0 : index
    %3 = vector.load %arg3[%c0_4, %c0_5, %c0_6] : memref<2x128x384xf32, #tpu.memory_space<vmem>>, vector<1x128x384xf32>
    %4 = vector.shape_cast %3 : vector<1x128x384xf32> to vector<128x384xf32>
    %c0_7 = arith.constant 0 : index
    %c0_8 = arith.constant 0 : index
    %5 = vector.load %arg4[%c0_7, %c0_8] : memref<2x384xf32, #tpu.memory_space<vmem>>, vector<1x384xf32>
    %c0_9 = arith.constant 0 : index
    %c0_10 = arith.constant 0 : index
    %6 = vector.load %arg5[%c0_9, %c0_10] : memref<2x128xf32, #tpu.memory_space<vmem>>, vector<1x128xf32>
    %cst = arith.constant dense<0.000000e+00> : vector<8x384xf32>
    %7 = tpu.matmul %0, %2, %cst {dimension_numbers = #tpu.dot_dimension_numbers<[1], [0], [0], [1], [0, 0, 1, 1], [], []>} : vector<8x128xf32>, vector<128x384xf32>, vector<8x384xf32> -> vector<8x384xf32>
    %8 = vector.broadcast %5 : vector<1x384xf32> to vector<8x384xf32>
    %9 = arith.addf %7, %8 : vector<8x384xf32>
    %c0_11 = arith.constant 0 : index
    %c0_12 = arith.constant 0 : index
    %10 = vector.load %arg1[%c0_11, %c0_12] : memref<2x128xf32, #tpu.memory_space<vmem>>, vector<1x128xf32>
    %11 = vector.extract_strided_slice %9 {offsets = [0, 0], sizes = [1, 384], strides = [1, 1]} : vector<8x384xf32> to vector<1x384xf32>
    %cst_13 = arith.constant dense<0.000000e+00> : vector<1x384xf32>
    %12 = tpu.matmul %10, %4, %cst_13 {dimension_numbers = #tpu.dot_dimension_numbers<[1], [0], [0], [1], [0, 0, 1, 1], [], []>} : vector<1x128xf32>, vector<128x384xf32>, vector<1x384xf32> -> vector<1x384xf32>
    %13 = vector.extract_strided_slice %11 {offsets = [0, 0], sizes = [1, 128], strides = [1, 1]} : vector<1x384xf32> to vector<1x128xf32>
    %14 = vector.extract_strided_slice %12 {offsets = [0, 0], sizes = [1, 128], strides = [1, 1]} : vector<1x384xf32> to vector<1x128xf32>
    %15 = arith.addf %13, %14 : vector<1x128xf32>
    %16 = arith.negf %15 : vector<1x128xf32>
    %17 = math.exp %16 : vector<1x128xf32>
    %cst_14 = arith.constant 1.000000e+00 : f32
    %18 = vector.broadcast %cst_14 : f32 to vector<1x128xf32>
    %19 = arith.addf %18, %17 : vector<1x128xf32>
    %20 = arith.divf %18, %19 : vector<1x128xf32>
    %21 = vector.extract_strided_slice %11 {offsets = [0, 128], sizes = [1, 128], strides = [1, 1]} : vector<1x384xf32> to vector<1x128xf32>
    %22 = vector.extract_strided_slice %12 {offsets = [0, 128], sizes = [1, 128], strides = [1, 1]} : vector<1x384xf32> to vector<1x128xf32>
    %23 = arith.addf %21, %22 : vector<1x128xf32>
    %24 = arith.negf %23 : vector<1x128xf32>
    %25 = math.exp %24 : vector<1x128xf32>
    %cst_15 = arith.constant 1.000000e+00 : f32
    %26 = vector.broadcast %cst_15 : f32 to vector<1x128xf32>
    %27 = arith.addf %26, %25 : vector<1x128xf32>
    %28 = arith.divf %26, %27 : vector<1x128xf32>
    %29 = vector.extract_strided_slice %11 {offsets = [0, 256], sizes = [1, 128], strides = [1, 1]} : vector<1x384xf32> to vector<1x128xf32>
    %30 = vector.extract_strided_slice %12 {offsets = [0, 256], sizes = [1, 128], strides = [1, 1]} : vector<1x384xf32> to vector<1x128xf32>
    %31 = arith.addf %30, %6 : vector<1x128xf32>
    %32 = arith.mulf %20, %31 : vector<1x128xf32>
    %33 = arith.addf %29, %32 : vector<1x128xf32>
    %34 = math.tanh %33 : vector<1x128xf32>
    %35 = arith.subf %10, %34 : vector<1x128xf32>
    %36 = arith.mulf %28, %35 : vector<1x128xf32>
    %37 = arith.addf %34, %36 : vector<1x128xf32>
    %38 = vector.extract_strided_slice %9 {offsets = [1, 0], sizes = [1, 384], strides = [1, 1]} : vector<8x384xf32> to vector<1x384xf32>
    %cst_16 = arith.constant dense<0.000000e+00> : vector<1x384xf32>
    %39 = tpu.matmul %37, %4, %cst_16 {dimension_numbers = #tpu.dot_dimension_numbers<[1], [0], [0], [1], [0, 0, 1, 1], [], []>} : vector<1x128xf32>, vector<128x384xf32>, vector<1x384xf32> -> vector<1x384xf32>
    %40 = vector.extract_strided_slice %38 {offsets = [0, 0], sizes = [1, 128], strides = [1, 1]} : vector<1x384xf32> to vector<1x128xf32>
    %41 = vector.extract_strided_slice %39 {offsets = [0, 0], sizes = [1, 128], strides = [1, 1]} : vector<1x384xf32> to vector<1x128xf32>
    %42 = arith.addf %40, %41 : vector<1x128xf32>
    %43 = arith.negf %42 : vector<1x128xf32>
    %44 = math.exp %43 : vector<1x128xf32>
    %cst_17 = arith.constant 1.000000e+00 : f32
    %45 = vector.broadcast %cst_17 : f32 to vector<1x128xf32>
    %46 = arith.addf %45, %44 : vector<1x128xf32>
    %47 = arith.divf %45, %46 : vector<1x128xf32>
    %48 = vector.extract_strided_slice %38 {offsets = [0, 128], sizes = [1, 128], strides = [1, 1]} : vector<1x384xf32> to vector<1x128xf32>
    %49 = vector.extract_strided_slice %39 {offsets = [0, 128], sizes = [1, 128], strides = [1, 1]} : vector<1x384xf32> to vector<1x128xf32>
    %50 = arith.addf %48, %49 : vector<1x128xf32>
    %51 = arith.negf %50 : vector<1x128xf32>
    %52 = math.exp %51 : vector<1x128xf32>
    %cst_18 = arith.constant 1.000000e+00 : f32
    %53 = vector.broadcast %cst_18 : f32 to vector<1x128xf32>
    %54 = arith.addf %53, %52 : vector<1x128xf32>
    %55 = arith.divf %53, %54 : vector<1x128xf32>
    %56 = vector.extract_strided_slice %38 {offsets = [0, 256], sizes = [1, 128], strides = [1, 1]} : vector<1x384xf32> to vector<1x128xf32>
    %57 = vector.extract_strided_slice %39 {offsets = [0, 256], sizes = [1, 128], strides = [1, 1]} : vector<1x384xf32> to vector<1x128xf32>
    %58 = arith.addf %57, %6 : vector<1x128xf32>
    %59 = arith.mulf %47, %58 : vector<1x128xf32>
    %60 = arith.addf %56, %59 : vector<1x128xf32>
    %61 = math.tanh %60 : vector<1x128xf32>
    %62 = arith.subf %37, %61 : vector<1x128xf32>
    %63 = arith.mulf %55, %62 : vector<1x128xf32>
    %64 = arith.addf %61, %63 : vector<1x128xf32>
    %65 = vector.extract_strided_slice %9 {offsets = [2, 0], sizes = [1, 384], strides = [1, 1]} : vector<8x384xf32> to vector<1x384xf32>
    %cst_19 = arith.constant dense<0.000000e+00> : vector<1x384xf32>
    %66 = tpu.matmul %64, %4, %cst_19 {dimension_numbers = #tpu.dot_dimension_numbers<[1], [0], [0], [1], [0, 0, 1, 1], [], []>} : vector<1x128xf32>, vector<128x384xf32>, vector<1x384xf32> -> vector<1x384xf32>
    %67 = vector.extract_strided_slice %65 {offsets = [0, 0], sizes = [1, 128], strides = [1, 1]} : vector<1x384xf32> to vector<1x128xf32>
    %68 = vector.extract_strided_slice %66 {offsets = [0, 0], sizes = [1, 128], strides = [1, 1]} : vector<1x384xf32> to vector<1x128xf32>
    %69 = arith.addf %67, %68 : vector<1x128xf32>
    %70 = arith.negf %69 : vector<1x128xf32>
    %71 = math.exp %70 : vector<1x128xf32>
    %cst_20 = arith.constant 1.000000e+00 : f32
    %72 = vector.broadcast %cst_20 : f32 to vector<1x128xf32>
    %73 = arith.addf %72, %71 : vector<1x128xf32>
    %74 = arith.divf %72, %73 : vector<1x128xf32>
    %75 = vector.extract_strided_slice %65 {offsets = [0, 128], sizes = [1, 128], strides = [1, 1]} : vector<1x384xf32> to vector<1x128xf32>
    %76 = vector.extract_strided_slice %66 {offsets = [0, 128], sizes = [1, 128], strides = [1, 1]} : vector<1x384xf32> to vector<1x128xf32>
    %77 = arith.addf %75, %76 : vector<1x128xf32>
    %78 = arith.negf %77 : vector<1x128xf32>
    %79 = math.exp %78 : vector<1x128xf32>
    %cst_21 = arith.constant 1.000000e+00 : f32
    %80 = vector.broadcast %cst_21 : f32 to vector<1x128xf32>
    %81 = arith.addf %80, %79 : vector<1x128xf32>
    %82 = arith.divf %80, %81 : vector<1x128xf32>
    %83 = vector.extract_strided_slice %65 {offsets = [0, 256], sizes = [1, 128], strides = [1, 1]} : vector<1x384xf32> to vector<1x128xf32>
    %84 = vector.extract_strided_slice %66 {offsets = [0, 256], sizes = [1, 128], strides = [1, 1]} : vector<1x384xf32> to vector<1x128xf32>
    %85 = arith.addf %84, %6 : vector<1x128xf32>
    %86 = arith.mulf %74, %85 : vector<1x128xf32>
    %87 = arith.addf %83, %86 : vector<1x128xf32>
    %88 = math.tanh %87 : vector<1x128xf32>
    %89 = arith.subf %64, %88 : vector<1x128xf32>
    %90 = arith.mulf %82, %89 : vector<1x128xf32>
    %91 = arith.addf %88, %90 : vector<1x128xf32>
    %92 = vector.extract_strided_slice %9 {offsets = [3, 0], sizes = [1, 384], strides = [1, 1]} : vector<8x384xf32> to vector<1x384xf32>
    %cst_22 = arith.constant dense<0.000000e+00> : vector<1x384xf32>
    %93 = tpu.matmul %91, %4, %cst_22 {dimension_numbers = #tpu.dot_dimension_numbers<[1], [0], [0], [1], [0, 0, 1, 1], [], []>} : vector<1x128xf32>, vector<128x384xf32>, vector<1x384xf32> -> vector<1x384xf32>
    %94 = vector.extract_strided_slice %92 {offsets = [0, 0], sizes = [1, 128], strides = [1, 1]} : vector<1x384xf32> to vector<1x128xf32>
    %95 = vector.extract_strided_slice %93 {offsets = [0, 0], sizes = [1, 128], strides = [1, 1]} : vector<1x384xf32> to vector<1x128xf32>
    %96 = arith.addf %94, %95 : vector<1x128xf32>
    %97 = arith.negf %96 : vector<1x128xf32>
    %98 = math.exp %97 : vector<1x128xf32>
    %cst_23 = arith.constant 1.000000e+00 : f32
    %99 = vector.broadcast %cst_23 : f32 to vector<1x128xf32>
    %100 = arith.addf %99, %98 : vector<1x128xf32>
    %101 = arith.divf %99, %100 : vector<1x128xf32>
    %102 = vector.extract_strided_slice %92 {offsets = [0, 128], sizes = [1, 128], strides = [1, 1]} : vector<1x384xf32> to vector<1x128xf32>
    %103 = vector.extract_strided_slice %93 {offsets = [0, 128], sizes = [1, 128], strides = [1, 1]} : vector<1x384xf32> to vector<1x128xf32>
    %104 = arith.addf %102, %103 : vector<1x128xf32>
    %105 = arith.negf %104 : vector<1x128xf32>
    %106 = math.exp %105 : vector<1x128xf32>
    %cst_24 = arith.constant 1.000000e+00 : f32
    %107 = vector.broadcast %cst_24 : f32 to vector<1x128xf32>
    %108 = arith.addf %107, %106 : vector<1x128xf32>
    %109 = arith.divf %107, %108 : vector<1x128xf32>
    %110 = vector.extract_strided_slice %92 {offsets = [0, 256], sizes = [1, 128], strides = [1, 1]} : vector<1x384xf32> to vector<1x128xf32>
    %111 = vector.extract_strided_slice %93 {offsets = [0, 256], sizes = [1, 128], strides = [1, 1]} : vector<1x384xf32> to vector<1x128xf32>
    %112 = arith.addf %111, %6 : vector<1x128xf32>
    %113 = arith.mulf %101, %112 : vector<1x128xf32>
    %114 = arith.addf %110, %113 : vector<1x128xf32>
    %115 = math.tanh %114 : vector<1x128xf32>
    %116 = arith.subf %91, %115 : vector<1x128xf32>
    %117 = arith.mulf %109, %116 : vector<1x128xf32>
    %118 = arith.addf %115, %117 : vector<1x128xf32>
    %119 = vector.extract_strided_slice %9 {offsets = [4, 0], sizes = [1, 384], strides = [1, 1]} : vector<8x384xf32> to vector<1x384xf32>
    %cst_25 = arith.constant dense<0.000000e+00> : vector<1x384xf32>
    %120 = tpu.matmul %118, %4, %cst_25 {dimension_numbers = #tpu.dot_dimension_numbers<[1], [0], [0], [1], [0, 0, 1, 1], [], []>} : vector<1x128xf32>, vector<128x384xf32>, vector<1x384xf32> -> vector<1x384xf32>
    %121 = vector.extract_strided_slice %119 {offsets = [0, 0], sizes = [1, 128], strides = [1, 1]} : vector<1x384xf32> to vector<1x128xf32>
    %122 = vector.extract_strided_slice %120 {offsets = [0, 0], sizes = [1, 128], strides = [1, 1]} : vector<1x384xf32> to vector<1x128xf32>
    %123 = arith.addf %121, %122 : vector<1x128xf32>
    %124 = arith.negf %123 : vector<1x128xf32>
    %125 = math.exp %124 : vector<1x128xf32>
    %cst_26 = arith.constant 1.000000e+00 : f32
    %126 = vector.broadcast %cst_26 : f32 to vector<1x128xf32>
    %127 = arith.addf %126, %125 : vector<1x128xf32>
    %128 = arith.divf %126, %127 : vector<1x128xf32>
    %129 = vector.extract_strided_slice %119 {offsets = [0, 128], sizes = [1, 128], strides = [1, 1]} : vector<1x384xf32> to vector<1x128xf32>
    %130 = vector.extract_strided_slice %120 {offsets = [0, 128], sizes = [1, 128], strides = [1, 1]} : vector<1x384xf32> to vector<1x128xf32>
    %131 = arith.addf %129, %130 : vector<1x128xf32>
    %132 = arith.negf %131 : vector<1x128xf32>
    %133 = math.exp %132 : vector<1x128xf32>
    %cst_27 = arith.constant 1.000000e+00 : f32
    %134 = vector.broadcast %cst_27 : f32 to vector<1x128xf32>
    %135 = arith.addf %134, %133 : vector<1x128xf32>
    %136 = arith.divf %134, %135 : vector<1x128xf32>
    %137 = vector.extract_strided_slice %119 {offsets = [0, 256], sizes = [1, 128], strides = [1, 1]} : vector<1x384xf32> to vector<1x128xf32>
    %138 = vector.extract_strided_slice %120 {offsets = [0, 256], sizes = [1, 128], strides = [1, 1]} : vector<1x384xf32> to vector<1x128xf32>
    %139 = arith.addf %138, %6 : vector<1x128xf32>
    %140 = arith.mulf %128, %139 : vector<1x128xf32>
    %141 = arith.addf %137, %140 : vector<1x128xf32>
    %142 = math.tanh %141 : vector<1x128xf32>
    %143 = arith.subf %118, %142 : vector<1x128xf32>
    %144 = arith.mulf %136, %143 : vector<1x128xf32>
    %145 = arith.addf %142, %144 : vector<1x128xf32>
    %146 = vector.extract_strided_slice %9 {offsets = [5, 0], sizes = [1, 384], strides = [1, 1]} : vector<8x384xf32> to vector<1x384xf32>
    %cst_28 = arith.constant dense<0.000000e+00> : vector<1x384xf32>
    %147 = tpu.matmul %145, %4, %cst_28 {dimension_numbers = #tpu.dot_dimension_numbers<[1], [0], [0], [1], [0, 0, 1, 1], [], []>} : vector<1x128xf32>, vector<128x384xf32>, vector<1x384xf32> -> vector<1x384xf32>
    %148 = vector.extract_strided_slice %146 {offsets = [0, 0], sizes = [1, 128], strides = [1, 1]} : vector<1x384xf32> to vector<1x128xf32>
    %149 = vector.extract_strided_slice %147 {offsets = [0, 0], sizes = [1, 128], strides = [1, 1]} : vector<1x384xf32> to vector<1x128xf32>
    %150 = arith.addf %148, %149 : vector<1x128xf32>
    %151 = arith.negf %150 : vector<1x128xf32>
    %152 = math.exp %151 : vector<1x128xf32>
    %cst_29 = arith.constant 1.000000e+00 : f32
    %153 = vector.broadcast %cst_29 : f32 to vector<1x128xf32>
    %154 = arith.addf %153, %152 : vector<1x128xf32>
    %155 = arith.divf %153, %154 : vector<1x128xf32>
    %156 = vector.extract_strided_slice %146 {offsets = [0, 128], sizes = [1, 128], strides = [1, 1]} : vector<1x384xf32> to vector<1x128xf32>
    %157 = vector.extract_strided_slice %147 {offsets = [0, 128], sizes = [1, 128], strides = [1, 1]} : vector<1x384xf32> to vector<1x128xf32>
    %158 = arith.addf %156, %157 : vector<1x128xf32>
    %159 = arith.negf %158 : vector<1x128xf32>
    %160 = math.exp %159 : vector<1x128xf32>
    %cst_30 = arith.constant 1.000000e+00 : f32
    %161 = vector.broadcast %cst_30 : f32 to vector<1x128xf32>
    %162 = arith.addf %161, %160 : vector<1x128xf32>
    %163 = arith.divf %161, %162 : vector<1x128xf32>
    %164 = vector.extract_strided_slice %146 {offsets = [0, 256], sizes = [1, 128], strides = [1, 1]} : vector<1x384xf32> to vector<1x128xf32>
    %165 = vector.extract_strided_slice %147 {offsets = [0, 256], sizes = [1, 128], strides = [1, 1]} : vector<1x384xf32> to vector<1x128xf32>
    %166 = arith.addf %165, %6 : vector<1x128xf32>
    %167 = arith.mulf %155, %166 : vector<1x128xf32>
    %168 = arith.addf %164, %167 : vector<1x128xf32>
    %169 = math.tanh %168 : vector<1x128xf32>
    %170 = arith.subf %145, %169 : vector<1x128xf32>
    %171 = arith.mulf %163, %170 : vector<1x128xf32>
    %172 = arith.addf %169, %171 : vector<1x128xf32>
    %173 = vector.extract_strided_slice %9 {offsets = [6, 0], sizes = [1, 384], strides = [1, 1]} : vector<8x384xf32> to vector<1x384xf32>
    %cst_31 = arith.constant dense<0.000000e+00> : vector<1x384xf32>
    %174 = tpu.matmul %172, %4, %cst_31 {dimension_numbers = #tpu.dot_dimension_numbers<[1], [0], [0], [1], [0, 0, 1, 1], [], []>} : vector<1x128xf32>, vector<128x384xf32>, vector<1x384xf32> -> vector<1x384xf32>
    %175 = vector.extract_strided_slice %173 {offsets = [0, 0], sizes = [1, 128], strides = [1, 1]} : vector<1x384xf32> to vector<1x128xf32>
    %176 = vector.extract_strided_slice %174 {offsets = [0, 0], sizes = [1, 128], strides = [1, 1]} : vector<1x384xf32> to vector<1x128xf32>
    %177 = arith.addf %175, %176 : vector<1x128xf32>
    %178 = arith.negf %177 : vector<1x128xf32>
    %179 = math.exp %178 : vector<1x128xf32>
    %cst_32 = arith.constant 1.000000e+00 : f32
    %180 = vector.broadcast %cst_32 : f32 to vector<1x128xf32>
    %181 = arith.addf %180, %179 : vector<1x128xf32>
    %182 = arith.divf %180, %181 : vector<1x128xf32>
    %183 = vector.extract_strided_slice %173 {offsets = [0, 128], sizes = [1, 128], strides = [1, 1]} : vector<1x384xf32> to vector<1x128xf32>
    %184 = vector.extract_strided_slice %174 {offsets = [0, 128], sizes = [1, 128], strides = [1, 1]} : vector<1x384xf32> to vector<1x128xf32>
    %185 = arith.addf %183, %184 : vector<1x128xf32>
    %186 = arith.negf %185 : vector<1x128xf32>
    %187 = math.exp %186 : vector<1x128xf32>
    %cst_33 = arith.constant 1.000000e+00 : f32
    %188 = vector.broadcast %cst_33 : f32 to vector<1x128xf32>
    %189 = arith.addf %188, %187 : vector<1x128xf32>
    %190 = arith.divf %188, %189 : vector<1x128xf32>
    %191 = vector.extract_strided_slice %173 {offsets = [0, 256], sizes = [1, 128], strides = [1, 1]} : vector<1x384xf32> to vector<1x128xf32>
    %192 = vector.extract_strided_slice %174 {offsets = [0, 256], sizes = [1, 128], strides = [1, 1]} : vector<1x384xf32> to vector<1x128xf32>
    %193 = arith.addf %192, %6 : vector<1x128xf32>
    %194 = arith.mulf %182, %193 : vector<1x128xf32>
    %195 = arith.addf %191, %194 : vector<1x128xf32>
    %196 = math.tanh %195 : vector<1x128xf32>
    %197 = arith.subf %172, %196 : vector<1x128xf32>
    %198 = arith.mulf %190, %197 : vector<1x128xf32>
    %199 = arith.addf %196, %198 : vector<1x128xf32>
    %200 = vector.extract_strided_slice %9 {offsets = [7, 0], sizes = [1, 384], strides = [1, 1]} : vector<8x384xf32> to vector<1x384xf32>
    %cst_34 = arith.constant dense<0.000000e+00> : vector<1x384xf32>
    %201 = tpu.matmul %199, %4, %cst_34 {dimension_numbers = #tpu.dot_dimension_numbers<[1], [0], [0], [1], [0, 0, 1, 1], [], []>} : vector<1x128xf32>, vector<128x384xf32>, vector<1x384xf32> -> vector<1x384xf32>
    %202 = vector.extract_strided_slice %200 {offsets = [0, 0], sizes = [1, 128], strides = [1, 1]} : vector<1x384xf32> to vector<1x128xf32>
    %203 = vector.extract_strided_slice %201 {offsets = [0, 0], sizes = [1, 128], strides = [1, 1]} : vector<1x384xf32> to vector<1x128xf32>
    %204 = arith.addf %202, %203 : vector<1x128xf32>
    %205 = arith.negf %204 : vector<1x128xf32>
    %206 = math.exp %205 : vector<1x128xf32>
    %cst_35 = arith.constant 1.000000e+00 : f32
    %207 = vector.broadcast %cst_35 : f32 to vector<1x128xf32>
    %208 = arith.addf %207, %206 : vector<1x128xf32>
    %209 = arith.divf %207, %208 : vector<1x128xf32>
    %210 = vector.extract_strided_slice %200 {offsets = [0, 128], sizes = [1, 128], strides = [1, 1]} : vector<1x384xf32> to vector<1x128xf32>
    %211 = vector.extract_strided_slice %201 {offsets = [0, 128], sizes = [1, 128], strides = [1, 1]} : vector<1x384xf32> to vector<1x128xf32>
    %212 = arith.addf %210, %211 : vector<1x128xf32>
    %213 = arith.negf %212 : vector<1x128xf32>
    %214 = math.exp %213 : vector<1x128xf32>
    %cst_36 = arith.constant 1.000000e+00 : f32
    %215 = vector.broadcast %cst_36 : f32 to vector<1x128xf32>
    %216 = arith.addf %215, %214 : vector<1x128xf32>
    %217 = arith.divf %215, %216 : vector<1x128xf32>
    %218 = vector.extract_strided_slice %200 {offsets = [0, 256], sizes = [1, 128], strides = [1, 1]} : vector<1x384xf32> to vector<1x128xf32>
    %219 = vector.extract_strided_slice %201 {offsets = [0, 256], sizes = [1, 128], strides = [1, 1]} : vector<1x384xf32> to vector<1x128xf32>
    %220 = arith.addf %219, %6 : vector<1x128xf32>
    %221 = arith.mulf %209, %220 : vector<1x128xf32>
    %222 = arith.addf %218, %221 : vector<1x128xf32>
    %223 = math.tanh %222 : vector<1x128xf32>
    %224 = arith.subf %199, %223 : vector<1x128xf32>
    %225 = arith.mulf %217, %224 : vector<1x128xf32>
    %226 = arith.addf %223, %225 : vector<1x128xf32>
    %227 = tpu.concatenate %37, %64, %91, %118, %145, %172, %199, %226 in 0 : vector<1x128xf32>, vector<1x128xf32>, vector<1x128xf32>, vector<1x128xf32>, vector<1x128xf32>, vector<1x128xf32>, vector<1x128xf32>, vector<1x128xf32> -> vector<8x128xf32>
    %c1 = arith.constant 1 : index
    %c0_37 = arith.constant 0 : index
    %c0_38 = arith.constant 0 : index
    %228 = vector.load %arg2[%c1, %c0_37, %c0_38] : memref<2x128x384xf32, #tpu.memory_space<vmem>>, vector<1x128x384xf32>
    %229 = vector.shape_cast %228 : vector<1x128x384xf32> to vector<128x384xf32>
    %c1_39 = arith.constant 1 : index
    %c0_40 = arith.constant 0 : index
    %c0_41 = arith.constant 0 : index
    %230 = vector.load %arg3[%c1_39, %c0_40, %c0_41] : memref<2x128x384xf32, #tpu.memory_space<vmem>>, vector<1x128x384xf32>
    %231 = vector.shape_cast %230 : vector<1x128x384xf32> to vector<128x384xf32>
    %c1_42 = arith.constant 1 : index
    %c0_43 = arith.constant 0 : index
    %232 = vector.load %arg4[%c1_42, %c0_43] : memref<2x384xf32, #tpu.memory_space<vmem>>, vector<1x384xf32>
    %c1_44 = arith.constant 1 : index
    %c0_45 = arith.constant 0 : index
    %233 = vector.load %arg5[%c1_44, %c0_45] : memref<2x128xf32, #tpu.memory_space<vmem>>, vector<1x128xf32>
    %cst_46 = arith.constant dense<0.000000e+00> : vector<8x384xf32>
    %234 = tpu.matmul %227, %229, %cst_46 {dimension_numbers = #tpu.dot_dimension_numbers<[1], [0], [0], [1], [0, 0, 1, 1], [], []>} : vector<8x128xf32>, vector<128x384xf32>, vector<8x384xf32> -> vector<8x384xf32>
    %235 = vector.broadcast %232 : vector<1x384xf32> to vector<8x384xf32>
    %236 = arith.addf %234, %235 : vector<8x384xf32>
    %c1_47 = arith.constant 1 : index
    %c0_48 = arith.constant 0 : index
    %237 = vector.load %arg1[%c1_47, %c0_48] : memref<2x128xf32, #tpu.memory_space<vmem>>, vector<1x128xf32>
    %238 = vector.extract_strided_slice %236 {offsets = [0, 0], sizes = [1, 384], strides = [1, 1]} : vector<8x384xf32> to vector<1x384xf32>
    %cst_49 = arith.constant dense<0.000000e+00> : vector<1x384xf32>
    %239 = tpu.matmul %237, %231, %cst_49 {dimension_numbers = #tpu.dot_dimension_numbers<[1], [0], [0], [1], [0, 0, 1, 1], [], []>} : vector<1x128xf32>, vector<128x384xf32>, vector<1x384xf32> -> vector<1x384xf32>
    %240 = vector.extract_strided_slice %238 {offsets = [0, 0], sizes = [1, 128], strides = [1, 1]} : vector<1x384xf32> to vector<1x128xf32>
    %241 = vector.extract_strided_slice %239 {offsets = [0, 0], sizes = [1, 128], strides = [1, 1]} : vector<1x384xf32> to vector<1x128xf32>
    %242 = arith.addf %240, %241 : vector<1x128xf32>
    %243 = arith.negf %242 : vector<1x128xf32>
    %244 = math.exp %243 : vector<1x128xf32>
    %cst_50 = arith.constant 1.000000e+00 : f32
    %245 = vector.broadcast %cst_50 : f32 to vector<1x128xf32>
    %246 = arith.addf %245, %244 : vector<1x128xf32>
    %247 = arith.divf %245, %246 : vector<1x128xf32>
    %248 = vector.extract_strided_slice %238 {offsets = [0, 128], sizes = [1, 128], strides = [1, 1]} : vector<1x384xf32> to vector<1x128xf32>
    %249 = vector.extract_strided_slice %239 {offsets = [0, 128], sizes = [1, 128], strides = [1, 1]} : vector<1x384xf32> to vector<1x128xf32>
    %250 = arith.addf %248, %249 : vector<1x128xf32>
    %251 = arith.negf %250 : vector<1x128xf32>
    %252 = math.exp %251 : vector<1x128xf32>
    %cst_51 = arith.constant 1.000000e+00 : f32
    %253 = vector.broadcast %cst_51 : f32 to vector<1x128xf32>
    %254 = arith.addf %253, %252 : vector<1x128xf32>
    %255 = arith.divf %253, %254 : vector<1x128xf32>
    %256 = vector.extract_strided_slice %238 {offsets = [0, 256], sizes = [1, 128], strides = [1, 1]} : vector<1x384xf32> to vector<1x128xf32>
    %257 = vector.extract_strided_slice %239 {offsets = [0, 256], sizes = [1, 128], strides = [1, 1]} : vector<1x384xf32> to vector<1x128xf32>
    %258 = arith.addf %257, %233 : vector<1x128xf32>
    %259 = arith.mulf %247, %258 : vector<1x128xf32>
    %260 = arith.addf %256, %259 : vector<1x128xf32>
    %261 = math.tanh %260 : vector<1x128xf32>
    %262 = arith.subf %237, %261 : vector<1x128xf32>
    %263 = arith.mulf %255, %262 : vector<1x128xf32>
    %264 = arith.addf %261, %263 : vector<1x128xf32>
    %265 = vector.extract_strided_slice %236 {offsets = [1, 0], sizes = [1, 384], strides = [1, 1]} : vector<8x384xf32> to vector<1x384xf32>
    %cst_52 = arith.constant dense<0.000000e+00> : vector<1x384xf32>
    %266 = tpu.matmul %264, %231, %cst_52 {dimension_numbers = #tpu.dot_dimension_numbers<[1], [0], [0], [1], [0, 0, 1, 1], [], []>} : vector<1x128xf32>, vector<128x384xf32>, vector<1x384xf32> -> vector<1x384xf32>
    %267 = vector.extract_strided_slice %265 {offsets = [0, 0], sizes = [1, 128], strides = [1, 1]} : vector<1x384xf32> to vector<1x128xf32>
    %268 = vector.extract_strided_slice %266 {offsets = [0, 0], sizes = [1, 128], strides = [1, 1]} : vector<1x384xf32> to vector<1x128xf32>
    %269 = arith.addf %267, %268 : vector<1x128xf32>
    %270 = arith.negf %269 : vector<1x128xf32>
    %271 = math.exp %270 : vector<1x128xf32>
    %cst_53 = arith.constant 1.000000e+00 : f32
    %272 = vector.broadcast %cst_53 : f32 to vector<1x128xf32>
    %273 = arith.addf %272, %271 : vector<1x128xf32>
    %274 = arith.divf %272, %273 : vector<1x128xf32>
    %275 = vector.extract_strided_slice %265 {offsets = [0, 128], sizes = [1, 128], strides = [1, 1]} : vector<1x384xf32> to vector<1x128xf32>
    %276 = vector.extract_strided_slice %266 {offsets = [0, 128], sizes = [1, 128], strides = [1, 1]} : vector<1x384xf32> to vector<1x128xf32>
    %277 = arith.addf %275, %276 : vector<1x128xf32>
    %278 = arith.negf %277 : vector<1x128xf32>
    %279 = math.exp %278 : vector<1x128xf32>
    %cst_54 = arith.constant 1.000000e+00 : f32
    %280 = vector.broadcast %cst_54 : f32 to vector<1x128xf32>
    %281 = arith.addf %280, %279 : vector<1x128xf32>
    %282 = arith.divf %280, %281 : vector<1x128xf32>
    %283 = vector.extract_strided_slice %265 {offsets = [0, 256], sizes = [1, 128], strides = [1, 1]} : vector<1x384xf32> to vector<1x128xf32>
    %284 = vector.extract_strided_slice %266 {offsets = [0, 256], sizes = [1, 128], strides = [1, 1]} : vector<1x384xf32> to vector<1x128xf32>
    %285 = arith.addf %284, %233 : vector<1x128xf32>
    %286 = arith.mulf %274, %285 : vector<1x128xf32>
    %287 = arith.addf %283, %286 : vector<1x128xf32>
    %288 = math.tanh %287 : vector<1x128xf32>
    %289 = arith.subf %264, %288 : vector<1x128xf32>
    %290 = arith.mulf %282, %289 : vector<1x128xf32>
    %291 = arith.addf %288, %290 : vector<1x128xf32>
    %292 = vector.extract_strided_slice %236 {offsets = [2, 0], sizes = [1, 384], strides = [1, 1]} : vector<8x384xf32> to vector<1x384xf32>
    %cst_55 = arith.constant dense<0.000000e+00> : vector<1x384xf32>
    %293 = tpu.matmul %291, %231, %cst_55 {dimension_numbers = #tpu.dot_dimension_numbers<[1], [0], [0], [1], [0, 0, 1, 1], [], []>} : vector<1x128xf32>, vector<128x384xf32>, vector<1x384xf32> -> vector<1x384xf32>
    %294 = vector.extract_strided_slice %292 {offsets = [0, 0], sizes = [1, 128], strides = [1, 1]} : vector<1x384xf32> to vector<1x128xf32>
    %295 = vector.extract_strided_slice %293 {offsets = [0, 0], sizes = [1, 128], strides = [1, 1]} : vector<1x384xf32> to vector<1x128xf32>
    %296 = arith.addf %294, %295 : vector<1x128xf32>
    %297 = arith.negf %296 : vector<1x128xf32>
    %298 = math.exp %297 : vector<1x128xf32>
    %cst_56 = arith.constant 1.000000e+00 : f32
    %299 = vector.broadcast %cst_56 : f32 to vector<1x128xf32>
    %300 = arith.addf %299, %298 : vector<1x128xf32>
    %301 = arith.divf %299, %300 : vector<1x128xf32>
    %302 = vector.extract_strided_slice %292 {offsets = [0, 128], sizes = [1, 128], strides = [1, 1]} : vector<1x384xf32> to vector<1x128xf32>
    %303 = vector.extract_strided_slice %293 {offsets = [0, 128], sizes = [1, 128], strides = [1, 1]} : vector<1x384xf32> to vector<1x128xf32>
    %304 = arith.addf %302, %303 : vector<1x128xf32>
    %305 = arith.negf %304 : vector<1x128xf32>
    %306 = math.exp %305 : vector<1x128xf32>
    %cst_57 = arith.constant 1.000000e+00 : f32
    %307 = vector.broadcast %cst_57 : f32 to vector<1x128xf32>
    %308 = arith.addf %307, %306 : vector<1x128xf32>
    %309 = arith.divf %307, %308 : vector<1x128xf32>
    %310 = vector.extract_strided_slice %292 {offsets = [0, 256], sizes = [1, 128], strides = [1, 1]} : vector<1x384xf32> to vector<1x128xf32>
    %311 = vector.extract_strided_slice %293 {offsets = [0, 256], sizes = [1, 128], strides = [1, 1]} : vector<1x384xf32> to vector<1x128xf32>
    %312 = arith.addf %311, %233 : vector<1x128xf32>
    %313 = arith.mulf %301, %312 : vector<1x128xf32>
    %314 = arith.addf %310, %313 : vector<1x128xf32>
    %315 = math.tanh %314 : vector<1x128xf32>
    %316 = arith.subf %291, %315 : vector<1x128xf32>
    %317 = arith.mulf %309, %316 : vector<1x128xf32>
    %318 = arith.addf %315, %317 : vector<1x128xf32>
    %319 = vector.extract_strided_slice %236 {offsets = [3, 0], sizes = [1, 384], strides = [1, 1]} : vector<8x384xf32> to vector<1x384xf32>
    %cst_58 = arith.constant dense<0.000000e+00> : vector<1x384xf32>
    %320 = tpu.matmul %318, %231, %cst_58 {dimension_numbers = #tpu.dot_dimension_numbers<[1], [0], [0], [1], [0, 0, 1, 1], [], []>} : vector<1x128xf32>, vector<128x384xf32>, vector<1x384xf32> -> vector<1x384xf32>
    %321 = vector.extract_strided_slice %319 {offsets = [0, 0], sizes = [1, 128], strides = [1, 1]} : vector<1x384xf32> to vector<1x128xf32>
    %322 = vector.extract_strided_slice %320 {offsets = [0, 0], sizes = [1, 128], strides = [1, 1]} : vector<1x384xf32> to vector<1x128xf32>
    %323 = arith.addf %321, %322 : vector<1x128xf32>
    %324 = arith.negf %323 : vector<1x128xf32>
    %325 = math.exp %324 : vector<1x128xf32>
    %cst_59 = arith.constant 1.000000e+00 : f32
    %326 = vector.broadcast %cst_59 : f32 to vector<1x128xf32>
    %327 = arith.addf %326, %325 : vector<1x128xf32>
    %328 = arith.divf %326, %327 : vector<1x128xf32>
    %329 = vector.extract_strided_slice %319 {offsets = [0, 128], sizes = [1, 128], strides = [1, 1]} : vector<1x384xf32> to vector<1x128xf32>
    %330 = vector.extract_strided_slice %320 {offsets = [0, 128], sizes = [1, 128], strides = [1, 1]} : vector<1x384xf32> to vector<1x128xf32>
    %331 = arith.addf %329, %330 : vector<1x128xf32>
    %332 = arith.negf %331 : vector<1x128xf32>
    %333 = math.exp %332 : vector<1x128xf32>
    %cst_60 = arith.constant 1.000000e+00 : f32
    %334 = vector.broadcast %cst_60 : f32 to vector<1x128xf32>
    %335 = arith.addf %334, %333 : vector<1x128xf32>
    %336 = arith.divf %334, %335 : vector<1x128xf32>
    %337 = vector.extract_strided_slice %319 {offsets = [0, 256], sizes = [1, 128], strides = [1, 1]} : vector<1x384xf32> to vector<1x128xf32>
    %338 = vector.extract_strided_slice %320 {offsets = [0, 256], sizes = [1, 128], strides = [1, 1]} : vector<1x384xf32> to vector<1x128xf32>
    %339 = arith.addf %338, %233 : vector<1x128xf32>
    %340 = arith.mulf %328, %339 : vector<1x128xf32>
    %341 = arith.addf %337, %340 : vector<1x128xf32>
    %342 = math.tanh %341 : vector<1x128xf32>
    %343 = arith.subf %318, %342 : vector<1x128xf32>
    %344 = arith.mulf %336, %343 : vector<1x128xf32>
    %345 = arith.addf %342, %344 : vector<1x128xf32>
    %346 = vector.extract_strided_slice %236 {offsets = [4, 0], sizes = [1, 384], strides = [1, 1]} : vector<8x384xf32> to vector<1x384xf32>
    %cst_61 = arith.constant dense<0.000000e+00> : vector<1x384xf32>
    %347 = tpu.matmul %345, %231, %cst_61 {dimension_numbers = #tpu.dot_dimension_numbers<[1], [0], [0], [1], [0, 0, 1, 1], [], []>} : vector<1x128xf32>, vector<128x384xf32>, vector<1x384xf32> -> vector<1x384xf32>
    %348 = vector.extract_strided_slice %346 {offsets = [0, 0], sizes = [1, 128], strides = [1, 1]} : vector<1x384xf32> to vector<1x128xf32>
    %349 = vector.extract_strided_slice %347 {offsets = [0, 0], sizes = [1, 128], strides = [1, 1]} : vector<1x384xf32> to vector<1x128xf32>
    %350 = arith.addf %348, %349 : vector<1x128xf32>
    %351 = arith.negf %350 : vector<1x128xf32>
    %352 = math.exp %351 : vector<1x128xf32>
    %cst_62 = arith.constant 1.000000e+00 : f32
    %353 = vector.broadcast %cst_62 : f32 to vector<1x128xf32>
    %354 = arith.addf %353, %352 : vector<1x128xf32>
    %355 = arith.divf %353, %354 : vector<1x128xf32>
    %356 = vector.extract_strided_slice %346 {offsets = [0, 128], sizes = [1, 128], strides = [1, 1]} : vector<1x384xf32> to vector<1x128xf32>
    %357 = vector.extract_strided_slice %347 {offsets = [0, 128], sizes = [1, 128], strides = [1, 1]} : vector<1x384xf32> to vector<1x128xf32>
    %358 = arith.addf %356, %357 : vector<1x128xf32>
    %359 = arith.negf %358 : vector<1x128xf32>
    %360 = math.exp %359 : vector<1x128xf32>
    %cst_63 = arith.constant 1.000000e+00 : f32
    %361 = vector.broadcast %cst_63 : f32 to vector<1x128xf32>
    %362 = arith.addf %361, %360 : vector<1x128xf32>
    %363 = arith.divf %361, %362 : vector<1x128xf32>
    %364 = vector.extract_strided_slice %346 {offsets = [0, 256], sizes = [1, 128], strides = [1, 1]} : vector<1x384xf32> to vector<1x128xf32>
    %365 = vector.extract_strided_slice %347 {offsets = [0, 256], sizes = [1, 128], strides = [1, 1]} : vector<1x384xf32> to vector<1x128xf32>
    %366 = arith.addf %365, %233 : vector<1x128xf32>
    %367 = arith.mulf %355, %366 : vector<1x128xf32>
    %368 = arith.addf %364, %367 : vector<1x128xf32>
    %369 = math.tanh %368 : vector<1x128xf32>
    %370 = arith.subf %345, %369 : vector<1x128xf32>
    %371 = arith.mulf %363, %370 : vector<1x128xf32>
    %372 = arith.addf %369, %371 : vector<1x128xf32>
    %373 = vector.extract_strided_slice %236 {offsets = [5, 0], sizes = [1, 384], strides = [1, 1]} : vector<8x384xf32> to vector<1x384xf32>
    %cst_64 = arith.constant dense<0.000000e+00> : vector<1x384xf32>
    %374 = tpu.matmul %372, %231, %cst_64 {dimension_numbers = #tpu.dot_dimension_numbers<[1], [0], [0], [1], [0, 0, 1, 1], [], []>} : vector<1x128xf32>, vector<128x384xf32>, vector<1x384xf32> -> vector<1x384xf32>
    %375 = vector.extract_strided_slice %373 {offsets = [0, 0], sizes = [1, 128], strides = [1, 1]} : vector<1x384xf32> to vector<1x128xf32>
    %376 = vector.extract_strided_slice %374 {offsets = [0, 0], sizes = [1, 128], strides = [1, 1]} : vector<1x384xf32> to vector<1x128xf32>
    %377 = arith.addf %375, %376 : vector<1x128xf32>
    %378 = arith.negf %377 : vector<1x128xf32>
    %379 = math.exp %378 : vector<1x128xf32>
    %cst_65 = arith.constant 1.000000e+00 : f32
    %380 = vector.broadcast %cst_65 : f32 to vector<1x128xf32>
    %381 = arith.addf %380, %379 : vector<1x128xf32>
    %382 = arith.divf %380, %381 : vector<1x128xf32>
    %383 = vector.extract_strided_slice %373 {offsets = [0, 128], sizes = [1, 128], strides = [1, 1]} : vector<1x384xf32> to vector<1x128xf32>
    %384 = vector.extract_strided_slice %374 {offsets = [0, 128], sizes = [1, 128], strides = [1, 1]} : vector<1x384xf32> to vector<1x128xf32>
    %385 = arith.addf %383, %384 : vector<1x128xf32>
    %386 = arith.negf %385 : vector<1x128xf32>
    %387 = math.exp %386 : vector<1x128xf32>
    %cst_66 = arith.constant 1.000000e+00 : f32
    %388 = vector.broadcast %cst_66 : f32 to vector<1x128xf32>
    %389 = arith.addf %388, %387 : vector<1x128xf32>
    %390 = arith.divf %388, %389 : vector<1x128xf32>
    %391 = vector.extract_strided_slice %373 {offsets = [0, 256], sizes = [1, 128], strides = [1, 1]} : vector<1x384xf32> to vector<1x128xf32>
    %392 = vector.extract_strided_slice %374 {offsets = [0, 256], sizes = [1, 128], strides = [1, 1]} : vector<1x384xf32> to vector<1x128xf32>
    %393 = arith.addf %392, %233 : vector<1x128xf32>
    %394 = arith.mulf %382, %393 : vector<1x128xf32>
    %395 = arith.addf %391, %394 : vector<1x128xf32>
    %396 = math.tanh %395 : vector<1x128xf32>
    %397 = arith.subf %372, %396 : vector<1x128xf32>
    %398 = arith.mulf %390, %397 : vector<1x128xf32>
    %399 = arith.addf %396, %398 : vector<1x128xf32>
    %400 = vector.extract_strided_slice %236 {offsets = [6, 0], sizes = [1, 384], strides = [1, 1]} : vector<8x384xf32> to vector<1x384xf32>
    %cst_67 = arith.constant dense<0.000000e+00> : vector<1x384xf32>
    %401 = tpu.matmul %399, %231, %cst_67 {dimension_numbers = #tpu.dot_dimension_numbers<[1], [0], [0], [1], [0, 0, 1, 1], [], []>} : vector<1x128xf32>, vector<128x384xf32>, vector<1x384xf32> -> vector<1x384xf32>
    %402 = vector.extract_strided_slice %400 {offsets = [0, 0], sizes = [1, 128], strides = [1, 1]} : vector<1x384xf32> to vector<1x128xf32>
    %403 = vector.extract_strided_slice %401 {offsets = [0, 0], sizes = [1, 128], strides = [1, 1]} : vector<1x384xf32> to vector<1x128xf32>
    %404 = arith.addf %402, %403 : vector<1x128xf32>
    %405 = arith.negf %404 : vector<1x128xf32>
    %406 = math.exp %405 : vector<1x128xf32>
    %cst_68 = arith.constant 1.000000e+00 : f32
    %407 = vector.broadcast %cst_68 : f32 to vector<1x128xf32>
    %408 = arith.addf %407, %406 : vector<1x128xf32>
    %409 = arith.divf %407, %408 : vector<1x128xf32>
    %410 = vector.extract_strided_slice %400 {offsets = [0, 128], sizes = [1, 128], strides = [1, 1]} : vector<1x384xf32> to vector<1x128xf32>
    %411 = vector.extract_strided_slice %401 {offsets = [0, 128], sizes = [1, 128], strides = [1, 1]} : vector<1x384xf32> to vector<1x128xf32>
    %412 = arith.addf %410, %411 : vector<1x128xf32>
    %413 = arith.negf %412 : vector<1x128xf32>
    %414 = math.exp %413 : vector<1x128xf32>
    %cst_69 = arith.constant 1.000000e+00 : f32
    %415 = vector.broadcast %cst_69 : f32 to vector<1x128xf32>
    %416 = arith.addf %415, %414 : vector<1x128xf32>
    %417 = arith.divf %415, %416 : vector<1x128xf32>
    %418 = vector.extract_strided_slice %400 {offsets = [0, 256], sizes = [1, 128], strides = [1, 1]} : vector<1x384xf32> to vector<1x128xf32>
    %419 = vector.extract_strided_slice %401 {offsets = [0, 256], sizes = [1, 128], strides = [1, 1]} : vector<1x384xf32> to vector<1x128xf32>
    %420 = arith.addf %419, %233 : vector<1x128xf32>
    %421 = arith.mulf %409, %420 : vector<1x128xf32>
    %422 = arith.addf %418, %421 : vector<1x128xf32>
    %423 = math.tanh %422 : vector<1x128xf32>
    %424 = arith.subf %399, %423 : vector<1x128xf32>
    %425 = arith.mulf %417, %424 : vector<1x128xf32>
    %426 = arith.addf %423, %425 : vector<1x128xf32>
    %427 = vector.extract_strided_slice %236 {offsets = [7, 0], sizes = [1, 384], strides = [1, 1]} : vector<8x384xf32> to vector<1x384xf32>
    %cst_70 = arith.constant dense<0.000000e+00> : vector<1x384xf32>
    %428 = tpu.matmul %426, %231, %cst_70 {dimension_numbers = #tpu.dot_dimension_numbers<[1], [0], [0], [1], [0, 0, 1, 1], [], []>} : vector<1x128xf32>, vector<128x384xf32>, vector<1x384xf32> -> vector<1x384xf32>
    %429 = vector.extract_strided_slice %427 {offsets = [0, 0], sizes = [1, 128], strides = [1, 1]} : vector<1x384xf32> to vector<1x128xf32>
    %430 = vector.extract_strided_slice %428 {offsets = [0, 0], sizes = [1, 128], strides = [1, 1]} : vector<1x384xf32> to vector<1x128xf32>
    %431 = arith.addf %429, %430 : vector<1x128xf32>
    %432 = arith.negf %431 : vector<1x128xf32>
    %433 = math.exp %432 : vector<1x128xf32>
    %cst_71 = arith.constant 1.000000e+00 : f32
    %434 = vector.broadcast %cst_71 : f32 to vector<1x128xf32>
    %435 = arith.addf %434, %433 : vector<1x128xf32>
    %436 = arith.divf %434, %435 : vector<1x128xf32>
    %437 = vector.extract_strided_slice %427 {offsets = [0, 128], sizes = [1, 128], strides = [1, 1]} : vector<1x384xf32> to vector<1x128xf32>
    %438 = vector.extract_strided_slice %428 {offsets = [0, 128], sizes = [1, 128], strides = [1, 1]} : vector<1x384xf32> to vector<1x128xf32>
    %439 = arith.addf %437, %438 : vector<1x128xf32>
    %440 = arith.negf %439 : vector<1x128xf32>
    %441 = math.exp %440 : vector<1x128xf32>
    %cst_72 = arith.constant 1.000000e+00 : f32
    %442 = vector.broadcast %cst_72 : f32 to vector<1x128xf32>
    %443 = arith.addf %442, %441 : vector<1x128xf32>
    %444 = arith.divf %442, %443 : vector<1x128xf32>
    %445 = vector.extract_strided_slice %427 {offsets = [0, 256], sizes = [1, 128], strides = [1, 1]} : vector<1x384xf32> to vector<1x128xf32>
    %446 = vector.extract_strided_slice %428 {offsets = [0, 256], sizes = [1, 128], strides = [1, 1]} : vector<1x384xf32> to vector<1x128xf32>
    %447 = arith.addf %446, %233 : vector<1x128xf32>
    %448 = arith.mulf %436, %447 : vector<1x128xf32>
    %449 = arith.addf %445, %448 : vector<1x128xf32>
    %450 = math.tanh %449 : vector<1x128xf32>
    %451 = arith.subf %426, %450 : vector<1x128xf32>
    %452 = arith.mulf %444, %451 : vector<1x128xf32>
    %453 = arith.addf %450, %452 : vector<1x128xf32>
    %454 = tpu.concatenate %264, %291, %318, %345, %372, %399, %426, %453 in 0 : vector<1x128xf32>, vector<1x128xf32>, vector<1x128xf32>, vector<1x128xf32>, vector<1x128xf32>, vector<1x128xf32>, vector<1x128xf32>, vector<1x128xf32> -> vector<8x128xf32>
    %455 = tpu.concatenate %226, %453 in 0 : vector<1x128xf32>, vector<1x128xf32> -> vector<2x128xf32>
    %c0_73 = arith.constant 0 : index
    %c0_74 = arith.constant 0 : index
    %456 = vector.load %arg9[%c0_73, %c0_74] : memref<2x128xf32, #tpu.memory_space<vmem>>, vector<2x128xf32>
    tpu.vector_store %arg9[%c0_73, %c0_74], %455 {strides = array<i32>} : memref<2x128xf32, #tpu.memory_space<vmem>>, vector<2x128xf32>,
    %c0_75 = arith.constant 0 : index
    %c0_76 = arith.constant 0 : index
    %457 = vector.load %arg6[%c0_75, %c0_76] : memref<128x128xf32, #tpu.memory_space<vmem>>, vector<128x128xf32>
    %cst_77 = arith.constant dense<0.000000e+00> : vector<8x128xf32>
    %458 = tpu.matmul %454, %457, %cst_77 {dimension_numbers = #tpu.dot_dimension_numbers<[1], [0], [0], [1], [0, 0, 1, 1], [], []>} : vector<8x128xf32>, vector<128x128xf32>, vector<8x128xf32> -> vector<8x128xf32>
    %c0_78 = arith.constant 0 : index
    %c0_79 = arith.constant 0 : index
    %459 = vector.load %arg7[%c0_78, %c0_79] : memref<1x128xf32, #tpu.memory_space<vmem>>, vector<1x128xf32>
    %460 = vector.broadcast %459 : vector<1x128xf32> to vector<8x128xf32>
    %461 = arith.addf %458, %460 : vector<8x128xf32>
    %cst_80 = arith.constant dense<0xFF800000> : vector<8xf32>
    %462 = vector.multi_reduction <maximumf>, %461, %cst_80 [1] : vector<8x128xf32> to vector<8xf32>
    %463 = vector.shape_cast %462 : vector<8xf32> to vector<8x1xf32>
    %464 = vector.broadcast %463 : vector<8x1xf32> to vector<8x128xf32>
    %465 = arith.subf %461, %464 : vector<8x128xf32>
    %466 = math.exp %465 : vector<8x128xf32>
    %cst_81 = arith.constant dense<0.000000e+00> : vector<8xf32>
    %467 = vector.multi_reduction <add>, %466, %cst_81 [1] : vector<8x128xf32> to vector<8xf32>
    %468 = vector.shape_cast %467 : vector<8xf32> to vector<8x1xf32>
    %469 = math.log %468 : vector<8x1xf32>
    %470 = vector.broadcast %463 : vector<8x1xf32> to vector<8x128xf32>
    %471 = arith.subf %461, %470 : vector<8x128xf32>
    %472 = vector.broadcast %469 : vector<8x1xf32> to vector<8x128xf32>
    %473 = arith.subf %471, %472 : vector<8x128xf32>
    %c0_82 = arith.constant 0 : index
    %c0_83 = arith.constant 0 : index
    %474 = vector.load %arg8[%c0_82, %c0_83] : memref<8x128xf32, #tpu.memory_space<vmem>>, vector<8x128xf32>
    tpu.vector_store %arg8[%c0_82, %c0_83], %473 {strides = array<i32>} : memref<8x128xf32, #tpu.memory_space<vmem>>, vector<8x128xf32>,
    return
  }
}

</mosaic_0001>

<bundles_post_ra>
// kernel: smile_rnn_forward.1
= control target key start
LH: loop header
LB: loop body
LE: loop exit
PB: predicated region body
PF: predicated region fallthrough
CT: control target
= control target key end

     0   :  { %15 = vsyncpa [#allocation3], 0  ;;  %s4310_s0 = inlined_call_operand.vmem [shape: f32[8,128], index: 0, kind: input, shape index: {}]   ;;  %s4311_s1 = inlined_call_operand.vmem [shape: f32[2,128], index: 1, kind: input, shape index: {}]   ;;  %s4312_s2 = inlined_call_operand.hbm [shape: f32[2,128,384], index: 2, kind: input, shape index: {}]   ;;  %s4313_s3 = inlined_call_operand.hbm [shape: f32[2,128,384], index: 3, kind: input, shape index: {}]   ;;  %s4314_s4 = inlined_call_operand.vmem [shape: f32[2,384], index: 4, kind: input, shape index: {}]   ;;  %s4315_s5 = inlined_call_operand.vmem [shape: f32[2,128], index: 5, kind: input, shape index: {}]   ;;  %s4316_s6 = inlined_call_operand.hbm [shape: f32[128,128], index: 6, kind: input, shape index: {}]   ;;  %s4317_s7 = inlined_call_operand.vmem [shape: f32[1,128], index: 7, kind: input, shape index: {}]   ;;  %s4318_s8 = inlined_call_operand.vmem [shape: f32[8,128], index: 8, kind: output, shape index: {0}]   ;;  %s4319_s9 = inlined_call_operand.hbm [shape: f32[2,128], index: 9, kind: output, shape index: {1}]  }
   0x1   :  { %16 = vsyncpa [#allocation6], 0 }
   0x2   :  { %17 = vsyncpa [#allocation4], 0  ;;  %s39_s11 = sshll.u32 %s4313_s3, 4  ;;  %s2881_s12 = smov [#allocation5]   ;;  %s40_s11 = int_to_ptr.hbm [resolvable:$true] %s39_s11 }
   0x3   :  { %s41_s13 = sshll.u32 %s2881_s12, 4  ;;  %s26_s16 = sshll.u32 %s4312_s2, 4  ;;  %s42_s13 = int_to_ptr.vmem [resolvable:$true] %s41_s13  ;;  %s27_s16 = int_to_ptr.hbm [resolvable:$true] %s26_s16 }
   0x4   :  { %s2882_s17 = smov 384   ;;  %s2883_s18 = smov 24  }
   0x5   :  { %47 = dma.hbm_to_vmem [thread:$0]  %s40_s11, 12288, %s42_s13, [#allocation6], %s2882_s17, %s2882_s17, %s2883_s18  }
   0x6   :  { %s2884_s19 = smov [#allocation2]   ;;  %s56_s23 = sshll.u32 %s4316_s6, 4  ;;  %s57_s23 = int_to_ptr.hbm [resolvable:$true] %s56_s23 }
   0x7   :  { %s28_s20 = sshll.u32 %s2884_s19, 4  ;;  %s2885_s3 = smov [#allocation7]   ;;  %s29_s20 = int_to_ptr.vmem [resolvable:$true] %s28_s20 }
   0x8   :  { %34 = dma.hbm_to_vmem [thread:$0]  %s27_s16, 12288, %s29_s20, [#allocation3], %s2882_s17, %s2882_s17, %s2883_s18  }
   0x9   :  { %s58_s24 = sshll.u32 %s2885_s3, 4  ;;  %s2886_s25 = smov 128   ;;  %s59_s24 = int_to_ptr.vmem [resolvable:$true] %s58_s24 }
   0xa   :  { %s2887_s26 = smov 8  }
   0xb   :  { %64 = dma.hbm_to_vmem [thread:$0]  %s57_s23, 2048, %s59_s24, [#allocation6], %s2886_s25, %s2886_s25, %s2887_s26  }
   0xc   :  { %2875 = dma.done.wait [#allocation3], 12288  }
   0xd   :  { %2876 = vsyncadd [#allocation3], 4294955008 }
   0xe   :  { %2877 = dma.done.wait [#allocation6], 14336  }
   0xf   :  { %2878 = vsyncadd [#allocation6], 4294952960  ;;  %v125_v0 = vld [vmem:[#allocation2 + $0x168] sm:$0xff]  ;;  %v122_v2 = vld [vmem:[#allocation2 + $0x150] sm:$0xff]  ;;  %s2888_s20 = smov [#allocation8]   ;;  %s2462_s3 = sshll.u32 %s4319_s9, 4  ;;  %s2463_s3 = int_to_ptr.hbm [resolvable:$true] %s2462_s3 }
  0x10   :  { %v2948_v1 = vld [vmem:[#allocation5 + $0x168] sm:$0xff]  ;;  %185 = vmatpush.msra.mxu0 %v125_v0  ;;  %v2951_v3 = vld [vmem:[#allocation5 + $0x150] sm:$0xff]  ;;  %v119_v5 = vld [vmem:[#allocation2 + $0x138] sm:$0xff]  ;;  %s2460_s21 = sshll.u32 %s2888_s20, 4  ;;  %s2461_s21 = int_to_ptr.vmem [resolvable:$true] %s2460_s21 }
  0x11   :  { %246 = vmatpush.msra.mxu3 %v2948_v1  ;;  %v126_v4 = vld [vmem:[#allocation2 + $0x170] sm:$0xff]  ;;  %v2953_v6 = vld [vmem:[#allocation5 + $0x138] sm:$0xff]  ;;  %v120_v8 = vld [vmem:[#allocation2 + $0x140] sm:$0xff] }
  0x12   :  { %205 = vmatpush.msra.mxu1 %v126_v4  ;;  %v123_v7 = vld [vmem:[#allocation2 + $0x158] sm:$0xff]  ;;  %186 = vmatpush.msra.mxu0 %v122_v2  ;;  %v116_v9 = vld [vmem:[#allocation2 + $0x120] sm:$0xff]  ;;  %v117_v11 = vld [vmem:[#allocation2 + $0x128] sm:$0xff] }
  0x13   :  { %247 = vmatpush.msra.mxu3 %v2951_v3  ;;  %v2956_v10 = vld [vmem:[#allocation5 + $0x120] sm:$0xff]  ;;  %v113_v12 = vld [vmem:[#allocation2 + $0x108] sm:$0xff]  ;;  %v114_v14 = vld [vmem:[#allocation2 + $0x110] sm:$0xff] }
  0x14   :  { %206 = vmatpush.msra.mxu1 %v123_v7  ;;  %187 = vmatpush.msra.mxu0 %v119_v5  ;;  %v2959_v13 = vld [vmem:[#allocation5 + $0x108] sm:$0xff]  ;;  %v110_v15 = vld [vmem:[#allocation2 + $0xf0] sm:$0xff]  ;;  %v111_v17 = vld [vmem:[#allocation2 + $0xf8] sm:$0xff] }
  0x15   :  { %248 = vmatpush.msra.mxu3 %v2953_v6  ;;  %v2962_v16 = vld [vmem:[#allocation5 + $0xf0] sm:$0xff]  ;;  %v107_v18 = vld [vmem:[#allocation2 + $0xd8] sm:$0xff]  ;;  %v108_v20 = vld [vmem:[#allocation2 + $0xe0] sm:$0xff] }
  0x16   :  { %207 = vmatpush.msra.mxu1 %v120_v8  ;;  %188 = vmatpush.msra.mxu0 %v116_v9  ;;  %v2965_v19 = vld [vmem:[#allocation5 + $0xd8] sm:$0xff]  ;;  %v104_v21 = vld [vmem:[#allocation2 + $0xc0] sm:$0xff]  ;;  %v105_v23 = vld [vmem:[#allocation2 + $0xc8] sm:$0xff] }
  0x17   :  { %249 = vmatpush.msra.mxu3 %v2956_v10  ;;  %v2968_v22 = vld [vmem:[#allocation5 + $0xc0] sm:$0xff]  ;;  %v101_v24 = vld [vmem:[#allocation2 + $0xa8] sm:$0xff]  ;;  %v102_v26 = vld [vmem:[#allocation2 + $0xb0] sm:$0xff] }
  0x18   :  { %208 = vmatpush.msra.mxu1 %v117_v11  ;;  %189 = vmatpush.msra.mxu0 %v113_v12  ;;  %v2971_v25 = vld [vmem:[#allocation5 + $0xa8] sm:$0xff]  ;;  %v127_v27 = vld [vmem:[#allocation2 + $0x178] sm:$0xff]  ;;  %v98_v28 = vld [vmem:[#allocation2 + $0x90] sm:$0xff] }
  0x19   :  { %250 = vmatpush.msra.mxu3 %v2959_v13  ;;  %v2974_v29 = vld [vmem:[#allocation5 + $0x90] sm:$0xff]  ;;  %225 = vmatpush.msra.mxu2 %v127_v27  ;;  %v124_v30 = vld [vmem:[#allocation2 + $0x160] sm:$0xff]  ;;  %v99_v31 = vld [vmem:[#allocation2 + $0x98] sm:$0xff] }
  0x1a   :  { %209 = vmatpush.msra.mxu1 %v114_v14  ;;  %190 = vmatpush.msra.mxu0 %v110_v15  ;;  %v121_v32 = vld [vmem:[#allocation2 + $0x148] sm:$0xff]  ;;  %v95_v33 = vld [vmem:[#allocation2 + $0x78] sm:$0xff]  ;;  %v96_v35 = vld [vmem:[#allocation2 + $0x80] sm:$0xff] }
  0x1b   :  { %251 = vmatpush.msra.mxu3 %v2962_v16  ;;  %v2977_v34 = vld [vmem:[#allocation5 + $0x78] sm:$0xff]  ;;  %226 = vmatpush.msra.mxu2 %v124_v30  ;;  %v118_v36 = vld [vmem:[#allocation2 + $0x130] sm:$0xff]  ;;  %v92_v37 = vld [vmem:[#allocation2 + $0x60] sm:$0xff] }
  0x1c   :  { %210 = vmatpush.msra.mxu1 %v111_v17  ;;  %191 = vmatpush.msra.mxu0 %v107_v18  ;;  %v2980_v38 = vld [vmem:[#allocation5 + $0x60] sm:$0xff]  ;;  %v93_v39 = vld [vmem:[#allocation2 + $0x68] sm:$0xff]  ;;  %v115_v40 = vld [vmem:[#allocation2 + $0x118] sm:$0xff] }
  0x1d   :  { %252 = vmatpush.msra.mxu3 %v2965_v19  ;;  %227 = vmatpush.msra.mxu2 %v121_v32  ;;  %v89_v41 = vld [vmem:[#allocation2 + $0x48] sm:$0xff]  ;;  %v90_v43 = vld [vmem:[#allocation2 + $0x50] sm:$0xff]  ;;  %v112_v44 = vld [vmem:[#allocation2 + $0x100] sm:$0xff] }
  0x1e   :  { %211 = vmatpush.msra.mxu1 %v108_v20  ;;  %192 = vmatpush.msra.mxu0 %v104_v21  ;;  %v2983_v42 = vld [vmem:[#allocation5 + $0x48] sm:$0xff]  ;;  %v86_v45 = vld [vmem:[#allocation2 + $0x30] sm:$0xff]  ;;  %v87_v47 = vld [vmem:[#allocation2 + $0x38] sm:$0xff] }
  0x1f   :  { %253 = vmatpush.msra.mxu3 %v2968_v22  ;;  %228 = vmatpush.msra.mxu2 %v118_v36  ;;  %v2986_v46 = vld [vmem:[#allocation5 + $0x30] sm:$0xff]  ;;  %v109_v48 = vld [vmem:[#allocation2 + $0xe8] sm:$0xff]  ;;  %v83_v49 = vld [vmem:[#allocation2 + $0x18] sm:$0xff] }
  0x20   :  { %212 = vmatpush.msra.mxu1 %v105_v23  ;;  %193 = vmatpush.msra.mxu0 %v101_v24  ;;  %v2989_v50 = vld [vmem:[#allocation5 + $0x18] sm:$0xff]  ;;  %v84_v51 = vld [vmem:[#allocation2 + $0x20] sm:$0xff]  ;;  %v106_v52 = vld [vmem:[#allocation2 + $0xd0] sm:$0xff] }
  0x21   :  { %254 = vmatpush.msra.mxu3 %v2971_v25  ;;  %229 = vmatpush.msra.mxu2 %v115_v40  ;;  %4363 = vst [vmem:[#allocation12_spill] sm:$0xff] %v2989_v50  ;;  %v80_v53 = vld [vmem:[#allocation2] sm:$0xff]  ;;  %v3000_v56 = vld [vmem:[#allocation5 + $0x170] sm:$0xff]  ;;  %v81_v57 = vld [vmem:[#allocation2 + $0x8] sm:$0xff] }
  0x22   :  { %213 = vmatpush.msra.mxu1 %v102_v26  ;;  %194 = vmatpush.msra.mxu0 %v98_v28  ;;  %v2992_v54 = vld [vmem:[#allocation5] sm:$0xff]  ;;  %v3008_v59 = vld [vmem:[#allocation5 + $0x158] sm:$0xff]  ;;  %v3021_v2 = vld [vmem:[#allocation5 + $0x128] sm:$0xff] }
  0x23   :  { %255 = vmatpush.msra.mxu3 %v2974_v29  ;;  %230 = vmatpush.msra.mxu2 %v112_v44  ;;  %4364 = vst [vmem:[#allocation13_spill] sm:$0xff] %v2992_v54  ;;  %v2998_v55 = vld [vmem:[%s4311_s1] sm:$0x1]  ;;  %v3010_v60 = vld [vmem:[#allocation5 + $0x178] sm:$0xff]  ;;  %v3023_v4 = vld [vmem:[#allocation5 + $0x148] sm:$0xff] }
  0x24   :  { %214 = vmatpush.msra.mxu1 %v99_v31  ;;  %195 = vmatpush.msra.mxu0 %v95_v33  ;;  %v3005_v58 = vld [vmem:[%s4310_s0] sm:$0xff]  ;;  %v103_v61 = vld [vmem:[#allocation2 + $0xb8] sm:$0xff]  ;;  %v97_v5 = vld [vmem:[#allocation2 + $0x88] sm:$0xff] }
  0x25   :  { %256 = vmatpush.msra.mxu3 %v2977_v34  ;;  %231 = vmatpush.msra.mxu2 %v109_v48  ;;  %v3015_v62 = vld [vmem:[#allocation5 + $0x140] sm:$0xff]  ;;  %v3028_v7 = vld [vmem:[#allocation5 + $0x110] sm:$0xff]  ;;  %v3035_v11 = vld [vmem:[#allocation5 + $0xf8] sm:$0xff] }
  0x26   :  { %215 = vmatpush.msra.mxu1 %v96_v35  ;;  %196 = vmatpush.msra.mxu0 %v92_v37  ;;  %v3017_v63 = vld [vmem:[#allocation5 + $0x160] sm:$0xff]  ;;  %v3030_v8 = vld [vmem:[#allocation5 + $0x130] sm:$0xff]  ;;  %v3037_v12 = vld [vmem:[#allocation5 + $0x118] sm:$0xff] }
  0x27   :  { %257 = vmatpush.msra.mxu3 %v2980_v38  ;;  %232 = vmatpush.msra.mxu2 %v106_v52  ;;  %v100_v0 = vld [vmem:[#allocation2 + $0xa0] sm:$0xff]  ;;  %v94_v9 = vld [vmem:[#allocation2 + $0x70] sm:$0xff]  ;;  %v91_v14 = vld [vmem:[#allocation2 + $0x58] sm:$0xff] }
  0x28   :  { %216 = vmatpush.msra.mxu1 %v93_v39  ;;  %197 = vmatpush.msra.mxu0 %v89_v41  ;;  %v3042_v15 = vld [vmem:[#allocation5 + $0xe0] sm:$0xff]  ;;  %v3049_v20 = vld [vmem:[#allocation5 + $0xc8] sm:$0xff]  ;;  %v3056_v24 = vld [vmem:[#allocation5 + $0xb0] sm:$0xff] }
  0x29   :  { %258 = vmatpush.msra.mxu3 %v2983_v42  ;;  %233 = vmatpush.msra.mxu2 %v103_v61  ;;  %v3044_v17 = vld [vmem:[#allocation5 + $0x100] sm:$0xff]  ;;  %v3051_v21 = vld [vmem:[#allocation5 + $0xe8] sm:$0xff]  ;;  %v3058_v26 = vld [vmem:[#allocation5 + $0xd0] sm:$0xff] }
  0x2a   :  { %217 = vmatpush.msra.mxu1 %v90_v43  ;;  %198 = vmatpush.msra.mxu0 %v86_v45  ;;  %v88_v18 = vld [vmem:[#allocation2 + $0x40] sm:$0xff]  ;;  %v85_v23 = vld [vmem:[#allocation2 + $0x28] sm:$0xff]  ;;  %v82_v27 = vld [vmem:[#allocation2 + $0x10] sm:$0xff] }
  0x2b   :  { %259 = vmatpush.msra.mxu3 %v2986_v46  ;;  %234 = vmatpush.msra.mxu2 %v100_v0  ;;  %v3063_v28 = vld [vmem:[#allocation5 + $0x98] sm:$0xff]  ;;  %v3070_v31 = vld [vmem:[#allocation5 + $0x80] sm:$0xff]  ;;  %v3077_v33 = vld [vmem:[#allocation5 + $0x68] sm:$0xff] }
  0x2c   :  { %218 = vmatpush.msra.mxu1 %v87_v47  ;;  %199 = vmatpush.msra.mxu0 %v83_v49  ;;  %v3065_v30 = vld [vmem:[#allocation5 + $0xb8] sm:$0xff]  ;;  %v3072_v32 = vld [vmem:[#allocation5 + $0xa0] sm:$0xff]  ;;  %v3079_v35 = vld [vmem:[#allocation5 + $0x88] sm:$0xff] }
  0x2d   :  { %260 = vmatpush.msra.mxu3 %v2989_v50  ;;  %235 = vmatpush.msra.mxu2 %v97_v5  ;;  %v3085_v36 = vld [vmem:[#allocation5 + $0x50] sm:$0xff]  ;;  %v3093_v39 = vld [vmem:[#allocation5 + $0x38] sm:$0xff]  ;;  %v3101_v41 = vld [vmem:[#allocation5 + $0x20] sm:$0xff] }
  0x2e   :  { %219 = vmatpush.msra.mxu1 %v84_v51  ;;  %200 = vmatpush.msra.mxu0 %v80_v53  ;;  %v3087_v37 = vld [vmem:[#allocation5 + $0x70] sm:$0xff]  ;;  %4365 = vst [vmem:[#allocation14_spill] sm:$0xff] %v3093_v39  ;;  %v3095_v40 = vld [vmem:[#allocation5 + $0x58] sm:$0xff]  ;;  %v3103_v43 = vld [vmem:[#allocation5 + $0x40] sm:$0xff] }
  0x2f   :  { %261 = vmatpush.msra.mxu3 %v2992_v54  ;;  %201 = vmatmul.f32.vlgmr.msra.gmra.mxu0 %v3005_v58  ;;  %4366 = vst [vmem:[#allocation15_spill] sm:$0xff] %v3101_v41  ;;  %v3109_v44 = vld [vmem:[#allocation5 + $0x8] sm:$0xff]  ;;  %v3117_v47 = vld [vmem:[#allocation5 + $0x10] sm:$0xff]  ;;  %v176_v48 = vld [vmem:[%s4314_s4] ss:$2 sm:$0x7] }
  0x30   :  { %262 = vmatmul.f32.vlgmr.msra.gmra.mxu3 %v2998_v55  ;;  %266 = vmatpush.msrb.mxu0 %v3000_v56  ;;  %4367 = vst [vmem:[#allocation16_spill] sm:$0xff] %v3109_v44  ;;  %v3111_v45 = vld [vmem:[#allocation5 + $0x28] sm:$0xff]  ;;  %v179_v49 = vperm.slane %v176_v48, 0  ;;  %v180_v5 = vperm.slane %v176_v48, 1 }
  0x31   :  { %220 = vmatpush.msra.mxu1 %v81_v57  ;;  %373 = vmatpush.msrb.mxu3 %v3000_v56  ;;  %4368 = vst [vmem:[#allocation17_spill] sm:$0xff] %v3111_v45 }
  0x32   :  { %267 = vmatpush.msrb.mxu0 %v3008_v59  ;;  %221 = vmatmul.f32.vlgmr.msra.gmra.mxu1 %v3005_v58  ;;  %4369 = vst [vmem:[#allocation18_spill] sm:$0xff] %v3117_v47 }
  0x33   :  { %286 = vmatpush.msrb.mxu1 %v3010_v60  ;;  %374 = vmatpush.msrb.mxu3 %v3008_v59 }
  0x34   :  { %268 = vmatpush.msrb.mxu0 %v3015_v62  ;;  %236 = vmatpush.msra.mxu2 %v94_v9 }
  0x35   :  { %287 = vmatpush.msrb.mxu1 %v3017_v63  ;;  %375 = vmatpush.msrb.mxu3 %v3015_v62 }
  0x36   :  { %269 = vmatpush.msrb.mxu0 %v3021_v2  ;;  %237 = vmatpush.msra.mxu2 %v91_v14 }
  0x37   :  { %288 = vmatpush.msrb.mxu1 %v3023_v4  ;;  %376 = vmatpush.msrb.mxu3 %v3021_v2 }
  0x38   :  { %270 = vmatpush.msrb.mxu0 %v3028_v7  ;;  %238 = vmatpush.msra.mxu2 %v88_v18 }
  0x39   :  { %289 = vmatpush.msrb.mxu1 %v3030_v8  ;;  %377 = vmatpush.msrb.mxu3 %v3028_v7 }
  0x3a   :  { %271 = vmatpush.msrb.mxu0 %v3035_v11  ;;  %239 = vmatpush.msra.mxu2 %v85_v23 }
  0x3b   :  { %290 = vmatpush.msrb.mxu1 %v3037_v12  ;;  %378 = vmatpush.msrb.mxu3 %v3035_v11 }
  0x3c   :  { %272 = vmatpush.msrb.mxu0 %v3042_v15  ;;  %240 = vmatpush.msra.mxu2 %v82_v27 }
  0x3d   :  { %291 = vmatpush.msrb.mxu1 %v3044_v17  ;;  %379 = vmatpush.msrb.mxu3 %v3042_v15 }
  0x3e   :  { %273 = vmatpush.msrb.mxu0 %v3049_v20  ;;  %241 = vmatmul.f32.vlgmr.msra.gmra.mxu2 %v3005_v58 }
  0x3f   :  { %292 = vmatpush.msrb.mxu1 %v3051_v21  ;;  %380 = vmatpush.msrb.mxu3 %v3049_v20 }
  0x40   :  { %274 = vmatpush.msrb.mxu0 %v3056_v24  ;;  %353 = vmatpush.msrb.mxu2 %v2948_v1 }
  0x41   :  { %293 = vmatpush.msrb.mxu1 %v3058_v26  ;;  %381 = vmatpush.msrb.mxu3 %v3056_v24 }
  0x42   :  { %275 = vmatpush.msrb.mxu0 %v3063_v28  ;;  %354 = vmatpush.msrb.mxu2 %v2951_v3 }
  0x43   :  { %294 = vmatpush.msrb.mxu1 %v3065_v30  ;;  %382 = vmatpush.msrb.mxu3 %v3063_v28 }
  0x44   :  { %276 = vmatpush.msrb.mxu0 %v3070_v31  ;;  %355 = vmatpush.msrb.mxu2 %v2953_v6 }
  0x45   :  { %295 = vmatpush.msrb.mxu1 %v3072_v32  ;;  %383 = vmatpush.msrb.mxu3 %v3070_v31 }
  0x46   :  { %277 = vmatpush.msrb.mxu0 %v3077_v33  ;;  %356 = vmatpush.msrb.mxu2 %v2956_v10 }
  0x47   :  { %296 = vmatpush.msrb.mxu1 %v3079_v35  ;;  %384 = vmatpush.msrb.mxu3 %v3077_v33 }
  0x48   :  { %278 = vmatpush.msrb.mxu0 %v3085_v36  ;;  %357 = vmatpush.msrb.mxu2 %v2959_v13 }
  0x49   :  { %297 = vmatpush.msrb.mxu1 %v3087_v37  ;;  %385 = vmatpush.msrb.mxu3 %v3085_v36 }
  0x4a   :  { %279 = vmatpush.msrb.mxu0 %v3093_v39  ;;  %358 = vmatpush.msrb.mxu2 %v2962_v16 }
  0x4b   :  { %298 = vmatpush.msrb.mxu1 %v3095_v40  ;;  %386 = vmatpush.msrb.mxu3 %v3093_v39 }
  0x4c   :  { %280 = vmatpush.msrb.mxu0 %v3101_v41  ;;  %359 = vmatpush.msrb.mxu2 %v2965_v19 }
  0x4d   :  { %299 = vmatpush.msrb.mxu1 %v3103_v43  ;;  %387 = vmatpush.msrb.mxu3 %v3101_v41 }
  0x4e   :  { %281 = vmatpush.msrb.mxu0 %v3109_v44  ;;  %360 = vmatpush.msrb.mxu2 %v2968_v22 }
  0x4f   :  { %300 = vmatpush.msrb.mxu1 %v3111_v45  ;;  %282 = vmatmul.f32.vlgmr.msrb.gmra.mxu0 %v2998_v55 }
  0x50   :  { %393 = vmatpush.msra.mxu0 %v3010_v60  ;;  %361 = vmatpush.msrb.mxu2 %v2971_v25 }
  0x51   :  { %301 = vmatpush.msrb.mxu1 %v3117_v47  ;;  %388 = vmatpush.msrb.mxu3 %v3109_v44 }
  0x52   :  { %302 = vmatmul.f32.vlgmr.msrb.gmra.mxu1 %v2998_v55  ;;  %394 = vmatpush.msra.mxu0 %v3017_v63 }
  0x53   :  { %478 = vmatpush.msra.mxu1 %v2948_v1  ;;  %362 = vmatpush.msrb.mxu2 %v2974_v29 }
  0x54   :  { %395 = vmatpush.msra.mxu0 %v3023_v4  ;;  %518 = vmatpush.msra.mxu3 %v3010_v60 }
  0x55   :  { %479 = vmatpush.msra.mxu1 %v2951_v3  ;;  %363 = vmatpush.msrb.mxu2 %v2977_v34 }
  0x56   :  { %396 = vmatpush.msra.mxu0 %v3030_v8  ;;  %519 = vmatpush.msra.mxu3 %v3017_v63 }
  0x57   :  { %480 = vmatpush.msra.mxu1 %v2953_v6  ;;  %364 = vmatpush.msrb.mxu2 %v2980_v38 }
  0x58   :  { %397 = vmatpush.msra.mxu0 %v3037_v12  ;;  %520 = vmatpush.msra.mxu3 %v3023_v4 }
  0x59   :  { %481 = vmatpush.msra.mxu1 %v2956_v10  ;;  %365 = vmatpush.msrb.mxu2 %v2983_v42 }
  0x5a   :  { %398 = vmatpush.msra.mxu0 %v3044_v17  ;;  %521 = vmatpush.msra.mxu3 %v3030_v8 }
  0x5b   :  { %482 = vmatpush.msra.mxu1 %v2959_v13  ;;  %366 = vmatpush.msrb.mxu2 %v2986_v46 }
  0x5c   :  { %399 = vmatpush.msra.mxu0 %v3051_v21  ;;  %522 = vmatpush.msra.mxu3 %v3037_v12 }
  0x5d   :  { %483 = vmatpush.msra.mxu1 %v2962_v16  ;;  %367 = vmatpush.msrb.mxu2 %v2989_v50 }
  0x5e   :  { %400 = vmatpush.msra.mxu0 %v3058_v26  ;;  %523 = vmatpush.msra.mxu3 %v3044_v17 }
  0x5f   :  { %484 = vmatpush.msra.mxu1 %v2965_v19  ;;  %368 = vmatpush.msrb.mxu2 %v2992_v54 }
  0x60   :  { %401 = vmatpush.msra.mxu0 %v3065_v30  ;;  %524 = vmatpush.msra.mxu3 %v3051_v21 }
  0x61   :  { %485 = vmatpush.msra.mxu1 %v2968_v22  ;;  %498 = vmatpush.msra.mxu2 %v3000_v56 }
  0x62   :  { %402 = vmatpush.msra.mxu0 %v3072_v32  ;;  %525 = vmatpush.msra.mxu3 %v3058_v26 }
  0x63   :  { %486 = vmatpush.msra.mxu1 %v2971_v25  ;;  %499 = vmatpush.msra.mxu2 %v3008_v59 }
  0x64   :  { %403 = vmatpush.msra.mxu0 %v3079_v35  ;;  %526 = vmatpush.msra.mxu3 %v3065_v30 }
  0x65   :  { %487 = vmatpush.msra.mxu1 %v2974_v29  ;;  %500 = vmatpush.msra.mxu2 %v3015_v62 }
  0x66   :  { %404 = vmatpush.msra.mxu0 %v3087_v37  ;;  %527 = vmatpush.msra.mxu3 %v3072_v32 }
  0x67   :  { %488 = vmatpush.msra.mxu1 %v2977_v34  ;;  %501 = vmatpush.msra.mxu2 %v3021_v2 }
  0x68   :  { %405 = vmatpush.msra.mxu0 %v3095_v40  ;;  %528 = vmatpush.msra.mxu3 %v3079_v35 }
  0x69   :  { %489 = vmatpush.msra.mxu1 %v2980_v38  ;;  %502 = vmatpush.msra.mxu2 %v3028_v7 }
  0x6a   :  { %406 = vmatpush.msra.mxu0 %v3103_v43  ;;  %529 = vmatpush.msra.mxu3 %v3087_v37 }
  0x6b   :  { %490 = vmatpush.msra.mxu1 %v2983_v42  ;;  %503 = vmatpush.msra.mxu2 %v3035_v11 }
  0x6c   :  { %407 = vmatpush.msra.mxu0 %v3111_v45  ;;  %530 = vmatpush.msra.mxu3 %v3095_v40 }
  0x6d   :  { %491 = vmatpush.msra.mxu1 %v2986_v46  ;;  %504 = vmatpush.msra.mxu2 %v3042_v15 }
  0x6e   :  { %408 = vmatpush.msra.mxu0 %v3117_v47  ;;  %531 = vmatpush.msra.mxu3 %v3103_v43 }
  0x6f   :  { %492 = vmatpush.msra.mxu1 %v2989_v50  ;;  %505 = vmatpush.msra.mxu2 %v3049_v20 }
  0x70   :  { %603 = vmatpush.msrb.mxu0 %v2948_v1  ;;  %532 = vmatpush.msra.mxu3 %v3111_v45 }
  0x71   :  { %493 = vmatpush.msra.mxu1 %v2992_v54  ;;  %506 = vmatpush.msra.mxu2 %v3056_v24 }
  0x72   :  { %604 = vmatpush.msrb.mxu0 %v2951_v3  ;;  %533 = vmatpush.msra.mxu3 %v3117_v47 }
  0x73   :  { %623 = vmatpush.msrb.mxu1 %v3000_v56  ;;  %507 = vmatpush.msra.mxu2 %v3063_v28 }
  0x74   :  { %605 = vmatpush.msrb.mxu0 %v2953_v6 }
  0x75   :  { %624 = vmatpush.msrb.mxu1 %v3008_v59  ;;  %508 = vmatpush.msra.mxu2 %v3070_v31 }
  0x76   :  { %606 = vmatpush.msrb.mxu0 %v2956_v10 }
  0x77   :  { %625 = vmatpush.msrb.mxu1 %v3015_v62  ;;  %509 = vmatpush.msra.mxu2 %v3077_v33 }
  0x78   :  { %607 = vmatpush.msrb.mxu0 %v2959_v13 }
  0x79   :  { %626 = vmatpush.msrb.mxu1 %v3021_v2  ;;  %510 = vmatpush.msra.mxu2 %v3085_v36 }
  0x7a   :  { %608 = vmatpush.msrb.mxu0 %v2962_v16 }
  0x7b   :  { %627 = vmatpush.msrb.mxu1 %v3028_v7  ;;  %511 = vmatpush.msra.mxu2 %v3093_v39 }
  0x7c   :  { %609 = vmatpush.msrb.mxu0 %v2965_v19 }
  0x7d   :  { %628 = vmatpush.msrb.mxu1 %v3035_v11  ;;  %512 = vmatpush.msra.mxu2 %v3101_v41 }
  0x7e   :  { %610 = vmatpush.msrb.mxu0 %v2968_v22 }
  0x7f   :  { %629 = vmatpush.msrb.mxu1 %v3042_v15  ;;  %513 = vmatpush.msra.mxu2 %v3109_v44 }
  0x80   :  { %611 = vmatpush.msrb.mxu0 %v2971_v25 }
  0x81   :  { %630 = vmatpush.msrb.mxu1 %v3049_v20 }
  0x82   :  { %612 = vmatpush.msrb.mxu0 %v2974_v29 }
  0x83   :  { %631 = vmatpush.msrb.mxu1 %v3056_v24 }
  0x84   :  { %613 = vmatpush.msrb.mxu0 %v2977_v34 }
  0x85   :  { %632 = vmatpush.msrb.mxu1 %v3063_v28 }
  0x86   :  { %614 = vmatpush.msrb.mxu0 %v2980_v38 }
  0x87   :  { %633 = vmatpush.msrb.mxu1 %v3070_v31 }
  0x88   :  { %615 = vmatpush.msrb.mxu0 %v2983_v42 }
  0x89   :  { %634 = vmatpush.msrb.mxu1 %v3077_v33 }
  0x8a   :  { %616 = vmatpush.msrb.mxu0 %v2986_v46 }
  0x8b   :  { %635 = vmatpush.msrb.mxu1 %v3085_v36 }
  0x8c   :  { %617 = vmatpush.msrb.mxu0 %v2989_v50 }
  0x8d   :  { %636 = vmatpush.msrb.mxu1 %v3093_v39 }
  0x8e   :  { %618 = vmatpush.msrb.mxu0 %v2992_v54 }
  0x8f   :  { %637 = vmatpush.msrb.mxu1 %v3101_v41 }
  0x91   :  { %638 = vmatpush.msrb.mxu1 %v3109_v44 }
  0xac   :  { %v202_v51 = vpop.f32.mrf.mxu0 }
  0xad   :  { %v3239_v52 = vadd.f32 %v202_v51, %v179_v49 }
  0xaf   :  { %4370 = vst [vmem:[#allocation19_spill] sm:$0xff] %v3239_v52  ;;  %v222_v14 = vpop.f32.mrf.mxu1 }
  0xb0   :  { %v3242_v23 = vadd.f32 %v222_v14, %v180_v5 }
  0xb2   :  { %4371 = vst [vmem:[#allocation20_spill] sm:$0xff] %v3242_v23 }
  0xb3   :  { %v263_v53 = vpop.f32.mrf.mxu3 }
  0xb4   :  { %v306_v57 = vadd.f32 %v263_v53, %v3239_v52  ;;  %v181_v52 = vperm.slane %v176_v48, 2 }
  0xb6   :  { %v2475_v58 = vmul.f32 -1.442695, %v306_v57 }
  0xb8   :  { %2517 = vpow2.f32 %v2475_v58 }
  0xbe   :  { %v2518_v61 = vpop.eup %2517 }
  0xbf   :  { %v310_v0 = vadd.f32 1.0, %v2518_v61  ;;  %v3248_v61 = vld [vmem:[%s4315_s5] sm:$0x1] }
  0xc0   :  { %4372 = vst [vmem:[#allocation21_spill] sm:$0xff] %v3248_v61 }
  0xc1   :  { %2519 = vrcp.f32 %v310_v0  ;;  %vm316_vm0 = vweird.f32 %v310_v0  ;;  %v322_v51 = vand.u32 2147483648, %v310_v0  ;;  %v320_v57 = vand.u32 2147483647, %v310_v0 }
  0xc3   :  { %v323_v14 = vor.u32 1.1754944e-38, %v322_v51  ;;  %vm321_vm3 = vcmp.eq.f32.partialorder %v320_v57, 8.507059e+37 }
  0xc7   :  { %v2520_v9 = vpop.eup %2519 }
  0xc8   :  { %v312_v18 = vmul.f32 %v2520_v9, %v310_v0  ;;  %vm317_vm1 = vweird.f32 %v2520_v9 }
  0xc9   :  { %vm318_vm2 = vmor %vm316_vm0, %vm317_vm1 }
  0xca   :  { %v313_v27 = vsub.f32 1.0, %v312_v18 }
  0xcc   :  { %v283_v44 = vpop.f32.mrf.mxu0  ;;  %v314_v54 = vmul.f32 %v2520_v9, %v313_v27 }
  0xcd   :  { %v326_v49 = vadd.f32 %v283_v44, %v3242_v23  ;;  %v242_v44 = vpop.f32.mrf.mxu2 }
  0xce   :  { %v315_v53 = vadd.f32 %v2520_v9, %v314_v54 }
  0xcf   :  { %v2476_v58 = vmul.f32 -1.442695, %v326_v49  ;;  %v303_v5 = vpop.f32.mrf.mxu1  ;;  %v3251_v49 = vadd.f32 %v242_v44, %v181_v52  ;;  %v4378_v44 = vld [vmem:[#allocation16_spill] sm:$0xff] }
  0xd0   :  { %v319_v18 = vsel %vm318_vm2, %v2520_v9, %v315_v53  ;;  %v346_v27 = vadd.f32 %v303_v5, %v3248_v61 }
  0xd1   :  { %2521 = vpow2.f32 %v2476_v58  ;;  %v324_v47 = vsel %vm321_vm3, %v323_v14, %v319_v18 }
  0xd2   :  { %v347_v0 = vmul.f32 %v346_v27, %v324_v47  ;;  %v4377_v27 = vld [vmem:[#allocation13_spill] sm:$0xff] }
  0xd4   :  { %v348_v58 = vadd.f32 %v347_v0, %v3251_v49 }
  0xd7   :  { %v2522_v23 = vpop.eup %2521 }
  0xd8   :  { %v330_v54 = vadd.f32 1.0, %v2522_v23 }
  0xda   :  { %2523 = vrcp.f32 %v330_v54  ;;  %v342_v51 = vand.u32 2147483648, %v330_v54  ;;  %v340_v53 = vand.u32 2147483647, %v330_v54  ;;  %vm336_vm5 = vweird.f32 %v330_v54 }
  0xdb   :  { %2525 = vtanh.f32 %v348_v58 }
  0xdc   :  { %v343_v5 = vor.u32 1.1754944e-38, %v342_v51  ;;  %vm341_vm7 = vcmp.eq.f32.partialorder %v340_v53, 8.507059e+37 }
  0xe0   :  { %v2524_v41 = vpop.eup %2523 }
  0xe1   :  { %v332_v50 = vmul.f32 %v2524_v41, %v330_v54  ;;  %vm337_vm4 = vweird.f32 %v2524_v41  ;;  %v2526_v57 = vpop.eup %2525 }
  0xe2   :  { %vm338_vm6 = vmor %vm336_vm5, %vm337_vm4  ;;  %v350_v52 = vsub.f32 %v2998_v55, %v2526_v57  ;;  %v4374_v55 = vld [vmem:[#allocation12_spill] sm:$0xff] }
  0xe3   :  { %v333_v45 = vsub.f32 1.0, %v332_v50  ;;  %v4373_v50 = vld [vmem:[#allocation17_spill] sm:$0xff] }
  0xe5   :  { %v334_v9 = vmul.f32 %v2524_v41, %v333_v45  ;;  %v4376_v45 = vld [vmem:[#allocation18_spill] sm:$0xff] }
  0xe7   :  { %v335_v48 = vadd.f32 %v2524_v41, %v334_v9  ;;  %v4379_v9 = vld [vmem:[#allocation19_spill] sm:$0xff] }
  0xe9   :  { %v339_v47 = vsel %vm338_vm6, %v2524_v41, %v335_v48  ;;  %v4375_v41 = vld [vmem:[#allocation15_spill] sm:$0xff] }
  0xea   :  { %v344_v23 = vsel %vm341_vm7, %v343_v5, %v339_v47 }
  0xeb   :  { %v351_v14 = vmul.f32 %v350_v52, %v344_v23 }
  0xed   :  { %v3255_v18 = vadd.f32 %v2526_v57, %v351_v14  ;;  %v4380_v57 = vld [vmem:[#allocation20_spill] sm:$0xff] }
  0xef   :  { %369 = vmatmul.f32.vlgmr.msrb.gmra.mxu2 %v3255_v18  ;;  %389 = vmatmul.f32.vlgmr.msrb.gmra.mxu3 %v3255_v18 }
  0xf0   :  { %409 = vmatmul.f32.vlgmr.msra.gmra.mxu0 %v3255_v18  ;;  %643 = vmatpush.msrb.mxu2 %v3010_v60 }
  0xf1   :  { %728 = vmatpush.msrb.mxu3 %v2948_v1  ;;  %748 = vmatpush.msra.mxu0 %v3000_v56 }
  0xf2   :  { %644 = vmatpush.msrb.mxu2 %v3017_v63 }
  0xf3   :  { %729 = vmatpush.msrb.mxu3 %v2951_v3  ;;  %749 = vmatpush.msra.mxu0 %v3008_v59 }
  0xf4   :  { %645 = vmatpush.msrb.mxu2 %v3023_v4 }
  0xf5   :  { %730 = vmatpush.msrb.mxu3 %v2953_v6  ;;  %750 = vmatpush.msra.mxu0 %v3015_v62 }
  0xf6   :  { %646 = vmatpush.msrb.mxu2 %v3030_v8 }
  0xf7   :  { %731 = vmatpush.msrb.mxu3 %v2956_v10  ;;  %751 = vmatpush.msra.mxu0 %v3021_v2 }
  0xf8   :  { %647 = vmatpush.msrb.mxu2 %v3037_v12 }
  0xf9   :  { %732 = vmatpush.msrb.mxu3 %v2959_v13  ;;  %752 = vmatpush.msra.mxu0 %v3028_v7 }
  0xfa   :  { %648 = vmatpush.msrb.mxu2 %v3044_v17 }
  0xfb   :  { %733 = vmatpush.msrb.mxu3 %v2962_v16  ;;  %753 = vmatpush.msra.mxu0 %v3035_v11 }
  0xfc   :  { %649 = vmatpush.msrb.mxu2 %v3051_v21 }
  0xfd   :  { %734 = vmatpush.msrb.mxu3 %v2965_v19  ;;  %754 = vmatpush.msra.mxu0 %v3042_v15 }
  0xfe   :  { %650 = vmatpush.msrb.mxu2 %v3058_v26 }
  0xff   :  { %735 = vmatpush.msrb.mxu3 %v2968_v22  ;;  %755 = vmatpush.msra.mxu0 %v3049_v20 }
 0x100   :  { %651 = vmatpush.msrb.mxu2 %v3065_v30 }
 0x101   :  { %736 = vmatpush.msrb.mxu3 %v2971_v25  ;;  %756 = vmatpush.msra.mxu0 %v3056_v24 }
 0x102   :  { %652 = vmatpush.msrb.mxu2 %v3072_v32 }
 0x103   :  { %737 = vmatpush.msrb.mxu3 %v2974_v29  ;;  %757 = vmatpush.msra.mxu0 %v3063_v28 }
 0x104   :  { %653 = vmatpush.msrb.mxu2 %v3079_v35 }
 0x105   :  { %738 = vmatpush.msrb.mxu3 %v2977_v34  ;;  %758 = vmatpush.msra.mxu0 %v3070_v31 }
 0x106   :  { %654 = vmatpush.msrb.mxu2 %v3087_v37 }
 0x107   :  { %739 = vmatpush.msrb.mxu3 %v2980_v38  ;;  %759 = vmatpush.msra.mxu0 %v3077_v33 }
 0x108   :  { %655 = vmatpush.msrb.mxu2 %v3095_v40 }
 0x109   :  { %740 = vmatpush.msrb.mxu3 %v2983_v42  ;;  %760 = vmatpush.msra.mxu0 %v3085_v36 }
 0x10a   :  { %656 = vmatpush.msrb.mxu2 %v3103_v43 }
 0x10b   :  { %741 = vmatpush.msrb.mxu3 %v2986_v46  ;;  %761 = vmatpush.msra.mxu0 %v3093_v39 }
 0x10c   :  { %657 = vmatpush.msrb.mxu2 %v4373_v50 }
 0x10d   :  { %742 = vmatpush.msrb.mxu3 %v4374_v55  ;;  %762 = vmatpush.msra.mxu0 %v4375_v41 }
 0x10e   :  { %658 = vmatpush.msrb.mxu2 %v4376_v45 }
 0x10f   :  { %743 = vmatpush.msrb.mxu3 %v4377_v27  ;;  %763 = vmatpush.msra.mxu0 %v4378_v44 }
 0x16d   :  { %v410_v41 = vpop.f32.mrf.mxu0 }
 0x172   :  { %v370_v54 = vpop.f32.mrf.mxu2  ;;  %v390_v0 = vpop.f32.mrf.mxu3 }
 0x173   :  { %v414_v58 = vrot.slane %v370_v54, 7  ;;  %v437_v51 = vrot.slane %v390_v0, 7 }
 0x175   :  { %v416_v53 = vadd.f32 %v414_v58, %v4379_v9  ;;  %v439_v48 = vadd.f32 %v437_v51, %v4380_v57  ;;  %v459_v58 = vadd.f32 %v410_v41, %v3248_v61 }
 0x177   :  { %v2477_v5 = vmul.f32 -1.442695, %v416_v53  ;;  %v2478_v47 = vmul.f32 -1.442695, %v439_v48 }
 0x179   :  { %2527 = vpow2.f32 %v2477_v5 }
 0x17a   :  { %2529 = vpow2.f32 %v2478_v47  ;;  %v461_v47 = vrot.slane %v459_v58, 7 }
 0x17f   :  { %v2528_v52 = vpop.eup %2527 }
 0x180   :  { %v2530_v23 = vpop.eup %2529  ;;  %v420_v14 = vadd.f32 1.0, %v2528_v52 }
 0x181   :  { %v443_v45 = vadd.f32 1.0, %v2530_v23 }
 0x182   :  { %2531 = vrcp.f32 %v420_v14  ;;  %v432_v54 = vand.u32 2147483648, %v420_v14  ;;  %v430_v51 = vand.u32 2147483647, %v420_v14  ;;  %vm426_vm9 = vweird.f32 %v420_v14 }
 0x183   :  { %2533 = vrcp.f32 %v443_v45  ;;  %v455_v61 = vand.u32 2147483648, %v443_v45  ;;  %vm449_vm13 = vweird.f32 %v443_v45 }
 0x184   :  { %v433_v48 = vor.u32 1.1754944e-38, %v432_v54  ;;  %vm431_vm11 = vcmp.eq.f32.partialorder %v430_v51, 8.507059e+37 }
 0x188   :  { %v2532_v27 = vpop.eup %2531 }
 0x189   :  { %v422_v44 = vmul.f32 %v2532_v27, %v420_v14  ;;  %v2534_v0 = vpop.eup %2533  ;;  %vm427_vm8 = vweird.f32 %v2532_v27 }
 0x18a   :  { %vm428_vm10 = vmor %vm426_vm9, %vm427_vm8  ;;  %v445_v5 = vmul.f32 %v2534_v0, %v443_v45  ;;  %vm450_vm12 = vweird.f32 %v2534_v0 }
 0x18b   :  { %v423_v55 = vsub.f32 1.0, %v422_v44  ;;  %vm451_vm14 = vmor %vm449_vm13, %vm450_vm12 }
 0x18c   :  { %v446_v50 = vsub.f32 1.0, %v445_v5 }
 0x18d   :  { %v424_v9 = vmul.f32 %v2532_v27, %v423_v55 }
 0x18e   :  { %v447_v39 = vmul.f32 %v2534_v0, %v446_v50 }
 0x18f   :  { %v425_v53 = vadd.f32 %v2532_v27, %v424_v9  ;;  %v453_v9 = vand.u32 2147483647, %v443_v45 }
 0x190   :  { %v448_v41 = vadd.f32 %v2534_v0, %v447_v39  ;;  %v4389_v39 = vld [vmem:[#allocation20_spill] sm:$0xff] }
 0x191   :  { %v429_v52 = vsel %vm428_vm10, %v2532_v27, %v425_v53  ;;  %v456_v27 = vor.u32 1.1754944e-38, %v455_v61  ;;  %vm454_vm15 = vcmp.eq.f32.partialorder %v453_v9, 8.507059e+37 }
 0x192   :  { %v434_v23 = vsel %vm431_vm11, %v433_v48, %v429_v52  ;;  %v452_v54 = vsel %vm451_vm14, %v2534_v0, %v448_v41 }
 0x193   :  { %v463_v57 = vmul.f32 %v461_v47, %v434_v23  ;;  %v457_v53 = vsel %vm454_vm15, %v456_v27, %v452_v54 }
 0x195   :  { %v464_v44 = vadd.f32 %v463_v57, %v3251_v49 }
 0x197   :  { %2535 = vtanh.f32 %v464_v44 }
 0x19d   :  { %v2536_v55 = vpop.eup %2535 }
 0x19e   :  { %v467_v14 = vrot.slane %v2536_v55, 1 }
 0x1a0   :  { %v469_v58 = vsub.f32 %v3255_v18, %v467_v14 }
 0x1a2   :  { %v471_v51 = vrot.slane %v469_v58, 7  ;;  %v4390_v58 = vld [vmem:[#allocation21_spill] sm:$0xff] }
 0x1a4   :  { %v473_v48 = vmul.f32 %v471_v51, %v457_v53 }
 0x1a6   :  { %v3313_v5 = vadd.f32 %v2536_v55, %v473_v48 }
 0x1a8   :  { %v476_v50 = vrot.slane %v3313_v5, 1 }
 0x1aa   :  { %494 = vmatmul.f32.vlgmr.msra.gmra.mxu1 %v476_v50  ;;  %514 = vmatmul.f32.vlgmr.msra.gmra.mxu2 %v476_v50 }
 0x1ab   :  { %534 = vmatmul.f32.vlgmr.msra.gmra.mxu3 %v476_v50  ;;  %768 = vmatpush.msra.mxu1 %v3010_v60 }
 0x1ac   :  { %853 = vmatpush.msra.mxu2 %v2948_v1  ;;  %873 = vmatpush.msra.mxu3 %v3000_v56  ;;  %v4381_v1 = vld [vmem:[#allocation14_spill] sm:$0xff] }
 0x1ad   :  { %769 = vmatpush.msra.mxu1 %v3017_v63 }
 0x1ae   :  { %854 = vmatpush.msra.mxu2 %v2951_v3  ;;  %874 = vmatpush.msra.mxu3 %v3008_v59  ;;  %v4382_v3 = vld [vmem:[#allocation17_spill] sm:$0xff] }
 0x1af   :  { %770 = vmatpush.msra.mxu1 %v3023_v4 }
 0x1b0   :  { %855 = vmatpush.msra.mxu2 %v2953_v6  ;;  %875 = vmatpush.msra.mxu3 %v3015_v62  ;;  %v4383_v6 = vld [vmem:[#allocation12_spill] sm:$0xff] }
 0x1b1   :  { %771 = vmatpush.msra.mxu1 %v3030_v8 }
 0x1b2   :  { %856 = vmatpush.msra.mxu2 %v2956_v10  ;;  %876 = vmatpush.msra.mxu3 %v3021_v2  ;;  %v4384_v10 = vld [vmem:[#allocation15_spill] sm:$0xff] }
 0x1b3   :  { %772 = vmatpush.msra.mxu1 %v3037_v12 }
 0x1b4   :  { %857 = vmatpush.msra.mxu2 %v2959_v13  ;;  %877 = vmatpush.msra.mxu3 %v3028_v7  ;;  %v4385_v13 = vld [vmem:[#allocation18_spill] sm:$0xff] }
 0x1b5   :  { %773 = vmatpush.msra.mxu1 %v3044_v17 }
 0x1b6   :  { %858 = vmatpush.msra.mxu2 %v2962_v16  ;;  %878 = vmatpush.msra.mxu3 %v3035_v11  ;;  %v4386_v16 = vld [vmem:[#allocation13_spill] sm:$0xff] }
 0x1b7   :  { %774 = vmatpush.msra.mxu1 %v3051_v21 }
 0x1b8   :  { %859 = vmatpush.msra.mxu2 %v2965_v19  ;;  %879 = vmatpush.msra.mxu3 %v3042_v15  ;;  %v4387_v19 = vld [vmem:[#allocation16_spill] sm:$0xff] }
 0x1b9   :  { %775 = vmatpush.msra.mxu1 %v3058_v26 }
 0x1ba   :  { %860 = vmatpush.msra.mxu2 %v2968_v22  ;;  %880 = vmatpush.msra.mxu3 %v3049_v20 }
 0x1bb   :  { %776 = vmatpush.msra.mxu1 %v3065_v30 }
 0x1bc   :  { %861 = vmatpush.msra.mxu2 %v2971_v25  ;;  %881 = vmatpush.msra.mxu3 %v3056_v24 }
 0x1bd   :  { %777 = vmatpush.msra.mxu1 %v3072_v32 }
 0x1be   :  { %862 = vmatpush.msra.mxu2 %v2974_v29  ;;  %882 = vmatpush.msra.mxu3 %v3063_v28  ;;  %v4388_v29 = vld [vmem:[#allocation19_spill] sm:$0xff] }
 0x1bf   :  { %778 = vmatpush.msra.mxu1 %v3079_v35 }
 0x1c0   :  { %863 = vmatpush.msra.mxu2 %v2977_v34  ;;  %883 = vmatpush.msra.mxu3 %v3070_v31 }
 0x1c1   :  { %779 = vmatpush.msra.mxu1 %v3087_v37 }
 0x1c2   :  { %864 = vmatpush.msra.mxu2 %v2980_v38  ;;  %884 = vmatpush.msra.mxu3 %v3077_v33 }
 0x1c3   :  { %780 = vmatpush.msra.mxu1 %v3095_v40 }
 0x1c4   :  { %865 = vmatpush.msra.mxu2 %v2983_v42  ;;  %885 = vmatpush.msra.mxu3 %v3085_v36 }
 0x1c5   :  { %781 = vmatpush.msra.mxu1 %v3103_v43 }
 0x1c6   :  { %866 = vmatpush.msra.mxu2 %v2986_v46  ;;  %886 = vmatpush.msra.mxu3 %v4381_v1 }
 0x1c7   :  { %782 = vmatpush.msra.mxu1 %v4382_v3 }
 0x1c8   :  { %867 = vmatpush.msra.mxu2 %v4383_v6  ;;  %887 = vmatpush.msra.mxu3 %v4384_v10 }
 0x1c9   :  { %783 = vmatpush.msra.mxu1 %v4385_v13 }
 0x1ca   :  { %868 = vmatpush.msra.mxu2 %v4386_v16  ;;  %888 = vmatpush.msra.mxu3 %v4387_v19 }
 0x227   :  { %v495_v22 = vpop.f32.mrf.mxu1 }
 0x228   :  { %v539_v25 = vrot.slane %v495_v22, 6 }
 0x22a   :  { %v541_v34 = vadd.f32 %v539_v25, %v4388_v29 }
 0x22c   :  { %v2479_v38 = vmul.f32 -1.442695, %v541_v34 }
 0x22d   :  { %v515_v42 = vpop.f32.mrf.mxu2 }
 0x22e   :  { %2537 = vpow2.f32 %v2479_v38  ;;  %v562_v46 = vrot.slane %v515_v42, 6  ;;  %v535_v41 = vpop.f32.mrf.mxu3 }
 0x22f   :  { %v584_v27 = vadd.f32 %v535_v41, %v4390_v58 }
 0x230   :  { %v564_v61 = vadd.f32 %v562_v46, %v4389_v39 }
 0x231   :  { %v586_v16 = vrot.slane %v584_v27, 6  ;;  %v3373_v27 = vld [vmem:[#allocation5 + $0x168] sm:$0xff] }
 0x232   :  { %v2480_v45 = vmul.f32 -1.442695, %v564_v61 }
 0x234   :  { %v2538_v57 = vpop.eup %2537  ;;  %2539 = vpow2.f32 %v2480_v45 }
 0x235   :  { %v545_v0 = vadd.f32 1.0, %v2538_v57 }
 0x237   :  { %2541 = vrcp.f32 %v545_v0  ;;  %v557_v9 = vand.u32 2147483648, %v545_v0  ;;  %v555_v54 = vand.u32 2147483647, %v545_v0  ;;  %vm551_vm1 = vweird.f32 %v545_v0 }
 0x239   :  { %v558_v50 = vor.u32 1.1754944e-38, %v557_v9  ;;  %vm556_vm3 = vcmp.eq.f32.partialorder %v555_v54, 8.507059e+37 }
 0x23a   :  { %v2540_v47 = vpop.eup %2539 }
 0x23b   :  { %v568_v52 = vadd.f32 1.0, %v2540_v47 }
 0x23d   :  { %v2542_v23 = vpop.eup %2541  ;;  %2543 = vrcp.f32 %v568_v52  ;;  %v580_v45 = vand.u32 2147483648, %v568_v52  ;;  %vm574_vm5 = vweird.f32 %v568_v52 }
 0x23e   :  { %v547_v44 = vmul.f32 %v2542_v23, %v545_v0  ;;  %vm552_vm0 = vweird.f32 %v2542_v23  ;;  %v578_v0 = vand.u32 2147483647, %v568_v52 }
 0x23f   :  { %vm553_vm2 = vmor %vm551_vm1, %vm552_vm0 }
 0x240   :  { %v548_v55 = vsub.f32 1.0, %v547_v44  ;;  %v581_v44 = vor.u32 1.1754944e-38, %v580_v45  ;;  %vm579_vm7 = vcmp.eq.f32.partialorder %v578_v0, 8.507059e+37 }
 0x242   :  { %v549_v14 = vmul.f32 %v2542_v23, %v548_v55 }
 0x243   :  { %v2544_v51 = vpop.eup %2543 }
 0x244   :  { %v550_v53 = vadd.f32 %v2542_v23, %v549_v14  ;;  %v570_v48 = vmul.f32 %v2544_v51, %v568_v52  ;;  %vm575_vm4 = vweird.f32 %v2544_v51  ;;  %v3378_v52 = vld [vmem:[#allocation5 + $0x150] sm:$0xff] }
 0x245   :  { %vm576_vm6 = vmor %vm574_vm5, %vm575_vm4 }
 0x246   :  { %v554_v6 = vsel %vm553_vm2, %v2542_v23, %v550_v53  ;;  %v571_v34 = vsub.f32 1.0, %v570_v48 }
 0x247   :  { %v559_v22 = vsel %vm556_vm3, %v558_v50, %v554_v6 }
 0x248   :  { %v588_v25 = vmul.f32 %v586_v16, %v559_v22  ;;  %v572_v42 = vmul.f32 %v2544_v51, %v571_v34 }
 0x24a   :  { %v589_v38 = vadd.f32 %v588_v25, %v3251_v49  ;;  %v573_v46 = vadd.f32 %v2544_v51, %v572_v42 }
 0x24c   :  { %2545 = vtanh.f32 %v589_v38  ;;  %v577_v23 = vsel %vm576_vm6, %v2544_v51, %v573_v46  ;;  %v3383_v51 = vld [vmem:[#allocation5 + $0x138] sm:$0xff] }
 0x24d   :  { %v582_v55 = vsel %vm579_vm7, %v581_v44, %v577_v23 }
 0x252   :  { %v2546_v61 = vpop.eup %2545 }
 0x253   :  { %v592_v57 = vrot.slane %v2546_v61, 1 }
 0x255   :  { %v594_v47 = vsub.f32 %v3313_v5, %v592_v57 }
 0x257   :  { %v596_v41 = vrot.slane %v594_v47, 7 }
 0x259   :  { %v598_v9 = vmul.f32 %v596_v41, %v582_v55 }
 0x25b   :  { %v3369_v14 = vadd.f32 %v2546_v61, %v598_v9 }
 0x25d   :  { %v601_v54 = vrot.slane %v3369_v14, 2 }
 0x25f   :  { %619 = vmatmul.f32.vlgmr.msrb.gmra.mxu0 %v601_v54  ;;  %639 = vmatmul.f32.vlgmr.msrb.gmra.mxu1 %v601_v54 }
 0x260   :  { %659 = vmatmul.f32.vlgmr.msrb.gmra.mxu2 %v601_v54  ;;  %893 = vmatpush.msrb.mxu0 %v3010_v60  ;;  %v3388_v60 = vld [vmem:[#allocation5 + $0x120] sm:$0xff] }
 0x261   :  { %978 = vmatpush.msrb.mxu1 %v3373_v27  ;;  %998 = vmatpush.msrb.mxu2 %v3000_v56  ;;  %v3393_v56 = vld [vmem:[#allocation5 + $0x108] sm:$0xff] }
 0x262   :  { %894 = vmatpush.msrb.mxu0 %v3017_v63  ;;  %v3408_v63 = vld [vmem:[#allocation5 + $0xc0] sm:$0xff] }
 0x263   :  { %979 = vmatpush.msrb.mxu1 %v3378_v52  ;;  %999 = vmatpush.msrb.mxu2 %v3008_v59  ;;  %v3398_v59 = vld [vmem:[#allocation5 + $0xf0] sm:$0xff] }
 0x264   :  { %895 = vmatpush.msrb.mxu0 %v3023_v4  ;;  %v3418_v4 = vld [vmem:[#allocation5 + $0x90] sm:$0xff] }
 0x265   :  { %980 = vmatpush.msrb.mxu1 %v3383_v51  ;;  %1000 = vmatpush.msrb.mxu2 %v3015_v62  ;;  %v3403_v62 = vld [vmem:[#allocation5 + $0xd8] sm:$0xff] }
 0x266   :  { %896 = vmatpush.msrb.mxu0 %v3030_v8  ;;  %v3428_v8 = vld [vmem:[#allocation5 + $0x60] sm:$0xff] }
 0x267   :  { %981 = vmatpush.msrb.mxu1 %v3388_v60  ;;  %1001 = vmatpush.msrb.mxu2 %v3021_v2  ;;  %v3413_v2 = vld [vmem:[#allocation5 + $0xa8] sm:$0xff] }
 0x268   :  { %897 = vmatpush.msrb.mxu0 %v3037_v12  ;;  %v3438_v12 = vld [vmem:[#allocation5 + $0x30] sm:$0xff] }
 0x269   :  { %982 = vmatpush.msrb.mxu1 %v3393_v56  ;;  %1002 = vmatpush.msrb.mxu2 %v3028_v7  ;;  %v3423_v7 = vld [vmem:[#allocation5 + $0x78] sm:$0xff] }
 0x26a   :  { %898 = vmatpush.msrb.mxu0 %v3044_v17  ;;  %v3448_v17 = vld [vmem:[#allocation5] sm:$0xff] }
 0x26b   :  { %983 = vmatpush.msrb.mxu1 %v3398_v59  ;;  %1003 = vmatpush.msrb.mxu2 %v3035_v11  ;;  %v3433_v11 = vld [vmem:[#allocation5 + $0x48] sm:$0xff] }
 0x26c   :  { %899 = vmatpush.msrb.mxu0 %v3051_v21 }
 0x26d   :  { %984 = vmatpush.msrb.mxu1 %v3403_v62  ;;  %1004 = vmatpush.msrb.mxu2 %v3042_v15  ;;  %v3443_v15 = vld [vmem:[#allocation5 + $0x18] sm:$0xff] }
 0x26e   :  { %900 = vmatpush.msrb.mxu0 %v3058_v26 }
 0x26f   :  { %985 = vmatpush.msrb.mxu1 %v3408_v63  ;;  %1005 = vmatpush.msrb.mxu2 %v3049_v20 }
 0x270   :  { %901 = vmatpush.msrb.mxu0 %v3065_v30 }
 0x271   :  { %986 = vmatpush.msrb.mxu1 %v3413_v2  ;;  %1006 = vmatpush.msrb.mxu2 %v3056_v24 }
 0x272   :  { %902 = vmatpush.msrb.mxu0 %v3072_v32 }
 0x273   :  { %987 = vmatpush.msrb.mxu1 %v3418_v4  ;;  %1007 = vmatpush.msrb.mxu2 %v3063_v28 }
 0x274   :  { %903 = vmatpush.msrb.mxu0 %v3079_v35 }
 0x275   :  { %988 = vmatpush.msrb.mxu1 %v3423_v7  ;;  %1008 = vmatpush.msrb.mxu2 %v3070_v31 }
 0x276   :  { %904 = vmatpush.msrb.mxu0 %v3087_v37 }
 0x277   :  { %989 = vmatpush.msrb.mxu1 %v3428_v8  ;;  %1009 = vmatpush.msrb.mxu2 %v3077_v33 }
 0x278   :  { %905 = vmatpush.msrb.mxu0 %v3095_v40 }
 0x279   :  { %990 = vmatpush.msrb.mxu1 %v3433_v11  ;;  %1010 = vmatpush.msrb.mxu2 %v3085_v36 }
 0x27a   :  { %906 = vmatpush.msrb.mxu0 %v3103_v43 }
 0x27b   :  { %991 = vmatpush.msrb.mxu1 %v3438_v12  ;;  %1011 = vmatpush.msrb.mxu2 %v4381_v1 }
 0x27c   :  { %907 = vmatpush.msrb.mxu0 %v4382_v3 }
 0x27d   :  { %992 = vmatpush.msrb.mxu1 %v3443_v15  ;;  %1012 = vmatpush.msrb.mxu2 %v4384_v10 }
 0x27e   :  { %908 = vmatpush.msrb.mxu0 %v4385_v13 }
 0x27f   :  { %993 = vmatpush.msrb.mxu1 %v3448_v17  ;;  %1013 = vmatpush.msrb.mxu2 %v4387_v19 }
 0x2dc   :  { %v620_v20 = vpop.f32.mrf.mxu0  ;;  %v640_v21 = vpop.f32.mrf.mxu1 }
 0x2dd   :  { %v664_v24 = vrot.slane %v620_v20, 5  ;;  %v687_v26 = vrot.slane %v640_v21, 5 }
 0x2df   :  { %v666_v28 = vadd.f32 %v664_v24, %v4388_v29  ;;  %v689_v30 = vadd.f32 %v687_v26, %v4389_v39  ;;  %v3460_v26 = vld [vmem:[#allocation5 + $0x178] sm:$0xff] }
 0x2e1   :  { %v2481_v31 = vmul.f32 -1.442695, %v666_v28  ;;  %v2482_v32 = vmul.f32 -1.442695, %v689_v30  ;;  %v2698_v28 = vld [vmem:[#allocation5 + $0x170] sm:$0xff]  ;;  %v3464_v30 = vld [vmem:[#allocation5 + $0x160] sm:$0xff] }
 0x2e3   :  { %2547 = vpow2.f32 %v2481_v31  ;;  %v660_v1 = vpop.f32.mrf.mxu2  ;;  %v2700_v31 = vld [vmem:[#allocation5 + $0x158] sm:$0xff] }
 0x2e4   :  { %2549 = vpow2.f32 %v2482_v32  ;;  %v709_v48 = vadd.f32 %v660_v1, %v4390_v58  ;;  %v3468_v32 = vld [vmem:[#allocation5 + $0x148] sm:$0xff]  ;;  %v3492_v1 = vld [vmem:[#allocation5 + $0xb8] sm:$0xff] }
 0x2e6   :  { %v711_v25 = vrot.slane %v709_v48, 5  ;;  %v3516_v48 = vld [vmem:[#allocation5 + $0x28] sm:$0xff] }
 0x2e9   :  { %v2548_v33 = vpop.eup %2547 }
 0x2ea   :  { %v2550_v35 = vpop.eup %2549  ;;  %v670_v36 = vadd.f32 1.0, %v2548_v33  ;;  %v2702_v33 = vld [vmem:[#allocation5 + $0x140] sm:$0xff] }
 0x2eb   :  { %v693_v37 = vadd.f32 1.0, %v2550_v35  ;;  %v3472_v35 = vld [vmem:[#allocation5 + $0x130] sm:$0xff] }
 0x2ec   :  { %2551 = vrcp.f32 %v670_v36  ;;  %v682_v10 = vand.u32 2147483648, %v670_v36  ;;  %v680_v53 = vand.u32 2147483647, %v670_v36  ;;  %vm676_vm9 = vweird.f32 %v670_v36 }
 0x2ed   :  { %2553 = vrcp.f32 %v693_v37  ;;  %v705_v0 = vand.u32 2147483648, %v693_v37  ;;  %vm699_vm13 = vweird.f32 %v693_v37  ;;  %v703_v23 = vand.u32 2147483647, %v693_v37 }
 0x2ee   :  { %v683_v16 = vor.u32 1.1754944e-38, %v682_v10  ;;  %vm681_vm11 = vcmp.eq.f32.partialorder %v680_v53, 8.507059e+37  ;;  %v3500_v10 = vld [vmem:[#allocation5 + $0x88] sm:$0xff]  ;;  %v3512_v53 = vld [vmem:[#allocation5 + $0x40] sm:$0xff] }
 0x2ef   :  { %v706_v55 = vor.u32 1.1754944e-38, %v705_v0  ;;  %vm704_vm15 = vcmp.eq.f32.partialorder %v703_v23, 8.507059e+37 }
 0x2f2   :  { %v2552_v40 = vpop.eup %2551 }
 0x2f3   :  { %v672_v43 = vmul.f32 %v2552_v40, %v670_v36  ;;  %v2554_v13 = vpop.eup %2553  ;;  %vm677_vm8 = vweird.f32 %v2552_v40  ;;  %v3476_v36 = vld [vmem:[#allocation5 + $0x118] sm:$0xff] }
 0x2f4   :  { %v695_v6 = vmul.f32 %v2554_v13, %v693_v37  ;;  %vm678_vm10 = vmor %vm676_vm9, %vm677_vm8  ;;  %vm700_vm12 = vweird.f32 %v2554_v13  ;;  %v3480_v37 = vld [vmem:[#allocation5 + $0x100] sm:$0xff] }
 0x2f5   :  { %v673_v3 = vsub.f32 1.0, %v672_v43  ;;  %vm701_vm14 = vmor %vm699_vm13, %vm700_vm12  ;;  %v3488_v43 = vld [vmem:[#allocation5 + $0xd0] sm:$0xff] }
 0x2f6   :  { %v696_v42 = vsub.f32 1.0, %v695_v6 }
 0x2f7   :  { %v674_v19 = vmul.f32 %v2552_v40, %v673_v3  ;;  %v3496_v3 = vld [vmem:[#allocation5 + $0xa0] sm:$0xff] }
 0x2f8   :  { %v697_v61 = vmul.f32 %v2554_v13, %v696_v42 }
 0x2f9   :  { %v675_v50 = vadd.f32 %v2552_v40, %v674_v19  ;;  %v3508_v19 = vld [vmem:[#allocation5 + $0x58] sm:$0xff] }
 0x2fa   :  { %v698_v45 = vadd.f32 %v2554_v13, %v697_v61 }
 0x2fb   :  { %v679_v22 = vsel %vm678_vm10, %v2552_v40, %v675_v50  ;;  %v3484_v40 = vld [vmem:[#allocation5 + $0xe8] sm:$0xff]  ;;  %v3520_v50 = vld [vmem:[#allocation5 + $0x10] sm:$0xff] }
 0x2fc   :  { %v684_v34 = vsel %vm681_vm11, %v683_v16, %v679_v22  ;;  %v702_v41 = vsel %vm701_vm14, %v2554_v13, %v698_v45  ;;  %v3504_v13 = vld [vmem:[#allocation5 + $0x70] sm:$0xff] }
 0x2fd   :  { %v713_v38 = vmul.f32 %v711_v25, %v684_v34  ;;  %v707_v54 = vsel %vm704_vm15, %v706_v55, %v702_v41 }
 0x2ff   :  { %v714_v46 = vadd.f32 %v713_v38, %v3251_v49 }
 0x301   :  { %2555 = vtanh.f32 %v714_v46 }
 0x307   :  { %v2556_v57 = vpop.eup %2555 }
 0x308   :  { %v717_v47 = vrot.slane %v2556_v57, 1 }
 0x30a   :  { %v719_v44 = vsub.f32 %v3369_v14, %v717_v47 }
 0x30c   :  { %v721_v9 = vrot.slane %v719_v44, 7 }
 0x30e   :  { %v723_v20 = vmul.f32 %v721_v9, %v707_v54 }
 0x310   :  { %v3457_v21 = vadd.f32 %v2556_v57, %v723_v20 }
 0x312   :  { %v726_v24 = vrot.slane %v3457_v21, 3 }
 0x314   :  { %744 = vmatmul.f32.vlgmr.msrb.gmra.mxu3 %v726_v24  ;;  %764 = vmatmul.f32.vlgmr.msra.gmra.mxu0 %v726_v24 }
 0x315   :  { %784 = vmatmul.f32.vlgmr.msra.gmra.mxu1 %v726_v24  ;;  %1018 = vmatpush.msrb.mxu3 %v3460_v26 }
 0x316   :  { %1103 = vmatpush.msra.mxu0 %v3373_v27  ;;  %1123 = vmatpush.msra.mxu1 %v2698_v28  ;;  %v2704_v27 = vld [vmem:[#allocation5 + $0x128] sm:$0xff] }
 0x317   :  { %1019 = vmatpush.msrb.mxu3 %v3464_v30 }
 0x318   :  { %1104 = vmatpush.msra.mxu0 %v3378_v52  ;;  %1124 = vmatpush.msra.mxu1 %v2700_v31  ;;  %v2706_v52 = vld [vmem:[#allocation5 + $0x110] sm:$0xff] }
 0x319   :  { %1020 = vmatpush.msrb.mxu3 %v3468_v32 }
 0x31a   :  { %1105 = vmatpush.msra.mxu0 %v3383_v51  ;;  %1125 = vmatpush.msra.mxu1 %v2702_v33  ;;  %v2708_v51 = vld [vmem:[#allocation5 + $0xf8] sm:$0xff] }
 0x31b   :  { %1021 = vmatpush.msrb.mxu3 %v3472_v35 }
 0x31c   :  { %1106 = vmatpush.msra.mxu0 %v3388_v60  ;;  %1126 = vmatpush.msra.mxu1 %v2704_v27  ;;  %v2710_v60 = vld [vmem:[#allocation5 + $0xe0] sm:$0xff] }
 0x31d   :  { %1022 = vmatpush.msrb.mxu3 %v3476_v36 }
 0x31e   :  { %1107 = vmatpush.msra.mxu0 %v3393_v56  ;;  %1127 = vmatpush.msra.mxu1 %v2706_v52  ;;  %v2712_v56 = vld [vmem:[#allocation5 + $0xc8] sm:$0xff] }
 0x31f   :  { %1023 = vmatpush.msrb.mxu3 %v3480_v37 }
 0x320   :  { %1108 = vmatpush.msra.mxu0 %v3398_v59  ;;  %1128 = vmatpush.msra.mxu1 %v2708_v51  ;;  %v2714_v59 = vld [vmem:[#allocation5 + $0xb0] sm:$0xff] }
 0x321   :  { %1024 = vmatpush.msrb.mxu3 %v3484_v40 }
 0x322   :  { %1109 = vmatpush.msra.mxu0 %v3403_v62  ;;  %1129 = vmatpush.msra.mxu1 %v2710_v60  ;;  %v2716_v62 = vld [vmem:[#allocation5 + $0x98] sm:$0xff] }
 0x323   :  { %1025 = vmatpush.msrb.mxu3 %v3488_v43 }
 0x324   :  { %1110 = vmatpush.msra.mxu0 %v3408_v63  ;;  %1130 = vmatpush.msra.mxu1 %v2712_v56  ;;  %v2718_v63 = vld [vmem:[#allocation5 + $0x80] sm:$0xff] }
 0x325   :  { %1026 = vmatpush.msrb.mxu3 %v3492_v1 }
 0x326   :  { %1111 = vmatpush.msra.mxu0 %v3413_v2  ;;  %1131 = vmatpush.msra.mxu1 %v2714_v59  ;;  %v2720_v2 = vld [vmem:[#allocation5 + $0x68] sm:$0xff] }
 0x327   :  { %1027 = vmatpush.msrb.mxu3 %v3496_v3 }
 0x328   :  { %1112 = vmatpush.msra.mxu0 %v3418_v4  ;;  %1132 = vmatpush.msra.mxu1 %v2716_v62  ;;  %v2722_v4 = vld [vmem:[#allocation5 + $0x50] sm:$0xff] }
 0x329   :  { %1028 = vmatpush.msrb.mxu3 %v3500_v10 }
 0x32a   :  { %1113 = vmatpush.msra.mxu0 %v3423_v7  ;;  %1133 = vmatpush.msra.mxu1 %v2718_v63  ;;  %v2724_v7 = vld [vmem:[#allocation5 + $0x38] sm:$0xff] }
 0x32b   :  { %1029 = vmatpush.msrb.mxu3 %v3504_v13 }
 0x32c   :  { %1114 = vmatpush.msra.mxu0 %v3428_v8  ;;  %1134 = vmatpush.msra.mxu1 %v2720_v2  ;;  %v2726_v8 = vld [vmem:[#allocation5 + $0x20] sm:$0xff] }
 0x32d   :  { %1030 = vmatpush.msrb.mxu3 %v3508_v19 }
 0x32e   :  { %1115 = vmatpush.msra.mxu0 %v3433_v11  ;;  %1135 = vmatpush.msra.mxu1 %v2722_v4  ;;  %v2728_v11 = vld [vmem:[#allocation5 + $0x8] sm:$0xff] }
 0x32f   :  { %1031 = vmatpush.msrb.mxu3 %v3512_v53 }
 0x330   :  { %1116 = vmatpush.msra.mxu0 %v3438_v12  ;;  %1136 = vmatpush.msra.mxu1 %v2724_v7 }
 0x331   :  { %1032 = vmatpush.msrb.mxu3 %v3516_v48 }
 0x332   :  { %1117 = vmatpush.msra.mxu0 %v3443_v15  ;;  %1137 = vmatpush.msra.mxu1 %v2726_v8 }
 0x333   :  { %1033 = vmatpush.msrb.mxu3 %v3520_v50 }
 0x334   :  { %1118 = vmatpush.msra.mxu0 %v3448_v17  ;;  %1138 = vmatpush.msra.mxu1 %v2728_v11 }
 0x391   :  { %v765_v6 = vpop.f32.mrf.mxu0 }
 0x392   :  { %v812_v12 = vrot.slane %v765_v6, 4  ;;  %v785_v0 = vpop.f32.mrf.mxu1 }
 0x393   :  { %v834_v41 = vadd.f32 %v785_v0, %v4390_v58 }
 0x394   :  { %v814_v16 = vadd.f32 %v812_v12, %v4389_v39 }
 0x395   :  { %v836_v28 = vrot.slane %v834_v41, 4 }
 0x396   :  { %v2484_v38 = vmul.f32 -1.442695, %v814_v16 }
 0x397   :  { %v745_v22 = vpop.f32.mrf.mxu3 }
 0x398   :  { %v789_v25 = vrot.slane %v745_v22, 4 }
 0x39a   :  { %v791_v34 = vadd.f32 %v789_v25, %v4388_v29 }
 0x39c   :  { %v2483_v15 = vmul.f32 -1.442695, %v791_v34 }
 0x39e   :  { %2557 = vpow2.f32 %v2483_v15 }
 0x39f   :  { %2559 = vpow2.f32 %v2484_v38 }
 0x3a4   :  { %v2558_v42 = vpop.eup %2557 }
 0x3a5   :  { %v2560_v46 = vpop.eup %2559  ;;  %v795_v61 = vadd.f32 1.0, %v2558_v42 }
 0x3a6   :  { %v818_v45 = vadd.f32 1.0, %v2560_v46 }
 0x3a7   :  { %2561 = vrcp.f32 %v795_v61  ;;  %v807_v23 = vand.u32 2147483648, %v795_v61  ;;  %v805_v9 = vand.u32 2147483647, %v795_v61  ;;  %vm801_vm1 = vweird.f32 %v795_v61 }
 0x3a8   :  { %2563 = vrcp.f32 %v818_v45  ;;  %v830_v62 = vand.u32 2147483648, %v818_v45  ;;  %vm824_vm5 = vweird.f32 %v818_v45  ;;  %v828_v63 = vand.u32 2147483647, %v818_v45 }
 0x3a9   :  { %v808_v24 = vor.u32 1.1754944e-38, %v807_v23  ;;  %vm806_vm3 = vcmp.eq.f32.partialorder %v805_v9, 8.507059e+37 }
 0x3aa   :  { %v831_v8 = vor.u32 1.1754944e-38, %v830_v62  ;;  %vm829_vm7 = vcmp.eq.f32.partialorder %v828_v63, 8.507059e+37 }
 0x3ad   :  { %v2562_v17 = vpop.eup %2561 }
 0x3ae   :  { %v797_v57 = vmul.f32 %v2562_v17, %v795_v61  ;;  %v2564_v44 = vpop.eup %2563  ;;  %vm802_vm0 = vweird.f32 %v2562_v17 }
 0x3af   :  { %v820_v20 = vmul.f32 %v2564_v44, %v818_v45  ;;  %vm803_vm2 = vmor %vm801_vm1, %vm802_vm0  ;;  %vm825_vm4 = vweird.f32 %v2564_v44 }
 0x3b0   :  { %v798_v47 = vsub.f32 1.0, %v797_v57  ;;  %vm826_vm6 = vmor %vm824_vm5, %vm825_vm4 }
 0x3b1   :  { %v821_v52 = vsub.f32 1.0, %v820_v20 }
 0x3b2   :  { %v799_v55 = vmul.f32 %v2562_v17, %v798_v47 }
 0x3b3   :  { %v822_v60 = vmul.f32 %v2564_v44, %v821_v52 }
 0x3b4   :  { %v800_v54 = vadd.f32 %v2562_v17, %v799_v55 }
 0x3b5   :  { %v823_v56 = vadd.f32 %v2564_v44, %v822_v60 }
 0x3b6   :  { %v804_v31 = vsel %vm803_vm2, %v2562_v17, %v800_v54 }
 0x3b7   :  { %v809_v33 = vsel %vm806_vm3, %v808_v24, %v804_v31  ;;  %v827_v4 = vsel %vm826_vm6, %v2564_v44, %v823_v56 }
 0x3b8   :  { %v838_v27 = vmul.f32 %v836_v28, %v809_v33  ;;  %v832_v6 = vsel %vm829_vm7, %v831_v8, %v827_v4 }
 0x3ba   :  { %v839_v51 = vadd.f32 %v838_v27, %v3251_v49 }
 0x3bc   :  { %2565 = vtanh.f32 %v839_v51 }
 0x3c2   :  { %v2566_v59 = vpop.eup %2565 }
 0x3c3   :  { %v842_v2 = vrot.slane %v2566_v59, 1 }
 0x3c5   :  { %v844_v7 = vsub.f32 %v3457_v21, %v842_v2 }
 0x3c7   :  { %v846_v11 = vrot.slane %v844_v7, 7 }
 0x3c9   :  { %v848_v12 = vmul.f32 %v846_v11, %v832_v6 }
 0x3cb   :  { %v3529_v16 = vadd.f32 %v2566_v59, %v848_v12 }
 0x3cd   :  { %v851_v22 = vrot.slane %v3529_v16, 4 }
 0x3cf   :  { %869 = vmatmul.f32.vlgmr.msra.gmra.mxu2 %v851_v22  ;;  %889 = vmatmul.f32.vlgmr.msra.gmra.mxu3 %v851_v22 }
 0x3d0   :  { %909 = vmatmul.f32.vlgmr.msrb.gmra.mxu0 %v851_v22  ;;  %1143 = vmatpush.msra.mxu2 %v3460_v26 }
 0x3d2   :  { %1144 = vmatpush.msra.mxu2 %v3464_v30 }
 0x3d4   :  { %1145 = vmatpush.msra.mxu2 %v3468_v32 }
 0x3d6   :  { %1146 = vmatpush.msra.mxu2 %v3472_v35 }
 0x3d8   :  { %1147 = vmatpush.msra.mxu2 %v3476_v36 }
 0x3da   :  { %1148 = vmatpush.msra.mxu2 %v3480_v37 }
 0x3dc   :  { %1149 = vmatpush.msra.mxu2 %v3484_v40 }
 0x3de   :  { %1150 = vmatpush.msra.mxu2 %v3488_v43 }
 0x3e0   :  { %1151 = vmatpush.msra.mxu2 %v3492_v1 }
 0x3e2   :  { %1152 = vmatpush.msra.mxu2 %v3496_v3 }
 0x3e4   :  { %1153 = vmatpush.msra.mxu2 %v3500_v10 }
 0x3e6   :  { %1154 = vmatpush.msra.mxu2 %v3504_v13 }
 0x3e8   :  { %1155 = vmatpush.msra.mxu2 %v3508_v19 }
 0x3ea   :  { %1156 = vmatpush.msra.mxu2 %v3512_v53 }
 0x3ec   :  { %1157 = vmatpush.msra.mxu2 %v3516_v48 }
 0x3ee   :  { %1158 = vmatpush.msra.mxu2 %v3520_v50 }
 0x44d   :  { %v910_v48 = vpop.f32.mrf.mxu0 }
 0x44e   :  { %v959_v38 = vadd.f32 %v910_v48, %v4390_v58 }
 0x450   :  { %v961_v17 = vrot.slane %v959_v38, 3 }
 0x452   :  { %v870_v26 = vpop.f32.mrf.mxu2  ;;  %v890_v30 = vpop.f32.mrf.mxu3 }
 0x453   :  { %v914_v32 = vrot.slane %v870_v26, 3  ;;  %v937_v35 = vrot.slane %v890_v30, 3 }
 0x455   :  { %v916_v36 = vadd.f32 %v914_v32, %v4388_v29  ;;  %v939_v37 = vadd.f32 %v937_v35, %v4389_v39 }
 0x457   :  { %v2485_v40 = vmul.f32 -1.442695, %v916_v36  ;;  %v2486_v43 = vmul.f32 -1.442695, %v939_v37 }
 0x459   :  { %2567 = vpow2.f32 %v2485_v40 }
 0x45a   :  { %2569 = vpow2.f32 %v2486_v43  ;;  %v3561_v43 = vld [vmem:[%s4315_s5] sm:$0x1] }
 0x45f   :  { %v2568_v1 = vpop.eup %2567 }
 0x460   :  { %v2570_v3 = vpop.eup %2569  ;;  %v920_v10 = vadd.f32 1.0, %v2568_v1 }
 0x461   :  { %v943_v13 = vadd.f32 1.0, %v2570_v3 }
 0x462   :  { %2571 = vrcp.f32 %v920_v10  ;;  %v932_v25 = vand.u32 2147483648, %v920_v10  ;;  %v930_v42 = vand.u32 2147483647, %v920_v10  ;;  %vm926_vm9 = vweird.f32 %v920_v10 }
 0x463   :  { %2573 = vrcp.f32 %v943_v13  ;;  %v955_v9 = vand.u32 2147483648, %v943_v13  ;;  %vm949_vm13 = vweird.f32 %v943_v13  ;;  %v953_v54 = vand.u32 2147483647, %v943_v13 }
 0x464   :  { %v933_v61 = vor.u32 1.1754944e-38, %v932_v25  ;;  %vm931_vm11 = vcmp.eq.f32.partialorder %v930_v42, 8.507059e+37 }
 0x465   :  { %v956_v31 = vor.u32 1.1754944e-38, %v955_v9  ;;  %vm954_vm15 = vcmp.eq.f32.partialorder %v953_v54, 8.507059e+37  ;;  %v1285_v9 = vld [vmem:[#allocation2 + $0x2e8] sm:$0xff]  ;;  %v1282_v54 = vld [vmem:[#allocation2 + $0x2d0] sm:$0xff] }
 0x466   :  { %1347 = vmatpush.msra.mxu3 %v1285_v9  ;;  %v1259_v9 = vld [vmem:[#allocation2 + $0x218] sm:$0xff] }
 0x468   :  { %v2572_v19 = vpop.eup %2571  ;;  %1348 = vmatpush.msra.mxu3 %v1282_v54  ;;  %v1260_v54 = vld [vmem:[#allocation2 + $0x220] sm:$0xff] }
 0x469   :  { %v922_v53 = vmul.f32 %v2572_v19, %v920_v10  ;;  %v2574_v34 = vpop.eup %2573  ;;  %vm927_vm8 = vweird.f32 %v2572_v19 }
 0x46a   :  { %vm928_vm10 = vmor %vm926_vm9, %vm927_vm8  ;;  %v945_v45 = vmul.f32 %v2574_v34, %v943_v13  ;;  %vm950_vm12 = vweird.f32 %v2574_v34 }
 0x46b   :  { %v923_v50 = vsub.f32 1.0, %v922_v53  ;;  %vm951_vm14 = vmor %vm949_vm13, %vm950_vm12 }
 0x46c   :  { %v946_v23 = vsub.f32 1.0, %v945_v45 }
 0x46d   :  { %v924_v15 = vmul.f32 %v2572_v19, %v923_v50 }
 0x46e   :  { %v947_v41 = vmul.f32 %v2574_v34, %v946_v23 }
 0x46f   :  { %v925_v46 = vadd.f32 %v2572_v19, %v924_v15 }
 0x470   :  { %v948_v58 = vadd.f32 %v2574_v34, %v947_v41 }
 0x471   :  { %v929_v57 = vsel %vm928_vm10, %v2572_v19, %v925_v46 }
 0x472   :  { %v934_v0 = vsel %vm931_vm11, %v933_v61, %v929_v57  ;;  %v952_v24 = vsel %vm951_vm14, %v2574_v34, %v948_v58  ;;  %vm1225_vm14 = vcmask 1040384  }
 0x473   :  { %v963_v47 = vmul.f32 %v961_v17, %v934_v0  ;;  %v957_v27 = vsel %vm954_vm15, %v956_v31, %v952_v24  ;;  %v1276_v24 = vld [vmem:[#allocation2 + $0x2a0] sm:$0xff]  ;;  %v1270_v31 = vld [vmem:[#allocation2 + $0x270] sm:$0xff] }
 0x475   :  { %v964_v44 = vadd.f32 %v963_v47, %v3251_v49 }
 0x477   :  { %2575 = vtanh.f32 %v964_v44 }
 0x47d   :  { %v2576_v55 = vpop.eup %2575 }
 0x47e   :  { %v967_v20 = vrot.slane %v2576_v55, 1 }
 0x480   :  { %v969_v28 = vsub.f32 %v3529_v16, %v967_v20  ;;  %v1279_v20 = vld [vmem:[#allocation2 + $0x2b8] sm:$0xff] }
 0x481   :  { %1349 = vmatpush.msra.mxu3 %v1279_v20  ;;  %v3610_v20 = vld [vmem:[#allocation5 + $0x228] sm:$0xff] }
 0x482   :  { %v971_v33 = vrot.slane %v969_v28, 7  ;;  %v1273_v28 = vld [vmem:[#allocation2 + $0x288] sm:$0xff] }
 0x483   :  { %1350 = vmatpush.msra.mxu3 %v1276_v24  ;;  %v3612_v24 = vld [vmem:[#allocation5 + $0x278] sm:$0xff] }
 0x484   :  { %v973_v52 = vmul.f32 %v971_v33, %v957_v27  ;;  %v1267_v33 = vld [vmem:[#allocation2 + $0x258] sm:$0xff]  ;;  %v1264_v27 = vld [vmem:[#allocation2 + $0x240] sm:$0xff] }
 0x485   :  { %1351 = vmatpush.msra.mxu3 %v1273_v28  ;;  %v1256_v28 = vld [vmem:[#allocation2 + $0x200] sm:$0xff] }
 0x486   :  { %v3553_v51 = vadd.f32 %v2576_v55, %v973_v52  ;;  %v1261_v52 = vld [vmem:[#allocation2 + $0x228] sm:$0xff] }
 0x487   :  { %1352 = vmatpush.msra.mxu3 %v1270_v31  ;;  %v1257_v31 = vld [vmem:[#allocation2 + $0x208] sm:$0xff] }
 0x488   :  { %v976_v60 = vrot.slane %v3553_v51, 5 }
 0x489   :  { %1353 = vmatpush.msra.mxu3 %v1267_v33  ;;  %v3616_v33 = vld [vmem:[#allocation5 + $0x210] sm:$0xff] }
 0x48a   :  { %994 = vmatmul.f32.vlgmr.msrb.gmra.mxu1 %v976_v60  ;;  %1014 = vmatmul.f32.vlgmr.msrb.gmra.mxu2 %v976_v60 }
 0x48b   :  { %1034 = vmatmul.f32.vlgmr.msrb.gmra.mxu3 %v976_v60  ;;  %v1258_v60 = vld [vmem:[#allocation2 + $0x210] sm:$0xff] }
 0x48c   :  { %1354 = vmatpush.msra.mxu3 %v1264_v27 }
 0x48e   :  { %1355 = vmatpush.msra.mxu3 %v1261_v52  ;;  %v3618_v52 = vld [vmem:[#allocation5 + $0x260] sm:$0xff] }
 0x490   :  { %1356 = vmatpush.msra.mxu3 %v1258_v60  ;;  %v1253_v60 = vld [vmem:[#allocation2 + $0x1e8] sm:$0xff] }
 0x507   :  { %v995_v56 = vpop.f32.mrf.mxu1 }
 0x508   :  { %v1039_v59 = vrot.slane %v995_v56, 2  ;;  %v1255_v56 = vld [vmem:[#allocation2 + $0x1f8] sm:$0xff] }
 0x509   :  { %1357 = vmatpush.msra.mxu3 %v1255_v56  ;;  %v1254_v56 = vld [vmem:[#allocation2 + $0x1f0] sm:$0xff] }
 0x50a   :  { %v1041_v62 = vadd.f32 %v1039_v59, %v4388_v29  ;;  %v1252_v59 = vld [vmem:[#allocation2 + $0x1e0] sm:$0xff] }
 0x50b   :  { %1358 = vmatpush.msra.mxu3 %v1252_v59 }
 0x50c   :  { %v2487_v63 = vmul.f32 -1.442695, %v1041_v62  ;;  %v1286_v62 = vld [vmem:[#allocation2 + $0x2f0] sm:$0xff] }
 0x50d   :  { %v1015_v2 = vpop.f32.mrf.mxu2  ;;  %1367 = vmatpush.msrb.mxu0 %v1286_v62 }
 0x50e   :  { %2577 = vpow2.f32 %v2487_v63  ;;  %v1062_v4 = vrot.slane %v1015_v2, 2  ;;  %v1035_v32 = vpop.f32.mrf.mxu3  ;;  %v1287_v63 = vld [vmem:[#allocation2 + $0x2f8] sm:$0xff]  ;;  %v1249_v2 = vld [vmem:[#allocation2 + $0x1c8] sm:$0xff] }
 0x50f   :  { %v1084_v1 = vadd.f32 %v3561_v43, %v1035_v32  ;;  %1387 = vmatpush.msrb.mxu1 %v1287_v63  ;;  %1359 = vmatpush.msra.mxu3 %v1249_v2  ;;  %v1278_v32 = vld [vmem:[#allocation2 + $0x2b0] sm:$0xff]  ;;  %v3624_v63 = vld [vmem:[#allocation5 + $0x1f8] sm:$0xff]  ;;  %v3626_v2 = vld [vmem:[#allocation5 + $0x248] sm:$0xff] }
 0x510   :  { %v1064_v7 = vadd.f32 %v1062_v4, %v4389_v39  ;;  %v1283_v4 = vld [vmem:[#allocation2 + $0x2d8] sm:$0xff] }
 0x511   :  { %v1086_v48 = vrot.slane %v1084_v1, 2  ;;  %1368 = vmatpush.msrb.mxu0 %v1283_v4  ;;  %v1274_v1 = vld [vmem:[#allocation2 + $0x290] sm:$0xff] }
 0x512   :  { %v2488_v8 = vmul.f32 -1.442695, %v1064_v7  ;;  %v1284_v7 = vld [vmem:[#allocation2 + $0x2e0] sm:$0xff]  ;;  %v1250_v4 = vld [vmem:[#allocation2 + $0x1d0] sm:$0xff] }
 0x513   :  { %1388 = vmatpush.msrb.mxu1 %v1284_v7  ;;  %v1251_v7 = vld [vmem:[#allocation2 + $0x1d8] sm:$0xff] }
 0x514   :  { %v2578_v11 = vpop.eup %2577  ;;  %2579 = vpow2.f32 %v2488_v8  ;;  %v3569_v8 = vld [vmem:[#allocation5 + $0x2e8] sm:$0xff] }
 0x515   :  { %v1045_v6 = vadd.f32 1.0, %v2578_v11  ;;  %v1246_v11 = vld [vmem:[#allocation2 + $0x1b0] sm:$0xff]  ;;  %1408 = vmatpush.msrb.mxu2 %v3569_v8 }
 0x516   :  { %1360 = vmatpush.msra.mxu3 %v1246_v11  ;;  %v3628_v11 = vld [vmem:[#allocation5 + $0x1e0] sm:$0xff] }
 0x517   :  { %2581 = vrcp.f32 %v1045_v6  ;;  %v1057_v36 = vand.u32 2147483648, %v1045_v6  ;;  %v1055_v40 = vand.u32 2147483647, %v1045_v6  ;;  %vm1051_vm1 = vweird.f32 %v1045_v6 }
 0x519   :  { %v1058_v19 = vor.u32 1.1754944e-38, %v1057_v36  ;;  %vm1056_vm3 = vcmp.eq.f32.partialorder %v1055_v40, 8.507059e+37  ;;  %v1240_v36 = vld [vmem:[#allocation2 + $0x180] sm:$0xff] }
 0x51a   :  { %v2580_v12 = vpop.eup %2579 }
 0x51b   :  { %v1068_v22 = vadd.f32 1.0, %v2580_v12  ;;  %v1281_v12 = vld [vmem:[#allocation2 + $0x2c8] sm:$0xff] }
 0x51c   :  { %1389 = vmatpush.msrb.mxu1 %v1281_v12  ;;  %v1247_v12 = vld [vmem:[#allocation2 + $0x1b8] sm:$0xff] }
 0x51d   :  { %v2582_v26 = vpop.eup %2581  ;;  %2583 = vrcp.f32 %v1068_v22  ;;  %v1080_v61 = vand.u32 2147483648, %v1068_v22  ;;  %vm1074_vm5 = vweird.f32 %v1068_v22  ;;  %v1078_v17 = vand.u32 2147483647, %v1068_v22 }
 0x51e   :  { %v1047_v30 = vmul.f32 %v2582_v26, %v1045_v6  ;;  %vm1052_vm0 = vweird.f32 %v2582_v26  ;;  %v1280_v6 = vld [vmem:[#allocation2 + $0x2c0] sm:$0xff]  ;;  %1390 = vmatpush.msrb.mxu1 %v1278_v32  ;;  %v3637_v32 = vld [vmem:[#allocation5 + $0x1c8] sm:$0xff] }
 0x51f   :  { %vm1053_vm2 = vmor %vm1051_vm1, %vm1052_vm0  ;;  %v1081_v47 = vor.u32 1.1754944e-38, %v1080_v61  ;;  %vm1079_vm7 = vcmp.eq.f32.partialorder %v1078_v17, 8.507059e+37  ;;  %1369 = vmatpush.msrb.mxu0 %v1280_v6  ;;  %v3592_v61 = vld [vmem:[#allocation5 + $0x270] sm:$0xff]  ;;  %vm1227_vm0 = vcmask 1041408   ;;  %vm1229_vm1 = vcmask 1042432  }
 0x520   :  { %v1048_v35 = vsub.f32 1.0, %v1047_v30  ;;  %v1277_v30 = vld [vmem:[#allocation2 + $0x2a8] sm:$0xff]  ;;  %v3630_v6 = vld [vmem:[#allocation5 + $0x230] sm:$0xff] }
 0x521   :  { %1370 = vmatpush.msrb.mxu0 %v1277_v30 }
 0x522   :  { %v1049_v37 = vmul.f32 %v2582_v26, %v1048_v35  ;;  %v3575_v35 = vld [vmem:[#allocation5 + $0x2b8] sm:$0xff] }
 0x523   :  { %v2584_v3 = vpop.eup %2583  ;;  %1371 = vmatpush.msrb.mxu0 %v1274_v1  ;;  %v3643_v1 = vld [vmem:[#allocation5 + $0x1b0] sm:$0xff] }
 0x524   :  { %v1050_v10 = vadd.f32 %v2582_v26, %v1049_v37  ;;  %v1070_v13 = vmul.f32 %v2584_v3, %v1068_v22  ;;  %vm1075_vm4 = vweird.f32 %v2584_v3  ;;  %v3572_v22 = vld [vmem:[#allocation5 + $0x2d0] sm:$0xff]  ;;  %4391 = vst [vmem:[#allocation14_spill] sm:$0xff] %v3643_v1 }
 0x525   :  { %vm1076_vm6 = vmor %vm1074_vm5, %vm1075_vm4  ;;  %1409 = vmatpush.msrb.mxu2 %v3572_v22  ;;  %vm1233_vm4 = vcmask 1044480   ;;  %vm1235_vm5 = vcmask 1045504  }
 0x526   :  { %v1054_v53 = vsel %vm1053_vm2, %v2582_v26, %v1050_v10  ;;  %v1071_v34 = vsub.f32 1.0, %v1070_v13  ;;  %v1243_v26 = vld [vmem:[#allocation2 + $0x198] sm:$0xff]  ;;  %v3578_v10 = vld [vmem:[#allocation5 + $0x2a0] sm:$0xff] }
 0x527   :  { %v1059_v50 = vsel %vm1056_vm3, %v1058_v19, %v1054_v53  ;;  %1361 = vmatpush.msra.mxu3 %v1243_v26  ;;  %1410 = vmatpush.msrb.mxu2 %v3575_v35  ;;  %v3580_v53 = vld [vmem:[#allocation5 + $0x2f0] sm:$0xff]  ;;  %v1248_v26 = vld [vmem:[#allocation2 + $0x1c0] sm:$0xff]  ;;  %vm1231_vm3 = vcmask 1043456  }
 0x528   :  { %v1088_v25 = vmul.f32 %v1086_v48, %v1059_v50  ;;  %v1072_v15 = vmul.f32 %v2584_v3, %v1071_v34  ;;  %v1271_v48 = vld [vmem:[#allocation2 + $0x278] sm:$0xff]  ;;  %v1272_v50 = vld [vmem:[#allocation2 + $0x280] sm:$0xff] }
 0x529   :  { %1362 = vmatpush.msra.mxu3 %v1240_v36  ;;  %1411 = vmatpush.msrb.mxu2 %v3578_v10  ;;  %v3639_v36 = vld [vmem:[#allocation5 + $0x218] sm:$0xff] }
 0x52a   :  { %v1089_v38 = vadd.f32 %v1088_v25, %v3251_v49  ;;  %v1073_v42 = vadd.f32 %v2584_v3, %v1072_v15  ;;  %v3584_v25 = vld [vmem:[#allocation5 + $0x288] sm:$0xff]  ;;  %1372 = vmatpush.msrb.mxu0 %v1271_v48  ;;  %v3588_v15 = vld [vmem:[#allocation5 + $0x2d8] sm:$0xff] }
 0x52b   :  { %1428 = vmatpush.msrb.mxu3 %v3580_v53  ;;  %1412 = vmatpush.msrb.mxu2 %v3584_v25  ;;  %v3650_v48 = vld [vmem:[#allocation5 + $0x198] sm:$0xff] }
 0x52c   :  { %2585 = vtanh.f32 %v1089_v38  ;;  %v1077_v0 = vsel %vm1076_vm6, %v2584_v3, %v1073_v42  ;;  %v1275_v3 = vld [vmem:[#allocation2 + $0x298] sm:$0xff]  ;;  %v1268_v42 = vld [vmem:[#allocation2 + $0x260] sm:$0xff]  ;;  %4392 = vst [vmem:[#allocation17_spill] sm:$0xff] %v3650_v48  ;;  %vm1237_vm6 = vcmask 1046528  }
 0x52d   :  { %v1082_v44 = vsel %vm1079_vm7, %v1081_v47, %v1077_v0  ;;  %1391 = vmatpush.msrb.mxu1 %v1275_v3  ;;  %1429 = vmatpush.msrb.mxu3 %v3588_v15  ;;  %v3598_v0 = vld [vmem:[#allocation5 + $0x258] sm:$0xff]  ;;  %v3600_v47 = vld [vmem:[#allocation5 + $0x2a8] sm:$0xff]  ;;  %v3645_v3 = vld [vmem:[#allocation5 + $0x200] sm:$0xff] }
 0x52e   :  { %1373 = vmatpush.msrb.mxu0 %v1268_v42  ;;  %1413 = vmatpush.msrb.mxu2 %v3592_v61 }
 0x52f   :  { %1392 = vmatpush.msrb.mxu1 %v1272_v50  ;;  %v3652_v50 = vld [vmem:[#allocation5 + $0x1e8] sm:$0xff] }
 0x530   :  { %1414 = vmatpush.msrb.mxu2 %v3598_v0 }
 0x532   :  { %v2586_v46 = vpop.eup %2585 }
 0x533   :  { %v1092_v45 = vrot.slane %v2586_v46, 1 }
 0x535   :  { %v1094_v57 = vsub.f32 %v3553_v51, %v1092_v45 }
 0x537   :  { %v1096_v23 = vrot.slane %v1094_v57, 7  ;;  %v3594_v57 = vld [vmem:[#allocation5 + $0x2c0] sm:$0xff] }
 0x538   :  { %1430 = vmatpush.msrb.mxu3 %v3594_v57 }
 0x539   :  { %v1098_v41 = vmul.f32 %v1096_v23, %v1082_v44  ;;  %v1262_v23 = vld [vmem:[#allocation2 + $0x230] sm:$0xff]  ;;  %v1263_v44 = vld [vmem:[#allocation2 + $0x238] sm:$0xff] }
 0x53a   :  { %1431 = vmatpush.msrb.mxu3 %v3600_v47 }
 0x53b   :  { %v3566_v58 = vadd.f32 %v2586_v46, %v1098_v41  ;;  %v1269_v46 = vld [vmem:[#allocation2 + $0x268] sm:$0xff]  ;;  %v3604_v41 = vld [vmem:[#allocation5 + $0x240] sm:$0xff] }
 0x53c   :  { %1393 = vmatpush.msrb.mxu1 %v1269_v46  ;;  %1415 = vmatpush.msrb.mxu2 %v3604_v41  ;;  %v3659_v46 = vld [vmem:[#allocation5 + $0x180] sm:$0xff] }
 0x53d   :  { %v1101_v55 = vrot.slane %v3566_v58, 6  ;;  %4393 = vst [vmem:[#allocation12_spill] sm:$0xff] %v3659_v46 }
 0x53e   :  { %1416 = vmatpush.msrb.mxu2 %v3610_v20 }
 0x53f   :  { %1119 = vmatmul.f32.vlgmr.msra.gmra.mxu0 %v1101_v55  ;;  %1139 = vmatmul.f32.vlgmr.msra.gmra.mxu1 %v1101_v55 }
 0x540   :  { %1159 = vmatmul.f32.vlgmr.msra.gmra.mxu2 %v1101_v55  ;;  %v3606_v55 = vld [vmem:[#allocation5 + $0x290] sm:$0xff] }
 0x541   :  { %1432 = vmatpush.msrb.mxu3 %v3606_v55  ;;  %1417 = vmatpush.msrb.mxu2 %v3616_v33 }
 0x543   :  { %1433 = vmatpush.msrb.mxu3 %v3612_v24  ;;  %1418 = vmatpush.msrb.mxu2 %v3624_v63 }
 0x545   :  { %1434 = vmatpush.msrb.mxu3 %v3618_v52  ;;  %1419 = vmatpush.msrb.mxu2 %v3628_v11 }
 0x547   :  { %1435 = vmatpush.msrb.mxu3 %v3626_v2  ;;  %1420 = vmatpush.msrb.mxu2 %v3637_v32 }
 0x549   :  { %1436 = vmatpush.msrb.mxu3 %v3630_v6  ;;  %1421 = vmatpush.msrb.mxu2 %v3643_v1 }
 0x54b   :  { %1437 = vmatpush.msrb.mxu3 %v3639_v36  ;;  %1422 = vmatpush.msrb.mxu2 %v3650_v48 }
 0x54d   :  { %1438 = vmatpush.msrb.mxu3 %v3645_v3  ;;  %1423 = vmatpush.msrb.mxu2 %v3659_v46 }
 0x54f   :  { %1439 = vmatpush.msrb.mxu3 %v3652_v50  ;;  %1535 = vmatpush.msra.mxu2 %v3580_v53 }
 0x551   :  { %1536 = vmatpush.msra.mxu2 %v3588_v15 }
 0x553   :  { %1537 = vmatpush.msra.mxu2 %v3594_v57 }
 0x555   :  { %1538 = vmatpush.msra.mxu2 %v3600_v47 }
 0x557   :  { %1539 = vmatpush.msra.mxu2 %v3606_v55 }
 0x559   :  { %1540 = vmatpush.msra.mxu2 %v3612_v24 }
 0x55b   :  { %1541 = vmatpush.msra.mxu2 %v3618_v52 }
 0x55d   :  { %1542 = vmatpush.msra.mxu2 %v3626_v2 }
 0x55f   :  { %1543 = vmatpush.msra.mxu2 %v3630_v6 }
 0x561   :  { %1544 = vmatpush.msra.mxu2 %v3639_v36 }
 0x563   :  { %1545 = vmatpush.msra.mxu2 %v3645_v3 }
 0x565   :  { %1546 = vmatpush.msra.mxu2 %v3652_v50 }
 0x5bc   :  { %v1120_v37 = vpop.f32.mrf.mxu0  ;;  %v1140_v40 = vpop.f32.mrf.mxu1 }
 0x5bd   :  { %v1164_v13 = vrot.slane %v1120_v37, 1  ;;  %v1187_v19 = vrot.slane %v1140_v40, 1  ;;  %v1244_v37 = vld [vmem:[#allocation2 + $0x1a0] sm:$0xff]  ;;  %v1245_v40 = vld [vmem:[#allocation2 + $0x1a8] sm:$0xff] }
 0x5bf   :  { %v1166_v34 = vadd.f32 %v1164_v13, %v4388_v29  ;;  %v1189_v38 = vadd.f32 %v1187_v19, %v4389_v39  ;;  %v1265_v29 = vld [vmem:[#allocation2 + $0x248] sm:$0xff]  ;;  %v1266_v39 = vld [vmem:[#allocation2 + $0x250] sm:$0xff] }
 0x5c0   :  { %1374 = vmatpush.msrb.mxu0 %v1265_v29  ;;  %1394 = vmatpush.msrb.mxu1 %v1266_v39  ;;  %v1241_v13 = vld [vmem:[#allocation2 + $0x188] sm:$0xff]  ;;  %v1242_v19 = vld [vmem:[#allocation2 + $0x190] sm:$0xff]  ;;  %v3666_v29 = vld [vmem:[%s4311_s1 + $0x1] sm:$0x1] }
 0x5c1   :  { %v2489_v45 = vmul.f32 -1.442695, %v1166_v34  ;;  %v2490_v17 = vmul.f32 -1.442695, %v1189_v38  ;;  %v3668_v39 = vld [vmem:[#allocation5 + $0x1b8] sm:$0xff]  ;;  %1424 = vmatmul.f32.vlgmr.msrb.gmra.mxu2 %v3666_v29 }
 0x5c2   :  { %1375 = vmatpush.msrb.mxu0 %v1262_v23  ;;  %1395 = vmatpush.msrb.mxu1 %v1263_v44  ;;  %4394 = vst [vmem:[#allocation15_spill] sm:$0xff] %v3668_v39  ;;  %v3674_v44 = vld [vmem:[#allocation5 + $0x2f8] sm:$0xff] }
 0x5c3   :  { %2587 = vpow2.f32 %v2489_v45  ;;  %v1160_v42 = vpop.f32.mrf.mxu2  ;;  %v3661_v45 = vld [vmem:[#allocation5 + $0x1d0] sm:$0xff] }
 0x5c4   :  { %2589 = vpow2.f32 %v2490_v17  ;;  %1376 = vmatpush.msrb.mxu0 %v1259_v9  ;;  %1396 = vmatpush.msrb.mxu1 %v1260_v54 }
 0x5c5   :  { %1440 = vmatpush.msrb.mxu3 %v3661_v45  ;;  %1547 = vmatpush.msra.mxu2 %v3661_v45 }
 0x5c6   :  { %1377 = vmatpush.msrb.mxu0 %v1256_v28  ;;  %1397 = vmatpush.msrb.mxu1 %v1257_v31  ;;  %v1209_v31 = vadd.f32 %v3561_v43, %v1160_v42  ;;  %v3716_v42 = vld [vmem:[#allocation5 + $0x268] sm:$0xff] }
 0x5c7   :  { %1441 = vmatpush.msrb.mxu3 %v3668_v39  ;;  %1548 = vmatpush.msra.mxu2 %v3668_v39 }
 0x5c8   :  { %1378 = vmatpush.msrb.mxu0 %v1253_v60  ;;  %1398 = vmatpush.msrb.mxu1 %v1254_v56  ;;  %v3684_v60 = vld [vmem:[#allocation5 + $0x2e0] sm:$0xff] }
 0x5c9   :  { %v2588_v27 = vpop.eup %2587 }
 0x5ca   :  { %v2590_v59 = vpop.eup %2589  ;;  %v3620_v62 = vadd.f32 1.0, %v2588_v27  ;;  %1379 = vmatpush.msrb.mxu0 %v1250_v4  ;;  %1399 = vmatpush.msrb.mxu1 %v1251_v7  ;;  %v3681_v27 = vld [vmem:[#allocation5 + $0x1a0] sm:$0xff] }
 0x5cb   :  { %v3635_v30 = vadd.f32 1.0, %v2590_v59  ;;  %4395 = vst [vmem:[#allocation18_spill] sm:$0xff] %v3681_v27  ;;  %v3689_v59 = vld [vmem:[#allocation5 + $0x188] sm:$0xff]  ;;  %1442 = vmatpush.msrb.mxu3 %v3681_v27  ;;  %1549 = vmatpush.msra.mxu2 %v3681_v27 }
 0x5cc   :  { %2591 = vrcp.f32 %v3620_v62  ;;  %1380 = vmatpush.msrb.mxu0 %v1247_v12  ;;  %1400 = vmatpush.msrb.mxu1 %v1248_v26  ;;  %v1182_v23 = vand.u32 2147483648, %v3620_v62  ;;  %v1180_v28 = vand.u32 2147483647, %v3620_v62  ;;  %vm1176_vm9 = vweird.f32 %v3620_v62  ;;  %4396 = vst [vmem:[#allocation13_spill] sm:$0xff] %v3689_v59  ;;  %v3700_v26 = vld [vmem:[#allocation5 + $0x2b0] sm:$0xff] }
 0x5cd   :  { %2593 = vrcp.f32 %v3635_v30  ;;  %v1211_v12 = vrot.slane %v1209_v31, 1  ;;  %1443 = vmatpush.msrb.mxu3 %v3689_v59  ;;  %v1205_v31 = vand.u32 2147483648, %v3635_v30  ;;  %vm1199_vm13 = vweird.f32 %v3635_v30  ;;  %1550 = vmatpush.msra.mxu2 %v3689_v59 }
 0x5ce   :  { %1381 = vmatpush.msrb.mxu0 %v1244_v37  ;;  %1401 = vmatpush.msrb.mxu1 %v1245_v40  ;;  %v1183_v4 = vor.u32 1.1754944e-38, %v1182_v23  ;;  %vm1181_vm11 = vcmp.eq.f32.partialorder %v1180_v28, 8.507059e+37  ;;  %v3727_v23 = vld [vmem:[#allocation5 + $0x238] sm:$0xff] }
 0x5cf   :  { %1680 = vmatpush.msrb.mxu2 %v3674_v44 }
 0x5d0   :  { %1382 = vmatpush.msrb.mxu0 %v1241_v13  ;;  %1402 = vmatpush.msrb.mxu1 %v1242_v19  ;;  %v3705_v13 = vld [vmem:[#allocation5 + $0x298] sm:$0xff] }
 0x5d1   :  { %1681 = vmatpush.msrb.mxu2 %v3684_v60 }
 0x5d2   :  { %v2592_v34 = vpop.eup %2591  ;;  %1515 = vmatpush.msra.mxu1 %v3569_v8  ;;  %1448 = vmatpush.msra.mxu0 %v3674_v44 }
 0x5d3   :  { %v1172_v38 = vmul.f32 %v2592_v34, %v3620_v62  ;;  %v3676_v9 = vpop.eup %2593  ;;  %vm1177_vm8 = vweird.f32 %v2592_v34  ;;  %v3698_v62 = vld [vmem:[#allocation5 + $0x2c8] sm:$0xff] }
 0x5d4   :  { %1449 = vmatpush.msra.mxu0 %v3684_v60  ;;  %1516 = vmatpush.msra.mxu1 %v3572_v22  ;;  %v1195_v43 = vmul.f32 %v3676_v9, %v3635_v30  ;;  %vm1178_vm10 = vmor %vm1176_vm9, %vm1177_vm8  ;;  %vm1200_vm12 = vweird.f32 %v3676_v9 }
 0x5d5   :  { %v1173_v17 = vsub.f32 1.0, %v1172_v38  ;;  %v3711_v38 = vld [vmem:[#allocation5 + $0x280] sm:$0xff]  ;;  %vm3742_vm15 = vmor %vm1199_vm13, %vm1200_vm12  ;;  %1682 = vmatpush.msrb.mxu2 %v3698_v62 }
 0x5d6   :  { %1517 = vmatpush.msra.mxu1 %v3575_v35  ;;  %1450 = vmatpush.msra.mxu0 %v3698_v62  ;;  %v1196_v19 = vsub.f32 1.0, %v1195_v43 }
 0x5d7   :  { %v1174_v54 = vmul.f32 %v2592_v34, %v1173_v17  ;;  %1683 = vmatpush.msrb.mxu2 %v3700_v26 }
 0x5d8   :  { %1518 = vmatpush.msra.mxu1 %v3578_v10  ;;  %1451 = vmatpush.msra.mxu0 %v3700_v26  ;;  %v1197_v17 = vmul.f32 %v3676_v9, %v1196_v19  ;;  %v3755_v19 = vld [vmem:[#allocation5 + $0x1f0] sm:$0xff] }
 0x5d9   :  { %v1175_v56 = vadd.f32 %v2592_v34, %v1174_v54  ;;  %1684 = vmatpush.msrb.mxu2 %v3705_v13 }
 0x5da   :  { %1519 = vmatpush.msra.mxu1 %v3584_v25  ;;  %1452 = vmatpush.msra.mxu0 %v3705_v13  ;;  %v1198_v54 = vadd.f32 %v3676_v9, %v1197_v17 }
 0x5db   :  { %v1179_v7 = vsel %vm1178_vm10, %v2592_v34, %v1175_v56  ;;  %v3735_v56 = vld [vmem:[#allocation5 + $0x220] sm:$0xff]  ;;  %1685 = vmatpush.msrb.mxu2 %v3711_v38 }
 0x5dc   :  { %v1184_v37 = vsel %vm1181_vm11, %v1183_v4, %v1179_v7  ;;  %1520 = vmatpush.msra.mxu1 %v3592_v61  ;;  %1453 = vmatpush.msra.mxu0 %v3711_v38  ;;  %v1203_v4 = vand.u32 2147483647, %v3635_v30  ;;  %v1206_v30 = vor.u32 1.1754944e-38, %v1205_v31  ;;  %v3765_v31 = vld [vmem:[#allocation5 + $0x1d8] sm:$0xff] }
 0x5dd   :  { %v1213_v40 = vmul.f32 %v1211_v12, %v1184_v37  ;;  %v3746_v12 = vld [vmem:[#allocation5 + $0x208] sm:$0xff]  ;;  %v1202_v37 = vsel %vm3742_vm15, %v3676_v9, %v1198_v54  ;;  %1686 = vmatpush.msrb.mxu2 %v3716_v42 }
 0x5de   :  { %1521 = vmatpush.msra.mxu1 %v3598_v0  ;;  %1454 = vmatpush.msra.mxu0 %v3716_v42  ;;  %vm1204_vm2 = vcmp.eq.f32.partialorder %v1203_v4, 8.507059e+37  ;;  %v3774_v4 = vld [vmem:[#allocation5 + $0x1c0] sm:$0xff] }
 0x5df   :  { %v1214_v34 = vadd.f32 %v1213_v40, %v3251_v49  ;;  %v3722_v49 = vld [vmem:[#allocation5 + $0x250] sm:$0xff]  ;;  %v1207_v9 = vsel %vm1204_vm2, %v1206_v30, %v1202_v37  ;;  %v3785_v37 = vld [vmem:[#allocation5 + $0x1a8] sm:$0xff] }
 0x5e0   :  { %1522 = vmatpush.msra.mxu1 %v3604_v41  ;;  %1455 = vmatpush.msra.mxu0 %v3722_v49  ;;  %4400 = vst [vmem:[#allocation19_spill] sm:$0xff] %v3785_v37 }
 0x5e1   :  { %2595 = vtanh.f32 %v1214_v34  ;;  %v1226_v34 = vsel %vm1225_vm14, %v3255_v18, %v3313_v5  ;;  %1687 = vmatpush.msrb.mxu2 %v3722_v49 }
 0x5e2   :  { %1523 = vmatpush.msra.mxu1 %v3610_v20  ;;  %1456 = vmatpush.msra.mxu0 %v3727_v23  ;;  %v1228_v54 = vsel %vm1227_vm0, %v1226_v34, %v3369_v14 }
 0x5e3   :  { %v1230_v18 = vsel %vm1229_vm1, %v1228_v54, %v3457_v21  ;;  %1688 = vmatpush.msrb.mxu2 %v3727_v23 }
 0x5e4   :  { %1524 = vmatpush.msra.mxu1 %v3616_v33  ;;  %1457 = vmatpush.msra.mxu0 %v3735_v56  ;;  %v1232_v5 = vsel %vm1231_vm3, %v1230_v18, %v3529_v16 }
 0x5e5   :  { %v1234_v7 = vsel %vm1233_vm4, %v1232_v5, %v3553_v51  ;;  %1689 = vmatpush.msrb.mxu2 %v3735_v56  ;;  %v2491_v51 = vld [vmem:[%s4314_s4 + $0x1] ss:$2 sm:$0x7] }
 0x5e6   :  { %1525 = vmatpush.msra.mxu1 %v3624_v63  ;;  %1458 = vmatpush.msra.mxu0 %v3746_v12  ;;  %v1236_v21 = vsel %vm1235_vm5, %v1234_v7, %v3566_v58 }
 0x5e7   :  { %v2596_v28 = vpop.eup %2595  ;;  %1690 = vmatpush.msrb.mxu2 %v3746_v12 }
 0x5e8   :  { %v1217_v43 = vrot.slane %v2596_v28, 1  ;;  %1526 = vmatpush.msra.mxu1 %v3628_v11  ;;  %1459 = vmatpush.msra.mxu0 %v3755_v19 }
 0x5e9   :  { %1691 = vmatpush.msrb.mxu2 %v3755_v19 }
 0x5ea   :  { %v1219_v40 = vsub.f32 %v3566_v58, %v1217_v43  ;;  %1527 = vmatpush.msra.mxu1 %v3637_v32  ;;  %1460 = vmatpush.msra.mxu0 %v3765_v31  ;;  %v1341_v58 = vperm.slane %v2491_v51, 0 }
 0x5eb   :  { %1692 = vmatpush.msrb.mxu2 %v3765_v31 }
 0x5ec   :  { %v1221_v17 = vrot.slane %v1219_v40, 7  ;;  %1528 = vmatpush.msra.mxu1 %v3643_v1  ;;  %1461 = vmatpush.msra.mxu0 %v3774_v4 }
 0x5ed   :  { %1693 = vmatpush.msrb.mxu2 %v3774_v4 }
 0x5ee   :  { %v1223_v43 = vmul.f32 %v1221_v17, %v1207_v9  ;;  %1462 = vmatpush.msra.mxu0 %v3785_v37  ;;  %1529 = vmatpush.msra.mxu1 %v3650_v48  ;;  %v1342_v17 = vperm.slane %v2491_v51, 1 }
 0x5ef   :  { %1694 = vmatpush.msrb.mxu2 %v3785_v37 }
 0x5f0   :  { %v3778_v14 = vadd.f32 %v2596_v28, %v1223_v43  ;;  %v3792_v28 = vld [vmem:[#allocation5 + $0x190] sm:$0xff]  ;;  %1530 = vmatpush.msra.mxu1 %v3659_v46 }
 0x5f1   :  { %4401 = vst [vmem:[#allocation20_spill] sm:$0xff] %v3792_v28  ;;  %1463 = vmatpush.msra.mxu0 %v3792_v28  ;;  %1695 = vmatpush.msrb.mxu2 %v3792_v28 }
 0x5f2   :  { %4399 = vst [vmem:[#allocation16_spill] sm:$0xff] %v3778_v14  ;;  %v1238_v16 = vsel %vm1237_vm6, %v1236_v21, %v3778_v14 }
 0x5f3   :  { %1363 = vmatmul.f32.vlgmr.msra.gmra.mxu3 %v1238_v16  ;;  %1383 = vmatmul.f32.vlgmr.msrb.gmra.mxu0 %v1238_v16 }
 0x5f4   :  { %1403 = vmatmul.f32.vlgmr.msrb.gmra.mxu1 %v1238_v16  ;;  %1555 = vmatpush.msra.mxu3 %v3674_v44 }
 0x5f5   :  { %1640 = vmatpush.msrb.mxu0 %v3569_v8  ;;  %1660 = vmatpush.msrb.mxu1 %v3580_v53 }
 0x5f6   :  { %1556 = vmatpush.msra.mxu3 %v3684_v60 }
 0x5f7   :  { %1641 = vmatpush.msrb.mxu0 %v3572_v22  ;;  %1661 = vmatpush.msrb.mxu1 %v3588_v15 }
 0x5f8   :  { %1557 = vmatpush.msra.mxu3 %v3698_v62 }
 0x5f9   :  { %1642 = vmatpush.msrb.mxu0 %v3575_v35  ;;  %1662 = vmatpush.msrb.mxu1 %v3594_v57 }
 0x5fa   :  { %1558 = vmatpush.msra.mxu3 %v3700_v26 }
 0x5fb   :  { %1444 = vmatmul.f32.vlgmr.msrb.gmra.mxu3 %v3666_v29  ;;  %1464 = vmatmul.f32.vlgmr.msra.gmra.mxu0 %v3666_v29 }
 0x5fc   :  { %1559 = vmatpush.msra.mxu3 %v3705_v13  ;;  %1643 = vmatpush.msrb.mxu0 %v3578_v10 }
 0x5fd   :  { %1663 = vmatpush.msrb.mxu1 %v3600_v47 }
 0x5fe   :  { %1560 = vmatpush.msra.mxu3 %v3711_v38  ;;  %1644 = vmatpush.msrb.mxu0 %v3584_v25 }
 0x5ff   :  { %1664 = vmatpush.msrb.mxu1 %v3606_v55 }
 0x600   :  { %1561 = vmatpush.msra.mxu3 %v3716_v42  ;;  %1645 = vmatpush.msrb.mxu0 %v3592_v61 }
 0x601   :  { %1665 = vmatpush.msrb.mxu1 %v3612_v24 }
 0x602   :  { %1562 = vmatpush.msra.mxu3 %v3722_v49  ;;  %1646 = vmatpush.msrb.mxu0 %v3598_v0 }
 0x603   :  { %1666 = vmatpush.msrb.mxu1 %v3618_v52 }
 0x604   :  { %1563 = vmatpush.msra.mxu3 %v3727_v23  ;;  %1647 = vmatpush.msrb.mxu0 %v3604_v41 }
 0x605   :  { %1667 = vmatpush.msrb.mxu1 %v3626_v2 }
 0x606   :  { %1564 = vmatpush.msra.mxu3 %v3735_v56  ;;  %1648 = vmatpush.msrb.mxu0 %v3610_v20 }
 0x607   :  { %1668 = vmatpush.msrb.mxu1 %v3630_v6 }
 0x608   :  { %1565 = vmatpush.msra.mxu3 %v3746_v12  ;;  %1649 = vmatpush.msrb.mxu0 %v3616_v33 }
 0x609   :  { %1669 = vmatpush.msrb.mxu1 %v3639_v36 }
 0x60a   :  { %1566 = vmatpush.msra.mxu3 %v3755_v19  ;;  %1650 = vmatpush.msrb.mxu0 %v3624_v63 }
 0x60b   :  { %1670 = vmatpush.msrb.mxu1 %v3645_v3 }
 0x60c   :  { %1567 = vmatpush.msra.mxu3 %v3765_v31  ;;  %1651 = vmatpush.msrb.mxu0 %v3628_v11 }
 0x60d   :  { %1671 = vmatpush.msrb.mxu1 %v3652_v50 }
 0x60e   :  { %1568 = vmatpush.msra.mxu3 %v3774_v4  ;;  %1652 = vmatpush.msrb.mxu0 %v3637_v32 }
 0x60f   :  { %1672 = vmatpush.msrb.mxu1 %v3661_v45 }
 0x610   :  { %1569 = vmatpush.msra.mxu3 %v3785_v37  ;;  %1653 = vmatpush.msrb.mxu0 %v3643_v1 }
 0x611   :  { %1673 = vmatpush.msrb.mxu1 %v3668_v39 }
 0x612   :  { %1570 = vmatpush.msra.mxu3 %v3792_v28  ;;  %1654 = vmatpush.msrb.mxu0 %v3650_v48 }
 0x613   :  { %1674 = vmatpush.msrb.mxu1 %v3681_v27 }
 0x614   :  { %1765 = vmatpush.msrb.mxu3 %v3569_v8  ;;  %1655 = vmatpush.msrb.mxu0 %v3659_v46 }
 0x615   :  { %1675 = vmatpush.msrb.mxu1 %v3689_v59 }
 0x616   :  { %1766 = vmatpush.msrb.mxu3 %v3572_v22  ;;  %1785 = vmatpush.msra.mxu0 %v3580_v53 }
 0x618   :  { %1767 = vmatpush.msrb.mxu3 %v3575_v35  ;;  %1786 = vmatpush.msra.mxu0 %v3588_v15 }
 0x61a   :  { %1768 = vmatpush.msrb.mxu3 %v3578_v10  ;;  %1787 = vmatpush.msra.mxu0 %v3594_v57 }
 0x61c   :  { %1769 = vmatpush.msrb.mxu3 %v3584_v25  ;;  %1788 = vmatpush.msra.mxu0 %v3600_v47 }
 0x61e   :  { %1770 = vmatpush.msrb.mxu3 %v3592_v61  ;;  %1789 = vmatpush.msra.mxu0 %v3606_v55 }
 0x620   :  { %1771 = vmatpush.msrb.mxu3 %v3598_v0  ;;  %1790 = vmatpush.msra.mxu0 %v3612_v24 }
 0x622   :  { %1772 = vmatpush.msrb.mxu3 %v3604_v41  ;;  %1791 = vmatpush.msra.mxu0 %v3618_v52 }
 0x624   :  { %1773 = vmatpush.msrb.mxu3 %v3610_v20  ;;  %1792 = vmatpush.msra.mxu0 %v3626_v2 }
 0x626   :  { %1774 = vmatpush.msrb.mxu3 %v3616_v33  ;;  %1793 = vmatpush.msra.mxu0 %v3630_v6 }
 0x628   :  { %1775 = vmatpush.msrb.mxu3 %v3624_v63  ;;  %1794 = vmatpush.msra.mxu0 %v3639_v36 }
 0x62a   :  { %1776 = vmatpush.msrb.mxu3 %v3628_v11  ;;  %1795 = vmatpush.msra.mxu0 %v3645_v3 }
 0x62c   :  { %1777 = vmatpush.msrb.mxu3 %v3637_v32  ;;  %1796 = vmatpush.msra.mxu0 %v3652_v50 }
 0x62e   :  { %1778 = vmatpush.msrb.mxu3 %v3643_v1  ;;  %1797 = vmatpush.msra.mxu0 %v3661_v45 }
 0x630   :  { %1779 = vmatpush.msrb.mxu3 %v3650_v48  ;;  %1798 = vmatpush.msra.mxu0 %v3668_v39 }
 0x632   :  { %1780 = vmatpush.msrb.mxu3 %v3659_v46  ;;  %1799 = vmatpush.msra.mxu0 %v3681_v27 }
 0x634   :  { %1800 = vmatpush.msra.mxu0 %v3689_v59 }
 0x644   :  { %v1425_v30 = vpop.f32.mrf.mxu2 }
 0x670   :  { %v1384_v54 = vpop.f32.mrf.mxu0 }
 0x671   :  { %v3905_v18 = vadd.f32 %v1384_v54, %v1342_v17 }
 0x673   :  { %4403 = vst [vmem:[#allocation22_spill] sm:$0xff] %v3905_v18 }
 0x676   :  { %v1364_v40 = vpop.f32.mrf.mxu3 }
 0x677   :  { %v3902_v34 = vadd.f32 %v1364_v40, %v1341_v58 }
 0x678   :  { %v1465_v17 = vpop.f32.mrf.mxu0 }
 0x679   :  { %4402 = vst [vmem:[#allocation21_spill] sm:$0xff] %v3902_v34  ;;  %v1468_v9 = vadd.f32 %v1425_v30, %v3902_v34  ;;  %v3911_v30 = vld [vmem:[%s4315_s5 + $0x1] sm:$0x1] }
 0x67a   :  { %4404 = vst [vmem:[#allocation23_spill] sm:$0xff] %v3911_v30 }
 0x67b   :  { %v2492_v43 = vmul.f32 -1.442695, %v1468_v9 }
 0x67d   :  { %2597 = vpow2.f32 %v2492_v43 }
 0x67e   :  { %v1445_v5 = vpop.f32.mrf.mxu3 }
 0x67f   :  { %v1488_v7 = vadd.f32 %v1445_v5, %v3905_v18  ;;  %v1404_v18 = vpop.f32.mrf.mxu1 }
 0x681   :  { %v2493_v21 = vmul.f32 -1.442695, %v1488_v7  ;;  %v1343_v7 = vperm.slane %v2491_v51, 2 }
 0x683   :  { %v2598_v16 = vpop.eup %2597  ;;  %2599 = vpow2.f32 %v2493_v21  ;;  %v3914_v37 = vadd.f32 %v1404_v18, %v1343_v7 }
 0x684   :  { %v1472_v14 = vadd.f32 1.0, %v2598_v16 }
 0x686   :  { %2601 = vrcp.f32 %v1472_v14  ;;  %v1484_v9 = vand.u32 2147483648, %v1472_v14  ;;  %v1482_v43 = vand.u32 2147483647, %v1472_v14  ;;  %vm1478_vm8 = vweird.f32 %v1472_v14 }
 0x688   :  { %vm1483_vm10 = vcmp.eq.f32.partialorder %v1482_v43, 8.507059e+37 }
 0x689   :  { %v2600_v59 = vpop.eup %2599 }
 0x68a   :  { %v1492_v46 = vadd.f32 1.0, %v2600_v59  ;;  %v1508_v59 = vadd.f32 %v1465_v17, %v3911_v30 }
 0x68c   :  { %v2602_v58 = vpop.eup %2601  ;;  %2603 = vrcp.f32 %v1492_v46  ;;  %vm1498_vm12 = vweird.f32 %v1492_v46 }
 0x68d   :  { %v1474_v40 = vmul.f32 %v2602_v58, %v1472_v14  ;;  %vm1479_vm7 = vweird.f32 %v2602_v58  ;;  %v1502_v14 = vand.u32 2147483647, %v1492_v46 }
 0x68e   :  { %vm1480_vm9 = vmor %vm1478_vm8, %vm1479_vm7 }
 0x68f   :  { %v1475_v28 = vsub.f32 1.0, %v1474_v40  ;;  %v1485_v40 = vor.u32 1.1754944e-38, %v1484_v9  ;;  %vm1503_vm15 = vcmp.eq.f32.partialorder %v1502_v14, 8.507059e+37 }
 0x691   :  { %v1476_v54 = vmul.f32 %v2602_v58, %v1475_v28 }
 0x692   :  { %v2604_v5 = vpop.eup %2603 }
 0x693   :  { %v1494_v21 = vmul.f32 %v2604_v5, %v1492_v46  ;;  %v1477_v16 = vadd.f32 %v2602_v58, %v1476_v54  ;;  %vm1499_vm11 = vweird.f32 %v2604_v5  ;;  %v1504_v54 = vand.u32 2147483648, %v1492_v46  ;;  %v4412_v46 = vld [vmem:[#allocation13_spill] sm:$0xff] }
 0x694   :  { %vm1500_vm13 = vmor %vm1498_vm12, %vm1499_vm11 }
 0x695   :  { %v1495_v34 = vsub.f32 1.0, %v1494_v21  ;;  %v1481_v27 = vsel %vm1480_vm9, %v2602_v58, %v1477_v16  ;;  %v1505_v9 = vor.u32 1.1754944e-38, %v1504_v54  ;;  %v4414_v16 = vld [vmem:[#allocation22_spill] sm:$0xff] }
 0x696   :  { %v1486_v48 = vsel %vm1483_vm10, %v1485_v40, %v1481_v27 }
 0x697   :  { %v1509_v39 = vmul.f32 %v1508_v59, %v1486_v48  ;;  %v1496_v28 = vmul.f32 %v2604_v5, %v1495_v34  ;;  %v4411_v48 = vld [vmem:[#allocation12_spill] sm:$0xff]  ;;  %v4413_v34 = vld [vmem:[#allocation21_spill] sm:$0xff] }
 0x699   :  { %v1510_v1 = vadd.f32 %v1509_v39, %v3914_v37  ;;  %v1497_v51 = vadd.f32 %v2604_v5, %v1496_v28 }
 0x69b   :  { %2605 = vtanh.f32 %v1510_v1  ;;  %v1501_v17 = vsel %vm1500_vm13, %v2604_v5, %v1497_v51  ;;  %v4410_v1 = vld [vmem:[#allocation20_spill] sm:$0xff] }
 0x69c   :  { %v1506_v27 = vsel %vm1503_vm15, %v1505_v9, %v1501_v17 }
 0x6a1   :  { %v2606_v30 = vpop.eup %2605 }
 0x6a2   :  { %v1512_v58 = vsub.f32 %v3666_v29, %v2606_v30 }
 0x6a4   :  { %v1513_v18 = vmul.f32 %v1512_v58, %v1506_v27 }
 0x6a6   :  { %v3918_v43 = vadd.f32 %v2606_v30, %v1513_v18 }
 0x6a8   :  { %1531 = vmatmul.f32.vlgmr.msra.gmra.mxu1 %v3918_v43  ;;  %1551 = vmatmul.f32.vlgmr.msra.gmra.mxu2 %v3918_v43 }
 0x6a9   :  { %1571 = vmatmul.f32.vlgmr.msra.gmra.mxu3 %v3918_v43  ;;  %1805 = vmatpush.msra.mxu1 %v3674_v44 }
 0x6aa   :  { %1890 = vmatpush.msra.mxu2 %v3569_v8  ;;  %1910 = vmatpush.msra.mxu3 %v3580_v53  ;;  %v4405_v8 = vld [vmem:[#allocation14_spill] sm:$0xff] }
 0x6ab   :  { %1806 = vmatpush.msra.mxu1 %v3684_v60 }
 0x6ac   :  { %1891 = vmatpush.msra.mxu2 %v3572_v22  ;;  %1911 = vmatpush.msra.mxu3 %v3588_v15  ;;  %v4406_v22 = vld [vmem:[#allocation15_spill] sm:$0xff] }
 0x6ad   :  { %1807 = vmatpush.msra.mxu1 %v3698_v62 }
 0x6ae   :  { %1892 = vmatpush.msra.mxu2 %v3575_v35  ;;  %1912 = vmatpush.msra.mxu3 %v3594_v57  ;;  %v4407_v35 = vld [vmem:[#allocation19_spill] sm:$0xff] }
 0x6af   :  { %1808 = vmatpush.msra.mxu1 %v3700_v26 }
 0x6b0   :  { %1893 = vmatpush.msra.mxu2 %v3578_v10  ;;  %1913 = vmatpush.msra.mxu3 %v3600_v47  ;;  %v4408_v10 = vld [vmem:[#allocation17_spill] sm:$0xff] }
 0x6b1   :  { %1809 = vmatpush.msra.mxu1 %v3705_v13 }
 0x6b2   :  { %1894 = vmatpush.msra.mxu2 %v3584_v25  ;;  %1914 = vmatpush.msra.mxu3 %v3606_v55  ;;  %v4409_v25 = vld [vmem:[#allocation18_spill] sm:$0xff] }
 0x6b3   :  { %1810 = vmatpush.msra.mxu1 %v3711_v38 }
 0x6b4   :  { %1895 = vmatpush.msra.mxu2 %v3592_v61  ;;  %1915 = vmatpush.msra.mxu3 %v3612_v24 }
 0x6b5   :  { %1811 = vmatpush.msra.mxu1 %v3716_v42 }
 0x6b6   :  { %1896 = vmatpush.msra.mxu2 %v3598_v0  ;;  %1916 = vmatpush.msra.mxu3 %v3618_v52 }
 0x6b7   :  { %1812 = vmatpush.msra.mxu1 %v3722_v49 }
 0x6b8   :  { %1897 = vmatpush.msra.mxu2 %v3604_v41  ;;  %1917 = vmatpush.msra.mxu3 %v3626_v2 }
 0x6b9   :  { %1813 = vmatpush.msra.mxu1 %v3727_v23 }
 0x6ba   :  { %1898 = vmatpush.msra.mxu2 %v3610_v20  ;;  %1918 = vmatpush.msra.mxu3 %v3630_v6 }
 0x6bb   :  { %1814 = vmatpush.msra.mxu1 %v3735_v56 }
 0x6bc   :  { %1899 = vmatpush.msra.mxu2 %v3616_v33  ;;  %1919 = vmatpush.msra.mxu3 %v3639_v36 }
 0x6bd   :  { %1815 = vmatpush.msra.mxu1 %v3746_v12 }
 0x6be   :  { %1900 = vmatpush.msra.mxu2 %v3624_v63  ;;  %1920 = vmatpush.msra.mxu3 %v3645_v3 }
 0x6bf   :  { %1816 = vmatpush.msra.mxu1 %v3755_v19 }
 0x6c0   :  { %1901 = vmatpush.msra.mxu2 %v3628_v11  ;;  %1921 = vmatpush.msra.mxu3 %v3652_v50 }
 0x6c1   :  { %1817 = vmatpush.msra.mxu1 %v3765_v31 }
 0x6c2   :  { %1902 = vmatpush.msra.mxu2 %v3637_v32  ;;  %1922 = vmatpush.msra.mxu3 %v3661_v45 }
 0x6c3   :  { %1818 = vmatpush.msra.mxu1 %v3774_v4 }
 0x6c4   :  { %1903 = vmatpush.msra.mxu2 %v4405_v8  ;;  %1923 = vmatpush.msra.mxu3 %v4406_v22 }
 0x6c5   :  { %1819 = vmatpush.msra.mxu1 %v4407_v35 }
 0x6c6   :  { %1904 = vmatpush.msra.mxu2 %v4408_v10  ;;  %1924 = vmatpush.msra.mxu3 %v4409_v25 }
 0x6c7   :  { %1820 = vmatpush.msra.mxu1 %v4410_v1 }
 0x6c8   :  { %1905 = vmatpush.msra.mxu2 %v4411_v48  ;;  %1925 = vmatpush.msra.mxu3 %v4412_v46 }
 0x725   :  { %v1532_v29 = vpop.f32.mrf.mxu1 }
 0x726   :  { %v1576_v39 = vrot.slane %v1532_v29, 7 }
 0x728   :  { %v1578_v30 = vadd.f32 %v1576_v39, %v4413_v34 }
 0x72a   :  { %v2494_v5 = vmul.f32 -1.442695, %v1578_v30  ;;  %v4415_v30 = vld [vmem:[#allocation23_spill] sm:$0xff] }
 0x72b   :  { %v1552_v7 = vpop.f32.mrf.mxu2 }
 0x72c   :  { %2607 = vpow2.f32 %v2494_v5  ;;  %v1599_v21 = vrot.slane %v1552_v7, 7  ;;  %v1572_v58 = vpop.f32.mrf.mxu3 }
 0x72d   :  { %v1621_v5 = vadd.f32 %v1572_v58, %v4415_v30 }
 0x72e   :  { %v1601_v59 = vadd.f32 %v1599_v21, %v4414_v16 }
 0x730   :  { %v2495_v40 = vmul.f32 -1.442695, %v1601_v59 }
 0x732   :  { %v2608_v28 = vpop.eup %2607  ;;  %2609 = vpow2.f32 %v2495_v40 }
 0x733   :  { %v1582_v51 = vadd.f32 1.0, %v2608_v28 }
 0x735   :  { %2611 = vrcp.f32 %v1582_v51  ;;  %v1594_v18 = vand.u32 2147483648, %v1582_v51  ;;  %v1592_v39 = vand.u32 2147483647, %v1582_v51  ;;  %vm1588_vm7 = vweird.f32 %v1582_v51 }
 0x737   :  { %v1595_v40 = vor.u32 1.1754944e-38, %v1594_v18  ;;  %vm1593_vm9 = vcmp.eq.f32.partialorder %v1592_v39, 8.507059e+37 }
 0x738   :  { %v2610_v54 = vpop.eup %2609 }
 0x739   :  { %v1605_v14 = vadd.f32 1.0, %v2610_v54  ;;  %v1623_v54 = vrot.slane %v1621_v5, 7 }
 0x73b   :  { %v2612_v17 = vpop.eup %2611  ;;  %2613 = vrcp.f32 %v1605_v14  ;;  %v1617_v58 = vand.u32 2147483648, %v1605_v14  ;;  %vm1611_vm11 = vweird.f32 %v1605_v14 }
 0x73c   :  { %v1584_v9 = vmul.f32 %v2612_v17, %v1582_v51  ;;  %vm1589_vm2 = vweird.f32 %v2612_v17  ;;  %v1615_v51 = vand.u32 2147483647, %v1605_v14 }
 0x73d   :  { %vm1590_vm8 = vmor %vm1588_vm7, %vm1589_vm2  ;;  %v1618_v39 = vor.u32 1.1754944e-38, %v1617_v58 }
 0x73e   :  { %v1585_v27 = vsub.f32 1.0, %v1584_v9  ;;  %vm1616_vm13 = vcmp.eq.f32.partialorder %v1615_v51, 8.507059e+37 }
 0x740   :  { %v1586_v29 = vmul.f32 %v2612_v17, %v1585_v27 }
 0x741   :  { %v2614_v7 = vpop.eup %2613 }
 0x742   :  { %v1587_v21 = vadd.f32 %v2612_v17, %v1586_v29  ;;  %v1607_v59 = vmul.f32 %v2614_v7, %v1605_v14  ;;  %vm1612_vm10 = vweird.f32 %v2614_v7  ;;  %v3995_v14 = vld [vmem:[#allocation5 + $0x2a0] sm:$0xff] }
 0x743   :  { %vm1613_vm12 = vmor %vm1611_vm11, %vm1612_vm10 }
 0x744   :  { %v1591_v28 = vsel %vm1590_vm8, %v2612_v17, %v1587_v21  ;;  %v1608_v46 = vsub.f32 1.0, %v1607_v59 }
 0x745   :  { %v1596_v16 = vsel %vm1593_vm9, %v1595_v40, %v1591_v28 }
 0x746   :  { %v1625_v34 = vmul.f32 %v1623_v54, %v1596_v16  ;;  %v1609_v27 = vmul.f32 %v2614_v7, %v1608_v46 }
 0x748   :  { %v1626_v9 = vadd.f32 %v1625_v34, %v3914_v37  ;;  %v1610_v48 = vadd.f32 %v2614_v7, %v1609_v27  ;;  %v3980_v34 = vld [vmem:[#allocation5 + $0x2e8] sm:$0xff] }
 0x74a   :  { %2615 = vtanh.f32 %v1626_v9  ;;  %v1614_v17 = vsel %vm1613_vm12, %v2614_v7, %v1610_v48  ;;  %v3985_v48 = vld [vmem:[#allocation5 + $0x2d0] sm:$0xff] }
 0x74b   :  { %v1619_v16 = vsel %vm1616_vm13, %v1618_v39, %v1614_v17 }
 0x750   :  { %v2616_v1 = vpop.eup %2615 }
 0x751   :  { %v1629_v29 = vrot.slane %v2616_v1, 1 }
 0x753   :  { %v1631_v18 = vsub.f32 %v3918_v43, %v1629_v29 }
 0x755   :  { %v1633_v5 = vrot.slane %v1631_v18, 7 }
 0x757   :  { %v1635_v21 = vmul.f32 %v1633_v5, %v1619_v16 }
 0x759   :  { %v3976_v59 = vadd.f32 %v2616_v1, %v1635_v21  ;;  %v3990_v1 = vld [vmem:[#allocation5 + $0x2b8] sm:$0xff] }
 0x75b   :  { %v1638_v46 = vrot.slane %v3976_v59, 1 }
 0x75d   :  { %1656 = vmatmul.f32.vlgmr.msrb.gmra.mxu0 %v1638_v46  ;;  %1676 = vmatmul.f32.vlgmr.msrb.gmra.mxu1 %v1638_v46 }
 0x75e   :  { %1696 = vmatmul.f32.vlgmr.msrb.gmra.mxu2 %v1638_v46  ;;  %1930 = vmatpush.msrb.mxu0 %v3674_v44 }
 0x75f   :  { %2015 = vmatpush.msrb.mxu1 %v3980_v34  ;;  %2035 = vmatpush.msrb.mxu2 %v3580_v53  ;;  %v4000_v53 = vld [vmem:[#allocation5 + $0x288] sm:$0xff] }
 0x760   :  { %1931 = vmatpush.msrb.mxu0 %v3684_v60 }
 0x761   :  { %2016 = vmatpush.msrb.mxu1 %v3985_v48  ;;  %2036 = vmatpush.msrb.mxu2 %v3588_v15  ;;  %v4416_v15 = vld [vmem:[#allocation20_spill] sm:$0xff] }
 0x762   :  { %1932 = vmatpush.msrb.mxu0 %v3698_v62 }
 0x763   :  { %2017 = vmatpush.msrb.mxu1 %v3990_v1  ;;  %2037 = vmatpush.msrb.mxu2 %v3594_v57  ;;  %v4418_v57 = vld [vmem:[#allocation13_spill] sm:$0xff] }
 0x764   :  { %1933 = vmatpush.msrb.mxu0 %v3700_v26 }
 0x765   :  { %2018 = vmatpush.msrb.mxu1 %v3995_v14  ;;  %2038 = vmatpush.msrb.mxu2 %v3600_v47 }
 0x766   :  { %1934 = vmatpush.msrb.mxu0 %v3705_v13 }
 0x767   :  { %2019 = vmatpush.msrb.mxu1 %v4000_v53  ;;  %2039 = vmatpush.msrb.mxu2 %v3606_v55 }
 0x768   :  { %1935 = vmatpush.msrb.mxu0 %v3711_v38 }
 0x769   :  { %2020 = vmatpush.msrb.mxu1 %v3592_v61  ;;  %2040 = vmatpush.msrb.mxu2 %v3612_v24  ;;  %v4417_v61 = vld [vmem:[#allocation12_spill] sm:$0xff] }
 0x76a   :  { %1936 = vmatpush.msrb.mxu0 %v3716_v42 }
 0x76b   :  { %2021 = vmatpush.msrb.mxu1 %v3598_v0  ;;  %2041 = vmatpush.msrb.mxu2 %v3618_v52 }
 0x76c   :  { %1937 = vmatpush.msrb.mxu0 %v3722_v49 }
 0x76d   :  { %2022 = vmatpush.msrb.mxu1 %v3604_v41  ;;  %2042 = vmatpush.msrb.mxu2 %v3626_v2 }
 0x76e   :  { %1938 = vmatpush.msrb.mxu0 %v3727_v23 }
 0x76f   :  { %2023 = vmatpush.msrb.mxu1 %v3610_v20  ;;  %2043 = vmatpush.msrb.mxu2 %v3630_v6  ;;  %v4419_v20 = vld [vmem:[#allocation21_spill] sm:$0xff] }
 0x770   :  { %1939 = vmatpush.msrb.mxu0 %v3735_v56 }
 0x771   :  { %2024 = vmatpush.msrb.mxu1 %v3616_v33  ;;  %2044 = vmatpush.msrb.mxu2 %v3639_v36  ;;  %v4420_v33 = vld [vmem:[#allocation22_spill] sm:$0xff] }
 0x772   :  { %1940 = vmatpush.msrb.mxu0 %v3746_v12 }
 0x773   :  { %2025 = vmatpush.msrb.mxu1 %v3624_v63  ;;  %2045 = vmatpush.msrb.mxu2 %v3645_v3 }
 0x774   :  { %1941 = vmatpush.msrb.mxu0 %v3755_v19 }
 0x775   :  { %2026 = vmatpush.msrb.mxu1 %v3628_v11  ;;  %2046 = vmatpush.msrb.mxu2 %v3652_v50 }
 0x776   :  { %1942 = vmatpush.msrb.mxu0 %v3765_v31 }
 0x777   :  { %2027 = vmatpush.msrb.mxu1 %v3637_v32  ;;  %2047 = vmatpush.msrb.mxu2 %v3661_v45 }
 0x778   :  { %1943 = vmatpush.msrb.mxu0 %v3774_v4 }
 0x779   :  { %2028 = vmatpush.msrb.mxu1 %v4405_v8  ;;  %2048 = vmatpush.msrb.mxu2 %v4406_v22 }
 0x77a   :  { %1944 = vmatpush.msrb.mxu0 %v4407_v35 }
 0x77b   :  { %2029 = vmatpush.msrb.mxu1 %v4408_v10  ;;  %2049 = vmatpush.msrb.mxu2 %v4409_v25 }
 0x77c   :  { %1945 = vmatpush.msrb.mxu0 %v4416_v15 }
 0x77d   :  { %2030 = vmatpush.msrb.mxu1 %v4417_v61  ;;  %2050 = vmatpush.msrb.mxu2 %v4418_v57 }
 0x7da   :  { %v1657_v0 = vpop.f32.mrf.mxu0  ;;  %v1677_v47 = vpop.f32.mrf.mxu1 }
 0x7db   :  { %v1701_v41 = vrot.slane %v1657_v0, 6  ;;  %v1724_v55 = vrot.slane %v1677_v47, 6 }
 0x7dd   :  { %v1703_v24 = vadd.f32 %v1701_v41, %v4419_v20  ;;  %v1726_v52 = vadd.f32 %v1724_v55, %v4420_v33 }
 0x7df   :  { %v2496_v63 = vmul.f32 -1.442695, %v1703_v24  ;;  %v2497_v2 = vmul.f32 -1.442695, %v1726_v52 }
 0x7e1   :  { %2617 = vpow2.f32 %v2496_v63  ;;  %v1697_v45 = vpop.f32.mrf.mxu2 }
 0x7e2   :  { %2619 = vpow2.f32 %v2497_v2  ;;  %v1746_v40 = vadd.f32 %v1697_v45, %v4415_v30  ;;  %v4047_v2 = vld [vmem:[#allocation5 + $0x2f0] sm:$0xff]  ;;  %v4109_v45 = vld [vmem:[#allocation5 + $0x200] sm:$0xff] }
 0x7e4   :  { %v1748_v58 = vrot.slane %v1746_v40, 6 }
 0x7e7   :  { %v2618_v11 = vpop.eup %2617 }
 0x7e8   :  { %v2620_v6 = vpop.eup %2619  ;;  %v1707_v32 = vadd.f32 1.0, %v2618_v11  ;;  %v4052_v11 = vld [vmem:[#allocation5 + $0x2d8] sm:$0xff] }
 0x7e9   :  { %v1730_v36 = vadd.f32 1.0, %v2620_v6  ;;  %v4057_v6 = vld [vmem:[#allocation5 + $0x2c0] sm:$0xff] }
 0x7ea   :  { %2621 = vrcp.f32 %v1707_v32  ;;  %v1719_v22 = vand.u32 2147483648, %v1707_v32  ;;  %v1717_v7 = vand.u32 2147483647, %v1707_v32  ;;  %vm1713_vm2 = vweird.f32 %v1707_v32 }
 0x7eb   :  { %2623 = vrcp.f32 %v1730_v36  ;;  %v1742_v21 = vand.u32 2147483648, %v1730_v36  ;;  %vm1736_vm10 = vweird.f32 %v1730_v36  ;;  %v1740_v61 = vand.u32 2147483647, %v1730_v36 }
 0x7ec   :  { %v1720_v9 = vor.u32 1.1754944e-38, %v1719_v22  ;;  %vm1718_vm8 = vcmp.eq.f32.partialorder %v1717_v7, 8.507059e+37  ;;  %v4123_v22 = vld [vmem:[#allocation5 + $0x1d0] sm:$0xff]  ;;  %v4144_v7 = vld [vmem:[#allocation5 + $0x188] sm:$0xff] }
 0x7ed   :  { %v1743_v47 = vor.u32 1.1754944e-38, %v1742_v21  ;;  %vm1741_vm12 = vcmp.eq.f32.partialorder %v1740_v61, 8.507059e+37 }
 0x7f0   :  { %v2622_v3 = vpop.eup %2621 }
 0x7f1   :  { %v1709_v50 = vmul.f32 %v2622_v3, %v1707_v32  ;;  %v2624_v10 = vpop.eup %2623  ;;  %vm1714_vm15 = vweird.f32 %v2622_v3  ;;  %v4078_v32 = vld [vmem:[#allocation5 + $0x258] sm:$0xff] }
 0x7f2   :  { %v1732_v54 = vmul.f32 %v2624_v10, %v1730_v36  ;;  %vm1715_vm7 = vmor %vm1713_vm2, %vm1714_vm15  ;;  %vm1737_vm9 = vweird.f32 %v2624_v10  ;;  %v4088_v36 = vld [vmem:[#allocation5 + $0x248] sm:$0xff] }
 0x7f3   :  { %v1710_v8 = vsub.f32 1.0, %v1709_v50  ;;  %vm1738_vm11 = vmor %vm1736_vm10, %vm1737_vm9  ;;  %v4102_v50 = vld [vmem:[#allocation5 + $0x218] sm:$0xff] }
 0x7f4   :  { %v1733_v18 = vsub.f32 1.0, %v1732_v54 }
 0x7f5   :  { %v1711_v25 = vmul.f32 %v2622_v3, %v1710_v8  ;;  %v4116_v8 = vld [vmem:[#allocation5 + $0x1e8] sm:$0xff] }
 0x7f6   :  { %v1734_v39 = vmul.f32 %v2624_v10, %v1733_v18 }
 0x7f7   :  { %v1712_v28 = vadd.f32 %v2622_v3, %v1711_v25  ;;  %v4137_v25 = vld [vmem:[#allocation5 + $0x1a0] sm:$0xff] }
 0x7f8   :  { %v1735_v5 = vadd.f32 %v2624_v10, %v1734_v39 }
 0x7f9   :  { %v1716_v27 = vsel %vm1715_vm7, %v2622_v3, %v1712_v28  ;;  %v4095_v3 = vld [vmem:[#allocation5 + $0x230] sm:$0xff] }
 0x7fa   :  { %v1721_v29 = vsel %vm1718_vm8, %v1720_v9, %v1716_v27  ;;  %v1739_v0 = vsel %vm1738_vm11, %v2624_v10, %v1735_v5  ;;  %v4130_v10 = vld [vmem:[#allocation5 + $0x1b8] sm:$0xff] }
 0x7fb   :  { %v1750_v51 = vmul.f32 %v1748_v58, %v1721_v29  ;;  %v1744_v55 = vsel %vm1741_vm12, %v1743_v47, %v1739_v0 }
 0x7fd   :  { %v1751_v17 = vadd.f32 %v1750_v51, %v3914_v37 }
 0x7ff   :  { %2625 = vtanh.f32 %v1751_v17 }
 0x805   :  { %v2626_v16 = vpop.eup %2625 }
 0x806   :  { %v1754_v46 = vrot.slane %v2626_v16, 1 }
 0x808   :  { %v1756_v57 = vsub.f32 %v3976_v59, %v1754_v46 }
 0x80a   :  { %v1758_v41 = vrot.slane %v1756_v57, 7 }
 0x80c   :  { %v1760_v24 = vmul.f32 %v1758_v41, %v1744_v55 }
 0x80e   :  { %v4042_v52 = vadd.f32 %v2626_v16, %v1760_v24 }
 0x810   :  { %v1763_v63 = vrot.slane %v4042_v52, 2 }
 0x812   :  { %1781 = vmatmul.f32.vlgmr.msrb.gmra.mxu3 %v1763_v63  ;;  %1801 = vmatmul.f32.vlgmr.msra.gmra.mxu0 %v1763_v63 }
 0x813   :  { %1821 = vmatmul.f32.vlgmr.msra.gmra.mxu1 %v1763_v63  ;;  %2055 = vmatpush.msrb.mxu3 %v3674_v44  ;;  %v4062_v44 = vld [vmem:[#allocation5 + $0x2a8] sm:$0xff] }
 0x814   :  { %2140 = vmatpush.msra.mxu0 %v3980_v34  ;;  %2160 = vmatpush.msra.mxu1 %v4047_v2 }
 0x815   :  { %2056 = vmatpush.msrb.mxu3 %v3684_v60  ;;  %v4067_v60 = vld [vmem:[#allocation5 + $0x290] sm:$0xff] }
 0x816   :  { %2141 = vmatpush.msra.mxu0 %v3985_v48  ;;  %2161 = vmatpush.msra.mxu1 %v4052_v11 }
 0x817   :  { %2057 = vmatpush.msrb.mxu3 %v3698_v62  ;;  %v4071_v62 = vld [vmem:[#allocation5 + $0x270] sm:$0xff] }
 0x818   :  { %2142 = vmatpush.msra.mxu0 %v3990_v1  ;;  %2162 = vmatpush.msra.mxu1 %v4057_v6 }
 0x819   :  { %2058 = vmatpush.msrb.mxu3 %v3700_v26  ;;  %v4074_v26 = vld [vmem:[#allocation5 + $0x278] sm:$0xff] }
 0x81a   :  { %2143 = vmatpush.msra.mxu0 %v3995_v14  ;;  %2163 = vmatpush.msra.mxu1 %v4062_v44 }
 0x81b   :  { %2059 = vmatpush.msrb.mxu3 %v3705_v13  ;;  %v4081_v13 = vld [vmem:[#allocation5 + $0x260] sm:$0xff] }
 0x81c   :  { %2144 = vmatpush.msra.mxu0 %v4000_v53  ;;  %2164 = vmatpush.msra.mxu1 %v4067_v60 }
 0x81d   :  { %2060 = vmatpush.msrb.mxu3 %v3711_v38  ;;  %v4085_v38 = vld [vmem:[#allocation5 + $0x240] sm:$0xff] }
 0x81e   :  { %2145 = vmatpush.msra.mxu0 %v4071_v62  ;;  %2165 = vmatpush.msra.mxu1 %v4074_v26 }
 0x81f   :  { %2061 = vmatpush.msrb.mxu3 %v3716_v42  ;;  %v4092_v42 = vld [vmem:[#allocation5 + $0x228] sm:$0xff] }
 0x820   :  { %2146 = vmatpush.msra.mxu0 %v4078_v32  ;;  %2166 = vmatpush.msra.mxu1 %v4081_v13 }
 0x821   :  { %2062 = vmatpush.msrb.mxu3 %v3722_v49  ;;  %v4099_v49 = vld [vmem:[#allocation5 + $0x210] sm:$0xff] }
 0x822   :  { %2147 = vmatpush.msra.mxu0 %v4085_v38  ;;  %2167 = vmatpush.msra.mxu1 %v4088_v36 }
 0x823   :  { %2063 = vmatpush.msrb.mxu3 %v3727_v23  ;;  %v4106_v23 = vld [vmem:[#allocation5 + $0x1f8] sm:$0xff] }
 0x824   :  { %2148 = vmatpush.msra.mxu0 %v4092_v42  ;;  %2168 = vmatpush.msra.mxu1 %v4095_v3 }
 0x825   :  { %2064 = vmatpush.msrb.mxu3 %v3735_v56  ;;  %v4113_v56 = vld [vmem:[#allocation5 + $0x1e0] sm:$0xff] }
 0x826   :  { %2149 = vmatpush.msra.mxu0 %v4099_v49  ;;  %2169 = vmatpush.msra.mxu1 %v4102_v50 }
 0x827   :  { %2065 = vmatpush.msrb.mxu3 %v3746_v12  ;;  %v4120_v12 = vld [vmem:[#allocation5 + $0x1c8] sm:$0xff] }
 0x828   :  { %2150 = vmatpush.msra.mxu0 %v4106_v23  ;;  %2170 = vmatpush.msra.mxu1 %v4109_v45 }
 0x829   :  { %2066 = vmatpush.msrb.mxu3 %v3755_v19  ;;  %v4127_v19 = vld [vmem:[#allocation5 + $0x1b0] sm:$0xff] }
 0x82a   :  { %2151 = vmatpush.msra.mxu0 %v4113_v56  ;;  %2171 = vmatpush.msra.mxu1 %v4116_v8 }
 0x82b   :  { %2067 = vmatpush.msrb.mxu3 %v3765_v31  ;;  %v4134_v31 = vld [vmem:[#allocation5 + $0x198] sm:$0xff] }
 0x82c   :  { %2152 = vmatpush.msra.mxu0 %v4120_v12  ;;  %2172 = vmatpush.msra.mxu1 %v4123_v22 }
 0x82d   :  { %2068 = vmatpush.msrb.mxu3 %v3774_v4  ;;  %v4141_v4 = vld [vmem:[#allocation5 + $0x180] sm:$0xff] }
 0x82e   :  { %2153 = vmatpush.msra.mxu0 %v4127_v19  ;;  %2173 = vmatpush.msra.mxu1 %v4130_v10 }
 0x82f   :  { %2069 = vmatpush.msrb.mxu3 %v4407_v35 }
 0x830   :  { %2154 = vmatpush.msra.mxu0 %v4134_v31  ;;  %2174 = vmatpush.msra.mxu1 %v4137_v25 }
 0x831   :  { %2070 = vmatpush.msrb.mxu3 %v4416_v15 }
 0x832   :  { %2155 = vmatpush.msra.mxu0 %v4141_v4  ;;  %2175 = vmatpush.msra.mxu1 %v4144_v7 }
 0x88f   :  { %v1802_v40 = vpop.f32.mrf.mxu0 }
 0x890   :  { %v1849_v35 = vrot.slane %v1802_v40, 5  ;;  %v1822_v16 = vpop.f32.mrf.mxu1 }
 0x891   :  { %v1871_v57 = vadd.f32 %v1822_v16, %v4415_v30 }
 0x892   :  { %v1851_v28 = vadd.f32 %v1849_v35, %v4420_v33 }
 0x893   :  { %v1873_v63 = vrot.slane %v1871_v57, 5 }
 0x894   :  { %v2499_v58 = vmul.f32 -1.442695, %v1851_v28 }
 0x895   :  { %v1782_v54 = vpop.f32.mrf.mxu3 }
 0x896   :  { %v1826_v9 = vrot.slane %v1782_v54, 5 }
 0x898   :  { %v1828_v27 = vadd.f32 %v1826_v9, %v4419_v20 }
 0x89a   :  { %v2498_v29 = vmul.f32 -1.442695, %v1828_v27 }
 0x89c   :  { %2627 = vpow2.f32 %v2498_v29 }
 0x89d   :  { %2629 = vpow2.f32 %v2499_v58 }
 0x8a2   :  { %v2628_v15 = vpop.eup %2627 }
 0x8a3   :  { %v2630_v51 = vpop.eup %2629  ;;  %v1832_v18 = vadd.f32 1.0, %v2628_v15 }
 0x8a4   :  { %v1855_v17 = vadd.f32 1.0, %v2630_v51 }
 0x8a5   :  { %2631 = vrcp.f32 %v1832_v18  ;;  %v1844_v46 = vand.u32 2147483648, %v1832_v18  ;;  %v1842_v47 = vand.u32 2147483647, %v1832_v18  ;;  %vm1838_vm15 = vweird.f32 %v1832_v18 }
 0x8a6   :  { %2633 = vrcp.f32 %v1855_v17  ;;  %v1867_v15 = vand.u32 2147483648, %v1855_v17  ;;  %vm1861_vm9 = vweird.f32 %v1855_v17  ;;  %v1865_v51 = vand.u32 2147483647, %v1855_v17 }
 0x8a7   :  { %v1845_v24 = vor.u32 1.1754944e-38, %v1844_v46  ;;  %vm1843_vm7 = vcmp.eq.f32.partialorder %v1842_v47, 8.507059e+37 }
 0x8a8   :  { %vm1866_vm11 = vcmp.eq.f32.partialorder %v1865_v51, 8.507059e+37 }
 0x8ab   :  { %v2632_v39 = vpop.eup %2631 }
 0x8ac   :  { %v1834_v5 = vmul.f32 %v2632_v39, %v1832_v18  ;;  %v2634_v61 = vpop.eup %2633  ;;  %vm1839_vm13 = vweird.f32 %v2632_v39 }
 0x8ad   :  { %v1857_v55 = vmul.f32 %v2634_v61, %v1855_v17  ;;  %vm1840_vm2 = vmor %vm1838_vm15, %vm1839_vm13  ;;  %vm1862_vm8 = vweird.f32 %v2634_v61  ;;  %v4160_v17 = vld [vmem:[#allocation5 + $0x2e0] sm:$0xff] }
 0x8ae   :  { %v1835_v21 = vsub.f32 1.0, %v1834_v5  ;;  %vm1863_vm10 = vmor %vm1861_vm9, %vm1862_vm8 }
 0x8af   :  { %v1858_v54 = vsub.f32 1.0, %v1857_v55  ;;  %v4170_v55 = vld [vmem:[#allocation5 + $0x2b0] sm:$0xff] }
 0x8b0   :  { %v1836_v0 = vmul.f32 %v2632_v39, %v1835_v21 }
 0x8b1   :  { %v1859_v27 = vmul.f32 %v2634_v61, %v1858_v54 }
 0x8b2   :  { %v1837_v41 = vadd.f32 %v2632_v39, %v1836_v0 }
 0x8b3   :  { %v1860_v58 = vadd.f32 %v2634_v61, %v1859_v27 }
 0x8b4   :  { %v1841_v40 = vsel %vm1840_vm2, %v2632_v39, %v1837_v41  ;;  %v1868_v39 = vor.u32 1.1754944e-38, %v1867_v15  ;;  %v4155_v41 = vld [vmem:[#allocation5 + $0x2f8] sm:$0xff] }
 0x8b5   :  { %v1846_v35 = vsel %vm1843_vm7, %v1845_v24, %v1841_v40  ;;  %v1864_v5 = vsel %vm1863_vm10, %v2634_v61, %v1860_v58  ;;  %v4165_v61 = vld [vmem:[#allocation5 + $0x2c8] sm:$0xff] }
 0x8b6   :  { %v1875_v28 = vmul.f32 %v1873_v63, %v1846_v35  ;;  %v1869_v46 = vsel %vm1866_vm11, %v1868_v39, %v1864_v5 }
 0x8b8   :  { %v1876_v9 = vadd.f32 %v1875_v28, %v3914_v37 }
 0x8ba   :  { %2635 = vtanh.f32 %v1876_v9 }
 0x8c0   :  { %v2636_v29 = vpop.eup %2635 }
 0x8c1   :  { %v1879_v18 = vrot.slane %v2636_v29, 1 }
 0x8c3   :  { %v1881_v16 = vsub.f32 %v4042_v52, %v1879_v18 }
 0x8c5   :  { %v1883_v21 = vrot.slane %v1881_v16, 7 }
 0x8c7   :  { %v1885_v57 = vmul.f32 %v1883_v21, %v1869_v46 }
 0x8c9   :  { %v4152_v0 = vadd.f32 %v2636_v29, %v1885_v57 }
 0x8cb   :  { %v1888_v47 = vrot.slane %v4152_v0, 3 }
 0x8cd   :  { %1906 = vmatmul.f32.vlgmr.msra.gmra.mxu2 %v1888_v47  ;;  %1926 = vmatmul.f32.vlgmr.msra.gmra.mxu3 %v1888_v47 }
 0x8ce   :  { %1946 = vmatmul.f32.vlgmr.msrb.gmra.mxu0 %v1888_v47  ;;  %2180 = vmatpush.msra.mxu2 %v4155_v41 }
 0x8cf   :  { %2265 = vmatpush.msra.mxu3 %v3980_v34  ;;  %2285 = vmatpush.msrb.mxu0 %v4047_v2  ;;  %v4175_v34 = vld [vmem:[#allocation5 + $0x298] sm:$0xff]  ;;  %v4200_v2 = vld [vmem:[#allocation5 + $0x220] sm:$0xff] }
 0x8d0   :  { %2181 = vmatpush.msra.mxu2 %v4160_v17 }
 0x8d1   :  { %2266 = vmatpush.msra.mxu3 %v3985_v48  ;;  %2286 = vmatpush.msrb.mxu0 %v4052_v11  ;;  %v4180_v48 = vld [vmem:[#allocation5 + $0x280] sm:$0xff]  ;;  %v4205_v11 = vld [vmem:[#allocation5 + $0x208] sm:$0xff] }
 0x8d2   :  { %2182 = vmatpush.msra.mxu2 %v4165_v61 }
 0x8d3   :  { %2267 = vmatpush.msra.mxu3 %v3990_v1  ;;  %2287 = vmatpush.msrb.mxu0 %v4057_v6  ;;  %v4185_v1 = vld [vmem:[#allocation5 + $0x268] sm:$0xff]  ;;  %v4210_v6 = vld [vmem:[#allocation5 + $0x1f0] sm:$0xff] }
 0x8d4   :  { %2183 = vmatpush.msra.mxu2 %v4170_v55 }
 0x8d5   :  { %2268 = vmatpush.msra.mxu3 %v3995_v14  ;;  %2288 = vmatpush.msrb.mxu0 %v4062_v44  ;;  %v4190_v14 = vld [vmem:[#allocation5 + $0x250] sm:$0xff]  ;;  %v4215_v44 = vld [vmem:[#allocation5 + $0x1d8] sm:$0xff] }
 0x8d6   :  { %2184 = vmatpush.msra.mxu2 %v4175_v34 }
 0x8d7   :  { %2269 = vmatpush.msra.mxu3 %v4000_v53  ;;  %2289 = vmatpush.msrb.mxu0 %v4067_v60  ;;  %v4195_v53 = vld [vmem:[#allocation5 + $0x238] sm:$0xff]  ;;  %v4220_v60 = vld [vmem:[#allocation5 + $0x1c0] sm:$0xff] }
 0x8d8   :  { %2185 = vmatpush.msra.mxu2 %v4180_v48 }
 0x8d9   :  { %2270 = vmatpush.msra.mxu3 %v4071_v62  ;;  %2290 = vmatpush.msrb.mxu0 %v4074_v26  ;;  %v4225_v62 = vld [vmem:[#allocation5 + $0x1a8] sm:$0xff]  ;;  %v4230_v26 = vld [vmem:[#allocation5 + $0x190] sm:$0xff] }
 0x8da   :  { %2186 = vmatpush.msra.mxu2 %v4185_v1 }
 0x8db   :  { %2271 = vmatpush.msra.mxu3 %v4078_v32  ;;  %2291 = vmatpush.msrb.mxu0 %v4081_v13 }
 0x8dc   :  { %2187 = vmatpush.msra.mxu2 %v4190_v14 }
 0x8dd   :  { %2272 = vmatpush.msra.mxu3 %v4085_v38  ;;  %2292 = vmatpush.msrb.mxu0 %v4088_v36 }
 0x8de   :  { %2188 = vmatpush.msra.mxu2 %v4195_v53 }
 0x8df   :  { %2273 = vmatpush.msra.mxu3 %v4092_v42  ;;  %2293 = vmatpush.msrb.mxu0 %v4095_v3 }
 0x8e0   :  { %2189 = vmatpush.msra.mxu2 %v4200_v2 }
 0x8e1   :  { %2274 = vmatpush.msra.mxu3 %v4099_v49  ;;  %2294 = vmatpush.msrb.mxu0 %v4102_v50 }
 0x8e2   :  { %2190 = vmatpush.msra.mxu2 %v4205_v11 }
 0x8e3   :  { %2275 = vmatpush.msra.mxu3 %v4106_v23  ;;  %2295 = vmatpush.msrb.mxu0 %v4109_v45 }
 0x8e4   :  { %2191 = vmatpush.msra.mxu2 %v4210_v6 }
 0x8e5   :  { %2276 = vmatpush.msra.mxu3 %v4113_v56  ;;  %2296 = vmatpush.msrb.mxu0 %v4116_v8 }
 0x8e6   :  { %2192 = vmatpush.msra.mxu2 %v4215_v44 }
 0x8e7   :  { %2277 = vmatpush.msra.mxu3 %v4120_v12  ;;  %2297 = vmatpush.msrb.mxu0 %v4123_v22 }
 0x8e8   :  { %2193 = vmatpush.msra.mxu2 %v4220_v60 }
 0x8e9   :  { %2278 = vmatpush.msra.mxu3 %v4127_v19  ;;  %2298 = vmatpush.msrb.mxu0 %v4130_v10 }
 0x8ea   :  { %2194 = vmatpush.msra.mxu2 %v4225_v62 }
 0x8eb   :  { %2279 = vmatpush.msra.mxu3 %v4134_v31  ;;  %2299 = vmatpush.msrb.mxu0 %v4137_v25 }
 0x8ec   :  { %2195 = vmatpush.msra.mxu2 %v4230_v26 }
 0x8ed   :  { %2280 = vmatpush.msra.mxu3 %v4141_v4  ;;  %2300 = vmatpush.msrb.mxu0 %v4144_v7 }
 0x94b   :  { %v1947_v19 = vpop.f32.mrf.mxu0 }
 0x94c   :  { %v1996_v4 = vadd.f32 %v1947_v19, %v4415_v30 }
 0x94e   :  { %v1998_v28 = vrot.slane %v1996_v4, 4 }
 0x950   :  { %v1907_v32 = vpop.f32.mrf.mxu2  ;;  %v1927_v13 = vpop.f32.mrf.mxu3 }
 0x951   :  { %v1951_v38 = vrot.slane %v1907_v32, 4  ;;  %v1974_v36 = vrot.slane %v1927_v13, 4 }
 0x953   :  { %v1953_v42 = vadd.f32 %v1951_v38, %v4419_v20  ;;  %v1976_v3 = vadd.f32 %v1974_v36, %v4420_v33 }
 0x955   :  { %v2500_v49 = vmul.f32 -1.442695, %v1953_v42  ;;  %v2501_v50 = vmul.f32 -1.442695, %v1976_v3 }
 0x957   :  { %2637 = vpow2.f32 %v2500_v49  ;;  %v4264_v49 = vld [vmem:[%s4315_s5 + $0x1] sm:$0x1] }
 0x958   :  { %2639 = vpow2.f32 %v2501_v50 }
 0x95d   :  { %v2638_v23 = vpop.eup %2637 }
 0x95e   :  { %v2640_v45 = vpop.eup %2639  ;;  %v1957_v56 = vadd.f32 1.0, %v2638_v23 }
 0x95f   :  { %v1980_v8 = vadd.f32 1.0, %v2640_v45 }
 0x960   :  { %2641 = vrcp.f32 %v1957_v56  ;;  %v1969_v31 = vand.u32 2147483648, %v1957_v56  ;;  %v1967_v24 = vand.u32 2147483647, %v1957_v56  ;;  %vm1963_vm13 = vweird.f32 %v1957_v56 }
 0x961   :  { %2643 = vrcp.f32 %v1980_v8  ;;  %v1992_v18 = vand.u32 2147483648, %v1980_v8  ;;  %vm1986_vm8 = vweird.f32 %v1980_v8  ;;  %v1990_v5 = vand.u32 2147483647, %v1980_v8 }
 0x962   :  { %v1970_v40 = vor.u32 1.1754944e-38, %v1969_v31  ;;  %vm1968_vm2 = vcmp.eq.f32.partialorder %v1967_v24, 8.507059e+37 }
 0x963   :  { %v1993_v46 = vor.u32 1.1754944e-38, %v1992_v18  ;;  %vm1991_vm10 = vcmp.eq.f32.partialorder %v1990_v5, 8.507059e+37 }
 0x966   :  { %v2642_v12 = vpop.eup %2641 }
 0x967   :  { %v1959_v22 = vmul.f32 %v2642_v12, %v1957_v56  ;;  %v2644_v25 = vpop.eup %2643  ;;  %vm1964_vm12 = vweird.f32 %v2642_v12 }
 0x968   :  { %vm1965_vm15 = vmor %vm1963_vm13, %vm1964_vm12  ;;  %v1982_v35 = vmul.f32 %v2644_v25, %v1980_v8  ;;  %vm1987_vm7 = vweird.f32 %v2644_v25 }
 0x969   :  { %v1960_v10 = vsub.f32 1.0, %v1959_v22  ;;  %vm1988_vm9 = vmor %vm1986_vm8, %vm1987_vm7 }
 0x96a   :  { %v1983_v58 = vsub.f32 1.0, %v1982_v35 }
 0x96b   :  { %v1961_v7 = vmul.f32 %v2642_v12, %v1960_v10 }
 0x96c   :  { %v1984_v15 = vmul.f32 %v2644_v25, %v1983_v58 }
 0x96d   :  { %v1962_v63 = vadd.f32 %v2642_v12, %v1961_v7 }
 0x96e   :  { %v1985_v30 = vadd.f32 %v2644_v25, %v1984_v15 }
 0x96f   :  { %v1966_v54 = vsel %vm1965_vm15, %v2642_v12, %v1962_v63 }
 0x970   :  { %v1971_v9 = vsel %vm1968_vm2, %v1970_v40, %v1966_v54  ;;  %v1989_v39 = vsel %vm1988_vm9, %v2644_v25, %v1985_v30 }
 0x971   :  { %v2000_v27 = vmul.f32 %v1998_v28, %v1971_v9  ;;  %v1994_v47 = vsel %vm1991_vm10, %v1993_v46, %v1989_v39 }
 0x973   :  { %v2001_v29 = vadd.f32 %v2000_v27, %v3914_v37 }
 0x975   :  { %2645 = vtanh.f32 %v2001_v29 }
 0x97b   :  { %v2646_v51 = vpop.eup %2645 }
 0x97c   :  { %v2004_v16 = vrot.slane %v2646_v51, 1 }
 0x97e   :  { %v2006_v21 = vsub.f32 %v4152_v0, %v2004_v16 }
 0x980   :  { %v2008_v57 = vrot.slane %v2006_v21, 7 }
 0x982   :  { %v2010_v32 = vmul.f32 %v2008_v57, %v1994_v47 }
 0x984   :  { %v4240_v13 = vadd.f32 %v2646_v51, %v2010_v32 }
 0x986   :  { %v2013_v38 = vrot.slane %v4240_v13, 4 }
 0x988   :  { %2031 = vmatmul.f32.vlgmr.msrb.gmra.mxu1 %v2013_v38  ;;  %2051 = vmatmul.f32.vlgmr.msrb.gmra.mxu2 %v2013_v38 }
 0x989   :  { %2071 = vmatmul.f32.vlgmr.msrb.gmra.mxu3 %v2013_v38  ;;  %2305 = vmatpush.msrb.mxu1 %v4155_v41 }
 0x98b   :  { %2306 = vmatpush.msrb.mxu1 %v4160_v17 }
 0x98d   :  { %2307 = vmatpush.msrb.mxu1 %v4165_v61 }
 0x98f   :  { %2308 = vmatpush.msrb.mxu1 %v4170_v55 }
 0x991   :  { %2309 = vmatpush.msrb.mxu1 %v4175_v34 }
 0x993   :  { %2310 = vmatpush.msrb.mxu1 %v4180_v48 }
 0x995   :  { %2311 = vmatpush.msrb.mxu1 %v4185_v1 }
 0x997   :  { %2312 = vmatpush.msrb.mxu1 %v4190_v14 }
 0x999   :  { %2313 = vmatpush.msrb.mxu1 %v4195_v53 }
 0x99b   :  { %2314 = vmatpush.msrb.mxu1 %v4200_v2 }
 0x99d   :  { %2315 = vmatpush.msrb.mxu1 %v4205_v11 }
 0x99f   :  { %2316 = vmatpush.msrb.mxu1 %v4210_v6 }
 0x9a1   :  { %2317 = vmatpush.msrb.mxu1 %v4215_v44 }
 0x9a3   :  { %2318 = vmatpush.msrb.mxu1 %v4220_v60 }
 0x9a5   :  { %2319 = vmatpush.msrb.mxu1 %v4225_v62 }
 0x9a7   :  { %2320 = vmatpush.msrb.mxu1 %v4230_v26 }
 0xa05   :  { %v2032_v41 = vpop.f32.mrf.mxu1 }
 0xa06   :  { %v2076_v17 = vrot.slane %v2032_v41, 3 }
 0xa08   :  { %v2078_v61 = vadd.f32 %v2076_v17, %v4419_v20 }
 0xa0a   :  { %v2502_v55 = vmul.f32 -1.442695, %v2078_v61 }
 0xa0b   :  { %v2052_v34 = vpop.f32.mrf.mxu2 }
 0xa0c   :  { %2647 = vpow2.f32 %v2502_v55  ;;  %v2099_v48 = vrot.slane %v2052_v34, 3  ;;  %v2072_v62 = vpop.f32.mrf.mxu3 }
 0xa0d   :  { %v2121_v50 = vadd.f32 %v4264_v49, %v2072_v62 }
 0xa0e   :  { %v2101_v1 = vadd.f32 %v2099_v48, %v4420_v33 }
 0xa0f   :  { %v2123_v22 = vrot.slane %v2121_v50, 3 }
 0xa10   :  { %v2503_v14 = vmul.f32 -1.442695, %v2101_v1 }
 0xa12   :  { %v2648_v53 = vpop.eup %2647  ;;  %2649 = vpow2.f32 %v2503_v14 }
 0xa13   :  { %v2082_v2 = vadd.f32 1.0, %v2648_v53 }
 0xa15   :  { %2651 = vrcp.f32 %v2082_v2  ;;  %v2094_v36 = vand.u32 2147483648, %v2082_v2  ;;  %v2092_v3 = vand.u32 2147483647, %v2082_v2  ;;  %vm2088_vm12 = vweird.f32 %v2082_v2 }
 0xa17   :  { %v2095_v8 = vor.u32 1.1754944e-38, %v2094_v36  ;;  %vm2093_vm15 = vcmp.eq.f32.partialorder %v2092_v3, 8.507059e+37 }
 0xa18   :  { %v2650_v11 = vpop.eup %2649 }
 0xa19   :  { %v2105_v6 = vadd.f32 1.0, %v2650_v11 }
 0xa1b   :  { %v2652_v44 = vpop.eup %2651  ;;  %2653 = vrcp.f32 %v2105_v6  ;;  %v2117_v63 = vand.u32 2147483648, %v2105_v6  ;;  %vm2111_vm7 = vweird.f32 %v2105_v6  ;;  %v2115_v35 = vand.u32 2147483647, %v2105_v6 }
 0xa1c   :  { %v2084_v60 = vmul.f32 %v2652_v44, %v2082_v2  ;;  %vm2089_vm11 = vweird.f32 %v2652_v44 }
 0xa1d   :  { %vm2090_vm13 = vmor %vm2088_vm12, %vm2089_vm11  ;;  %v2118_v9 = vor.u32 1.1754944e-38, %v2117_v63  ;;  %vm2116_vm9 = vcmp.eq.f32.partialorder %v2115_v35, 8.507059e+37  ;;  %v2417_v63 = vld [vmem:[#allocation7 + $0x78] sm:$0xff]  ;;  %v2416_v35 = vld [vmem:[#allocation7 + $0x70] sm:$0xff] }
 0xa1e   :  { %v2085_v26 = vsub.f32 1.0, %v2084_v60  ;;  %2422 = vmatpush.msrb.mxu2 %v2417_v63 }
 0xa20   :  { %v2086_v42 = vmul.f32 %v2652_v44, %v2085_v26  ;;  %2423 = vmatpush.msrb.mxu2 %v2416_v35 }
 0xa21   :  { %v2654_v23 = vpop.eup %2653 }
 0xa22   :  { %v2087_v45 = vadd.f32 %v2652_v44, %v2086_v42  ;;  %v2107_v56 = vmul.f32 %v2654_v23, %v2105_v6  ;;  %vm2112_vm2 = vweird.f32 %v2654_v23 }
 0xa23   :  { %vm2113_vm8 = vmor %vm2111_vm7, %vm2112_vm2 }
 0xa24   :  { %v2091_v12 = vsel %vm2090_vm13, %v2652_v44, %v2087_v45  ;;  %v2108_v31 = vsub.f32 1.0, %v2107_v56 }
 0xa25   :  { %v2096_v19 = vsel %vm2093_vm15, %v2095_v8, %v2091_v12 }
 0xa26   :  { %v2125_v10 = vmul.f32 %v2123_v22, %v2096_v19  ;;  %v2109_v4 = vmul.f32 %v2654_v23, %v2108_v31 }
 0xa28   :  { %v2126_v25 = vadd.f32 %v2125_v10, %v3914_v37  ;;  %v2110_v7 = vadd.f32 %v2654_v23, %v2109_v4 }
 0xa2a   :  { %2655 = vtanh.f32 %v2126_v25  ;;  %v2114_v54 = vsel %vm2113_vm8, %v2654_v23, %v2110_v7 }
 0xa2b   :  { %v2119_v58 = vsel %vm2116_vm9, %v2118_v9, %v2114_v54  ;;  %v2415_v54 = vld [vmem:[#allocation7 + $0x68] sm:$0xff]  ;;  %v2414_v9 = vld [vmem:[#allocation7 + $0x60] sm:$0xff] }
 0xa2c   :  { %2424 = vmatpush.msrb.mxu2 %v2415_v54 }
 0xa2e   :  { %2425 = vmatpush.msrb.mxu2 %v2414_v9 }
 0xa30   :  { %v2656_v24 = vpop.eup %2655 }
 0xa31   :  { %v2129_v40 = vrot.slane %v2656_v24, 1 }
 0xa33   :  { %v2131_v28 = vsub.f32 %v4240_v13, %v2129_v40 }
 0xa35   :  { %v2133_v27 = vrot.slane %v2131_v28, 7 }
 0xa37   :  { %v2135_v29 = vmul.f32 %v2133_v27, %v2119_v58  ;;  %v2413_v27 = vld [vmem:[#allocation7 + $0x58] sm:$0xff] }
 0xa38   :  { %2426 = vmatpush.msrb.mxu2 %v2413_v27 }
 0xa39   :  { %v4269_v15 = vadd.f32 %v2656_v24, %v2135_v29 }
 0xa3b   :  { %v2138_v30 = vrot.slane %v4269_v15, 5 }
 0xa3d   :  { %2156 = vmatmul.f32.vlgmr.msra.gmra.mxu0 %v2138_v30  ;;  %2176 = vmatmul.f32.vlgmr.msra.gmra.mxu1 %v2138_v30 }
 0xa3e   :  { %2196 = vmatmul.f32.vlgmr.msra.gmra.mxu2 %v2138_v30  ;;  %v2412_v30 = vld [vmem:[#allocation7 + $0x50] sm:$0xff] }
 0xa3f   :  { %2427 = vmatpush.msrb.mxu2 %v2412_v30 }
 0xaba   :  { %v2157_v51 = vpop.f32.mrf.mxu0  ;;  %v2177_v18 = vpop.f32.mrf.mxu1 }
 0xabb   :  { %v2201_v5 = vrot.slane %v2157_v51, 2  ;;  %v2224_v16 = vrot.slane %v2177_v18, 2  ;;  %v2411_v18 = vld [vmem:[#allocation7 + $0x48] sm:$0xff] }
 0xabc   :  { %2428 = vmatpush.msrb.mxu2 %v2411_v18 }
 0xabd   :  { %v2203_v39 = vadd.f32 %v2201_v5, %v4419_v20  ;;  %v2226_v21 = vadd.f32 %v2224_v16, %v4420_v33 }
 0xabf   :  { %v2504_v46 = vmul.f32 -1.442695, %v2203_v39  ;;  %v2505_v57 = vmul.f32 -1.442695, %v2226_v21  ;;  %v2410_v39 = vld [vmem:[#allocation7 + $0x40] sm:$0xff] }
 0xac0   :  { %2429 = vmatpush.msrb.mxu2 %v2410_v39 }
 0xac1   :  { %2657 = vpow2.f32 %v2504_v46  ;;  %v2197_v55 = vpop.f32.mrf.mxu2  ;;  %v2409_v46 = vld [vmem:[#allocation7 + $0x38] sm:$0xff] }
 0xac2   :  { %2659 = vpow2.f32 %v2505_v57  ;;  %v2246_v2 = vadd.f32 %v4264_v49, %v2197_v55  ;;  %v2408_v57 = vld [vmem:[#allocation7 + $0x30] sm:$0xff]  ;;  %2430 = vmatpush.msrb.mxu2 %v2409_v46  ;;  %v2403_v55 = vld [vmem:[#allocation7 + $0x8] sm:$0xff] }
 0xac4   :  { %v2248_v62 = vrot.slane %v2246_v2, 2  ;;  %2431 = vmatpush.msrb.mxu2 %v2408_v57 }
 0xac7   :  { %v2658_v47 = vpop.eup %2657 }
 0xac8   :  { %v2660_v32 = vpop.eup %2659  ;;  %v2207_v38 = vadd.f32 1.0, %v2658_v47  ;;  %v2407_v47 = vld [vmem:[#allocation7 + $0x28] sm:$0xff] }
 0xac9   :  { %v2230_v41 = vadd.f32 1.0, %v2660_v32  ;;  %2432 = vmatpush.msrb.mxu2 %v2407_v47 }
 0xaca   :  { %2661 = vrcp.f32 %v2207_v38  ;;  %v2219_v48 = vand.u32 2147483648, %v2207_v38  ;;  %v2217_v53 = vand.u32 2147483647, %v2207_v38  ;;  %vm2213_vm11 = vweird.f32 %v2207_v38 }
 0xacb   :  { %2663 = vrcp.f32 %v2230_v41  ;;  %v2242_v56 = vand.u32 2147483648, %v2230_v41  ;;  %vm2236_vm2 = vweird.f32 %v2230_v41  ;;  %v2240_v12 = vand.u32 2147483647, %v2230_v41 }
 0xacc   :  { %v2220_v44 = vor.u32 1.1754944e-38, %v2219_v48  ;;  %vm2218_vm13 = vcmp.eq.f32.partialorder %v2217_v53, 8.507059e+37 }
 0xacd   :  { %v2243_v10 = vor.u32 1.1754944e-38, %v2242_v56  ;;  %vm2241_vm8 = vcmp.eq.f32.partialorder %v2240_v12, 8.507059e+37 }
 0xad0   :  { %v2662_v17 = vpop.eup %2661 }
 0xad1   :  { %v2209_v61 = vmul.f32 %v2662_v17, %v2207_v38  ;;  %v2664_v1 = vpop.eup %2663  ;;  %vm2214_vm10 = vweird.f32 %v2662_v17 }
 0xad2   :  { %v2232_v6 = vmul.f32 %v2664_v1, %v2230_v41  ;;  %vm2215_vm12 = vmor %vm2213_vm11, %vm2214_vm10  ;;  %vm2237_vm15 = vweird.f32 %v2664_v1 }
 0xad3   :  { %v2210_v34 = vsub.f32 1.0, %v2209_v61  ;;  %vm2238_vm7 = vmor %vm2236_vm2, %vm2237_vm15 }
 0xad4   :  { %v2233_v42 = vsub.f32 1.0, %v2232_v6 }
 0xad5   :  { %v2211_v14 = vmul.f32 %v2662_v17, %v2210_v34  ;;  %v2402_v34 = vld [vmem:[#allocation7] sm:$0xff] }
 0xad6   :  { %v2234_v50 = vmul.f32 %v2664_v1, %v2233_v42 }
 0xad7   :  { %v2212_v11 = vadd.f32 %v2662_v17, %v2211_v14 }
 0xad8   :  { %v2235_v23 = vadd.f32 %v2664_v1, %v2234_v50 }
 0xad9   :  { %v2216_v60 = vsel %vm2215_vm12, %v2662_v17, %v2212_v11  ;;  %v2405_v17 = vld [vmem:[#allocation7 + $0x18] sm:$0xff] }
 0xada   :  { %v2221_v26 = vsel %vm2218_vm13, %v2220_v44, %v2216_v60  ;;  %v2239_v19 = vsel %vm2238_vm7, %v2664_v1, %v2235_v23 }
 0xadb   :  { %v2250_v36 = vmul.f32 %v2248_v62, %v2221_v26  ;;  %v2244_v25 = vsel %vm2241_vm8, %v2243_v10, %v2239_v19 }
 0xadd   :  { %v2251_v3 = vadd.f32 %v2250_v36, %v3914_v37 }
 0xadf   :  { %2665 = vtanh.f32 %v2251_v3 }
 0xae5   :  { %v2666_v45 = vpop.eup %2665 }
 0xae6   :  { %v2254_v8 = vrot.slane %v2666_v45, 1 }
 0xae8   :  { %v2256_v22 = vsub.f32 %v4269_v15, %v2254_v8 }
 0xaea   :  { %v2258_v31 = vrot.slane %v2256_v22, 7 }
 0xaec   :  { %v2260_v4 = vmul.f32 %v2258_v31, %v2244_v25 }
 0xaee   :  { %v4277_v7 = vadd.f32 %v2666_v45, %v2260_v4 }
 0xaf0   :  { %v2263_v24 = vrot.slane %v4277_v7, 6 }
 0xaf2   :  { %2281 = vmatmul.f32.vlgmr.msra.gmra.mxu3 %v2263_v24  ;;  %2301 = vmatmul.f32.vlgmr.msrb.gmra.mxu0 %v2263_v24 }
 0xaf3   :  { %2321 = vmatmul.f32.vlgmr.msrb.gmra.mxu1 %v2263_v24  ;;  %v2387_v24 = vsel %vm1225_vm14, %v3918_v43, %v3976_v59 }
 0xb6f   :  { %v2302_v40 = vpop.f32.mrf.mxu0 }
 0xb70   :  { %v2349_v28 = vrot.slane %v2302_v40, 1  ;;  %v2322_v14 = vpop.f32.mrf.mxu1  ;;  %v2388_v40 = vsel %vm1227_vm0, %v2387_v24, %v4042_v52 }
 0xb71   :  { %v2371_v6 = vadd.f32 %v4264_v49, %v2322_v14 }
 0xb72   :  { %v2351_v58 = vadd.f32 %v2349_v28, %v4420_v33  ;;  %v2406_v33 = vld [vmem:[#allocation7 + $0x20] sm:$0xff]  ;;  %v2389_v28 = vsel %vm1229_vm1, %v2388_v40, %v4152_v0 }
 0xb73   :  { %2433 = vmatpush.msrb.mxu2 %v2406_v33  ;;  %v2373_v42 = vrot.slane %v2371_v6, 1  ;;  %v2390_v54 = vsel %vm1231_vm3, %v2389_v28, %v4240_v13  ;;  %v2516_v0 = vld [vmem:[%s4317_s7] ss:$0 sm:$0xff] }
 0xb74   :  { %v2507_v16 = vmul.f32 -1.442695, %v2351_v58  ;;  %v2391_v27 = vsel %vm1233_vm4, %v2390_v54, %v4269_v15  ;;  %v4421_v58 = vld [vmem:[#allocation16_spill] sm:$0xff] }
 0xb75   :  { %v2282_v29 = vpop.f32.mrf.mxu3  ;;  %2434 = vmatpush.msrb.mxu2 %v2405_v17  ;;  %v2392_v43 = vsel %vm1235_vm5, %v2391_v27, %v4277_v7 }
 0xb76   :  { %v2326_v51 = vrot.slane %v2282_v29, 1  ;;  %v2395_v29 = vrot.slane %v4421_v58, 7 }
 0xb78   :  { %v2328_v5 = vadd.f32 %v2326_v51, %v4419_v20  ;;  %v2404_v20 = vld [vmem:[#allocation7 + $0x10] sm:$0xff] }
 0xb79   :  { %2435 = vmatpush.msrb.mxu2 %v2404_v20 }
 0xb7a   :  { %v2506_v21 = vmul.f32 -1.442695, %v2328_v5 }
 0xb7b   :  { %2436 = vmatpush.msrb.mxu2 %v2403_v55 }
 0xb7c   :  { %2667 = vpow2.f32 %v2506_v21 }
 0xb7d   :  { %2669 = vpow2.f32 %v2507_v16  ;;  %2437 = vmatpush.msrb.mxu2 %v2402_v34 }
 0xb82   :  { %v2668_v32 = vpop.eup %2667 }
 0xb83   :  { %v2670_v38 = vpop.eup %2669  ;;  %v2332_v41 = vadd.f32 1.0, %v2668_v32 }
 0xb84   :  { %v2355_v61 = vadd.f32 1.0, %v2670_v38 }
 0xb85   :  { %2671 = vrcp.f32 %v2332_v41  ;;  %v2344_v2 = vand.u32 2147483648, %v2332_v41  ;;  %v2342_v60 = vand.u32 2147483647, %v2332_v41  ;;  %vm2338_vm10 = vweird.f32 %v2332_v41 }
 0xb86   :  { %2673 = vrcp.f32 %v2355_v61  ;;  %v2367_v22 = vand.u32 2147483648, %v2355_v61  ;;  %vm2361_vm15 = vweird.f32 %v2355_v61  ;;  %v2365_v19 = vand.u32 2147483647, %v2355_v61 }
 0xb87   :  { %v2345_v36 = vor.u32 1.1754944e-38, %v2344_v2  ;;  %vm2343_vm12 = vcmp.eq.f32.partialorder %v2342_v60, 8.507059e+37 }
 0xb88   :  { %v2368_v4 = vor.u32 1.1754944e-38, %v2367_v22  ;;  %vm2366_vm7 = vcmp.eq.f32.partialorder %v2365_v19, 8.507059e+37 }
 0xb8b   :  { %v2672_v48 = vpop.eup %2671 }
 0xb8c   :  { %v2334_v1 = vmul.f32 %v2672_v48, %v2332_v41  ;;  %v2674_v11 = vpop.eup %2673  ;;  %vm2339_vm9 = vweird.f32 %v2672_v48 }
 0xb8d   :  { %v2357_v26 = vmul.f32 %v2674_v11, %v2355_v61  ;;  %vm2340_vm11 = vmor %vm2338_vm10, %vm2339_vm9  ;;  %vm2362_vm13 = vweird.f32 %v2674_v11 }
 0xb8e   :  { %v2335_v53 = vsub.f32 1.0, %v2334_v1  ;;  %vm2363_vm2 = vmor %vm2361_vm15, %vm2362_vm13 }
 0xb8f   :  { %v2358_v45 = vsub.f32 1.0, %v2357_v26 }
 0xb90   :  { %v2336_v44 = vmul.f32 %v2672_v48, %v2335_v53 }
 0xb91   :  { %v2359_v8 = vmul.f32 %v2674_v11, %v2358_v45 }
 0xb92   :  { %v2337_v62 = vadd.f32 %v2672_v48, %v2336_v44 }
 0xb93   :  { %v2360_v12 = vadd.f32 %v2674_v11, %v2359_v8 }
 0xb94   :  { %v2341_v3 = vsel %vm2340_vm11, %v2672_v48, %v2337_v62 }
 0xb95   :  { %v2346_v50 = vsel %vm2343_vm12, %v2345_v36, %v2341_v3  ;;  %v2364_v31 = vsel %vm2363_vm2, %v2674_v11, %v2360_v12 }
 0xb96   :  { %v2375_v23 = vmul.f32 %v2373_v42, %v2346_v50  ;;  %v2369_v63 = vsel %vm2366_vm7, %v2368_v4, %v2364_v31 }
 0xb98   :  { %v2376_v56 = vadd.f32 %v2375_v23, %v3914_v37 }
 0xb9a   :  { %2675 = vtanh.f32 %v2376_v56 }
 0xba0   :  { %v2676_v49 = vpop.eup %2675 }
 0xba1   :  { %v2379_v10 = vrot.slane %v2676_v49, 1 }
 0xba3   :  { %v2381_v25 = vsub.f32 %v4277_v7, %v2379_v10 }
 0xba5   :  { %v2383_v37 = vrot.slane %v2381_v25, 7 }
 0xba7   :  { %v2385_v35 = vmul.f32 %v2383_v37, %v2369_v63 }
 0xba9   :  { %v2386_v9 = vadd.f32 %v2676_v49, %v2385_v35 }
 0xbab   :  { %v2393_v59 = vsel %vm1237_vm6, %v2392_v43, %v2386_v9  ;;  %v2398_v30 = vrot.slane %v2386_v9, 6 }
 0xbac   :  { %2438 = vmatmul.f32.vlgmr.msrb.gmra.mxu2 %v2393_v59 }
 0xbad   :  { %v2400_v52 = vsel %vm1225_vm14, %v2395_v29, %v2398_v30 }
 0xbae   :  { %2401 = vst [vmem:[#allocation8] sm:$0x3] %v2400_v52 }
 0xbaf   :  { %2465 = dma.vmem_to_hbm [thread:$0]  %s2461_s21, 32, %s2463_s3, [#allocation4]  }
 0xc2f   :  { %v2439_v13 = vpop.f32.mrf.mxu2 }
 0xc30   :  { %v2440_v51 = vadd.f32 %v2516_v0, %v2439_v13 }
 0xc32   :  { %2442 = vmax.xlane.f32.xlu0 %v2440_v51 }
 0xca5   :  { %v2443_v15 = vpop.xlane.xlu0 %2442 }
 0xca6   :  { %v2444_v18 = vsub.f32 %v2440_v51, %v2443_v15 }
 0xca8   :  { %v2445_v5 = vmul.f32 1.442695, %v2444_v18 }
 0xcaa   :  { %2677 = vpow2.f32 %v2445_v5 }
 0xcb0   :  { %v2678_v7 = vpop.eup %2677 }
 0xcb1   :  { %2447 = vadd.xlane.f32.xlu0 %v2678_v7 }
 0xd24   :  { %v2448_v16 = vpop.xlane.xlu0 %2447 }
 0xd25   :  { %2679 = vlog2.f32 %v2448_v16 }
 0xd2b   :  { %v2680_v39 = vpop.eup %2679 }
 0xd2c   :  { %v2450_v21 = vmul.f32 0.6931472, %v2680_v39 }
 0xd2e   :  { %v2451_v46 = vsub.f32 %v2444_v18, %v2450_v21 }
 0xd30   :  { %2452 = vst [vmem:[%s4318_s8] sm:$0xff] %v2451_v46 }
 0xd31   :  { %2879 = dma.done.wait [#allocation4], 32  }
 0xd32   :  { %2880 = vsyncadd [#allocation4], 4294967264 }
 0xd33   :  { %2472 = vsyncpa [#allocation3], 1 }
 0xd34   :  { %2473 = vsyncpa [#allocation6], 1 }
 0xd35   :  { %2474 = vsyncpa [#allocation4], 1 }

</bundles_post_ra>
